<compile_context>
chip_gen: v6e
topology: v6e:2x2x1
jax: 0.10.0
libtpu: 0.0.40
codegen_flags: <defaults>
</compile_context>

<pallas_src>
import functools

import jax
import jax.numpy as jnp
from jax.experimental import pallas as pl
from jax.experimental.pallas import tpu as pltpu


def _make_mlp_kernel(num_linear, w0, matmul_dtype):
    """Build the fused kernel for `num_linear` Linear layers.

    Layers 0..num_linear-2 are followed by Sine(w0); the last layer is plain.
    """
    w0 = float(w0)

    def kernel(x_ref, *refs):
        # refs = (W_0, b_0, W_1, b_1, ..., W_{L-1}, b_{L-1}, o_ref)
        o_ref = refs[-1]
        wb = refs[:-1]

        h = x_ref[...].astype(jnp.float32)                    # (tn, d_in)
        for li in range(num_linear):
            w = wb[2 * li][...].astype(matmul_dtype)          # (d_in, d_out)
            b = wb[2 * li + 1][...].astype(jnp.float32)       # (1, d_out)
            y = jnp.dot(h.astype(matmul_dtype), w,
                        preferred_element_type=jnp.float32) + b
            if li < num_linear - 1:
                # Sine activation: f32 on VPU/EUP (sin is a transcendental).
                y = jnp.sin(y if w0 == 1.0 else w0 * y)
            h = y
        o_ref[...] = h.astype(o_ref.dtype)

    return kernel


def mlp_forward(x, params, *, w0=1.0, tn=512, matmul_dtype=jnp.float32):
    """Forward pass of MLP(in_dim, out_dim, hidden_list).

    x:      (..., in_dim) float32
    params: list of (W, b) per Linear, W: (d_in, d_out), b: (1, d_out)
    returns (..., out_dim) float32
    """
    lead_shape = x.shape[:-1]
    in_dim = x.shape[-1]
    out_dim = params[-1][0].shape[1]

    x2 = x.reshape(-1, in_dim)
    n = x2.shape[0]

    # Row tile: multiple of 8 sublanes, clamped to the (row-padded) problem.
    tn = max(8, min(int(tn), -(-n // 8) * 8))
    n_tiles = pl.cdiv(n, tn)
    n_pad = n_tiles * tn
    if n_pad != n:
        # Pad rows so any N works; padded rows are computed and sliced off.
        x2 = jnp.pad(x2, ((0, n_pad - n), (0, 0)))

    flat_params = [a for wb in params for a in wb]
    kernel = _make_mlp_kernel(len(params), w0, matmul_dtype)

    in_specs = [pl.BlockSpec((tn, in_dim), lambda i: (i, 0))]      # x rows
    for arr in flat_params:
        # Weights/biases: tiny, grid-invariant, fully VMEM-resident.
        in_specs.append(pl.BlockSpec(arr.shape, lambda i: (0, 0)))

    out = pl.pallas_call(
        kernel,
        out_shape=jax.ShapeDtypeStruct((n_pad, out_dim), jnp.float32),
        grid_spec=pl.GridSpec(
            grid=(n_tiles,),
            in_specs=in_specs,
            out_specs=pl.BlockSpec((tn, out_dim), lambda i: (i, 0)),
        ),
        compiler_params=pltpu.CompilerParams(
            dimension_semantics=("parallel",)),
    )(x2, *flat_params)

    return out[:n].reshape(*lead_shape, out_dim)


def init_mlp_params(key, in_dim, out_dim, hidden_list):
    """nn.Linear-style init: uniform(+/- 1/sqrt(fan_in)) for W and b.

    W is stored pre-transposed as (d_in, d_out) so the kernel computes h @ W.
    """
    dims = [in_dim] + list(hidden_list) + [out_dim]
    params = []
    for li in range(len(dims) - 1):
        din, dout = dims[li], dims[li + 1]
        key, kw, kb = jax.random.split(key, 3)
        bound = 1.0 / (din ** 0.5)
        w = jax.random.uniform(kw, (din, dout), jnp.float32, -bound, bound)
        b = jax.random.uniform(kb, (1, dout), jnp.float32, -bound, bound)
        params.append((w, b))
    return params


# --- pure-JAX reference for sanity check -----------------------------------
def _ref_forward(x, params, w0=1.0):
    lead = x.shape[:-1]
    h = x.reshape(-1, x.shape[-1])
    for li, (w, b) in enumerate(params):
        h = h @ w + b
        if li < len(params) - 1:
            h = jnp.sin(w0 * h)
    return h.reshape(*lead, -1)


if __name__ == "__main__":
    in_dim, out_dim = 16, 8
    hidden_list = [64, 64]
    x_shape = (2, 4, 16, in_dim)          # leading dims flatten to N = 128 rows

    key = jax.random.PRNGKey(0)
    kx, kp = jax.random.split(key)
    x = jax.random.normal(kx, x_shape, dtype=jnp.float32)
    params = init_mlp_params(kp, in_dim, out_dim, hidden_list)

    ref = _ref_forward(x, params)

    # f32 MXU-operand path.
    run_f32 = jax.jit(functools.partial(
        mlp_forward, tn=512, matmul_dtype=jnp.float32))
    out = jax.block_until_ready(run_f32(x, params))
    assert out.shape == (*x_shape[:-1], out_dim)
    err = jnp.max(jnp.abs(out - ref))
    assert jnp.allclose(out, ref, atol=1e-3, rtol=1e-3), \
        f"f32 mismatch: max abs err {err}"

    # bf16 MXU-operand path (f32 accumulation, f32 sine) — looser tolerance
    # due to bf16 operand rounding.
    run_bf16 = jax.jit(functools.partial(
        mlp_forward, tn=512, matmul_dtype=jnp.bfloat16))
    out_bf16 = jax.block_until_ready(run_bf16(x, params))
    err_bf16 = jnp.max(jnp.abs(out_bf16 - ref))
    assert jnp.allclose(out_bf16, ref, atol=1e-1, rtol=1e-1), \
        f"bf16 mismatch: max abs err {err_bf16}"

    print("KERNEL_OK")
</pallas_src>

<mosaic_0001>
module attributes {stable_mosaic.version = 11 : i64} {
  func.func @kernel(%arg0: i32, %arg1: memref<128x16xf32, #tpu.memory_space<vmem>>, %arg2: memref<16x64xf32, #tpu.memory_space<vmem>>, %arg3: memref<1x64xf32, #tpu.memory_space<vmem>>, %arg4: memref<64x64xf32, #tpu.memory_space<vmem>>, %arg5: memref<1x64xf32, #tpu.memory_space<vmem>>, %arg6: memref<64x8xf32, #tpu.memory_space<vmem>>, %arg7: memref<1x8xf32, #tpu.memory_space<vmem>>, %arg8: memref<128x8xf32, #tpu.memory_space<vmem>>) attributes {dimension_semantics = [#tpu.dimension_semantics<parallel>], iteration_bounds = array<i64: 1>, scalar_prefetch = 0 : i64, scratch_operands = 0 : i64, tpu.core_type = #tpu.core_type<tc>, window_params = [{transform_indices = @transform_0, window_bounds = array<i64: 128, 16>}, {pipeline_mode = #tpu.pipeline_mode<synchronous>, transform_indices = @transform_1, window_bounds = array<i64: 16, 64>}, {pipeline_mode = #tpu.pipeline_mode<synchronous>, transform_indices = @transform_2, window_bounds = array<i64: 1, 64>}, {pipeline_mode = #tpu.pipeline_mode<synchronous>, transform_indices = @transform_3, window_bounds = array<i64: 64, 64>}, {pipeline_mode = #tpu.pipeline_mode<synchronous>, transform_indices = @transform_4, window_bounds = array<i64: 1, 64>}, {pipeline_mode = #tpu.pipeline_mode<synchronous>, transform_indices = @transform_5, window_bounds = array<i64: 64, 8>}, {pipeline_mode = #tpu.pipeline_mode<synchronous>, transform_indices = @transform_6, window_bounds = array<i64: 1, 8>}, {transform_indices = @transform_7, window_bounds = array<i64: 128, 8>}]} {
    %c0 = arith.constant 0 : index
    %c0_0 = arith.constant 0 : index
    %0 = vector.load %arg1[%c0, %c0_0] : memref<128x16xf32, #tpu.memory_space<vmem>>, vector<128x16xf32>
    %c0_1 = arith.constant 0 : index
    %c0_2 = arith.constant 0 : index
    %1 = vector.load %arg2[%c0_1, %c0_2] : memref<16x64xf32, #tpu.memory_space<vmem>>, vector<16x64xf32>
    %c0_3 = arith.constant 0 : index
    %c0_4 = arith.constant 0 : index
    %2 = vector.load %arg3[%c0_3, %c0_4] : memref<1x64xf32, #tpu.memory_space<vmem>>, vector<1x64xf32>
    %cst = arith.constant dense<0.000000e+00> : vector<128x64xf32>
    %3 = tpu.matmul %0, %1, %cst {dimension_numbers = #tpu.dot_dimension_numbers<[1], [0], [0], [1], [0, 0, 1, 1], [], []>} : vector<128x16xf32>, vector<16x64xf32>, vector<128x64xf32> -> vector<128x64xf32>
    %4 = vector.broadcast %2 : vector<1x64xf32> to vector<128x64xf32>
    %5 = arith.addf %3, %4 : vector<128x64xf32>
    %6 = math.sin %5 : vector<128x64xf32>
    %c0_5 = arith.constant 0 : index
    %c0_6 = arith.constant 0 : index
    %7 = vector.load %arg4[%c0_5, %c0_6] : memref<64x64xf32, #tpu.memory_space<vmem>>, vector<64x64xf32>
    %c0_7 = arith.constant 0 : index
    %c0_8 = arith.constant 0 : index
    %8 = vector.load %arg5[%c0_7, %c0_8] : memref<1x64xf32, #tpu.memory_space<vmem>>, vector<1x64xf32>
    %cst_9 = arith.constant dense<0.000000e+00> : vector<128x64xf32>
    %9 = tpu.matmul %6, %7, %cst_9 {dimension_numbers = #tpu.dot_dimension_numbers<[1], [0], [0], [1], [0, 0, 1, 1], [], []>} : vector<128x64xf32>, vector<64x64xf32>, vector<128x64xf32> -> vector<128x64xf32>
    %10 = vector.broadcast %8 : vector<1x64xf32> to vector<128x64xf32>
    %11 = arith.addf %9, %10 : vector<128x64xf32>
    %12 = math.sin %11 : vector<128x64xf32>
    %c0_10 = arith.constant 0 : index
    %c0_11 = arith.constant 0 : index
    %13 = vector.load %arg6[%c0_10, %c0_11] : memref<64x8xf32, #tpu.memory_space<vmem>>, vector<64x8xf32>
    %c0_12 = arith.constant 0 : index
    %c0_13 = arith.constant 0 : index
    %14 = vector.load %arg7[%c0_12, %c0_13] : memref<1x8xf32, #tpu.memory_space<vmem>>, vector<1x8xf32>
    %cst_14 = arith.constant dense<0.000000e+00> : vector<128x8xf32>
    %15 = tpu.matmul %12, %13, %cst_14 {dimension_numbers = #tpu.dot_dimension_numbers<[1], [0], [0], [1], [0, 0, 1, 1], [], []>} : vector<128x64xf32>, vector<64x8xf32>, vector<128x8xf32> -> vector<128x8xf32>
    %16 = vector.broadcast %14 : vector<1x8xf32> to vector<128x8xf32>
    %17 = arith.addf %15, %16 : vector<128x8xf32>
    %c0_15 = arith.constant 0 : index
    %c0_16 = arith.constant 0 : index
    %18 = vector.load %arg8[%c0_15, %c0_16] : memref<128x8xf32, #tpu.memory_space<vmem>>, vector<128x8xf32>
    tpu.vector_store %arg8[%c0_15, %c0_16], %17 {strides = array<i32>} : memref<128x8xf32, #tpu.memory_space<vmem>>, vector<128x8xf32>,
    return
  }
  func.func @transform_0(%arg0: i32) -> (i32, i32) {
    %c0_i32 = arith.constant 0 : i32
    %c0_i32_0 = arith.constant 0 : i32
    return %arg0, %c0_i32 : i32, i32
  }
  func.func @transform_1(%arg0: i32) -> (i32, i32) {
    %c0_i32 = arith.constant 0 : i32
    %c0_i32_0 = arith.constant 0 : i32
    %c0_i32_1 = arith.constant 0 : i32
    return %c0_i32, %c0_i32_0 : i32, i32
  }
  func.func @transform_2(%arg0: i32) -> (i32, i32) {
    %c0_i32 = arith.constant 0 : i32
    %c0_i32_0 = arith.constant 0 : i32
    %c0_i32_1 = arith.constant 0 : i32
    return %c0_i32, %c0_i32_0 : i32, i32
  }
  func.func @transform_3(%arg0: i32) -> (i32, i32) {
    %c0_i32 = arith.constant 0 : i32
    %c0_i32_0 = arith.constant 0 : i32
    %c0_i32_1 = arith.constant 0 : i32
    return %c0_i32, %c0_i32_0 : i32, i32
  }
  func.func @transform_4(%arg0: i32) -> (i32, i32) {
    %c0_i32 = arith.constant 0 : i32
    %c0_i32_0 = arith.constant 0 : i32
    %c0_i32_1 = arith.constant 0 : i32
    return %c0_i32, %c0_i32_0 : i32, i32
  }
  func.func @transform_5(%arg0: i32) -> (i32, i32) {
    %c0_i32 = arith.constant 0 : i32
    %c0_i32_0 = arith.constant 0 : i32
    %c0_i32_1 = arith.constant 0 : i32
    return %c0_i32, %c0_i32_0 : i32, i32
  }
  func.func @transform_6(%arg0: i32) -> (i32, i32) {
    %c0_i32 = arith.constant 0 : i32
    %c0_i32_0 = arith.constant 0 : i32
    %c0_i32_1 = arith.constant 0 : i32
    return %c0_i32, %c0_i32_0 : i32, i32
  }
  func.func @transform_7(%arg0: i32) -> (i32, i32) {
    %c0_i32 = arith.constant 0 : i32
    %c0_i32_0 = arith.constant 0 : i32
    return %arg0, %c0_i32 : i32, i32
  }
}

</mosaic_0001>

<bundles_post_ra>
// kernel: mlp_forward.1
= control target key start
LH: loop header
LB: loop body
LE: loop exit
PB: predicated region body
PF: predicated region fallthrough
CT: control target
= control target key end

     0   :  { %12 = vsyncpa [#allocation3], 0  ;;  %s7846_s0 = inlined_call_operand.hbm [shape: f32[128,16], index: 0, kind: input, shape index: {}]   ;;  %s7847_s1 = inlined_call_operand.hbm [shape: f32[16,64], index: 1, kind: input, shape index: {}]   ;;  %s7848_s2 = inlined_call_operand.vmem [shape: f32[1,64], index: 2, kind: input, shape index: {}]   ;;  %s7849_s3 = inlined_call_operand.vmem [shape: f32[64,64], index: 3, kind: input, shape index: {}]   ;;  %s7850_s4 = inlined_call_operand.vmem [shape: f32[1,64], index: 4, kind: input, shape index: {}]   ;;  %s7851_s5 = inlined_call_operand.vmem [shape: f32[64,8], index: 5, kind: input, shape index: {}]   ;;  %s7852_s6 = inlined_call_operand.vmem [shape: f32[1,8], index: 6, kind: input, shape index: {}]   ;;  %s7853_s7 = inlined_call_operand.vmem [shape: f32[128,8], index: 7, kind: output, shape index: {}]  }
   0x1   :  { %13 = vsyncpa [#allocation5], 0  ;;  %s4711_s24 = smov [#allocation2]  }
   0x2   :  { %s19_s25 = sshll.u32 %s4711_s24, 4  ;;  %s20_s25 = int_to_ptr.vmem [resolvable:$true] %s19_s25 }
   0x3   :  { %s4675_s26 = scalar_lea.vmem %s20_s25, 2048  ;;  %p4680_p1 = scmp.lt.s32.totalorder %s20_s25, %s20_s25 }
   0x4   :  { %p4676_p0 = scmp.ne.s32.totalorder %s20_s25, %s4675_s26  ;;  %p4681_p2 = scmp.lt.s32.totalorder %s4675_s26, %s4675_s26 }
   0x6   :  { %p4682_p3 = por %p4681_p2, %p4680_p1 }
   0x8   :  { %p4683_p4 = pnand %p4682_p3, %p4676_p0 }
   0xa   :  { %4686 = shalt.err (!%p4683_p4)
}
   0xb   :  { %s4712_s27 = smov 128   ;;  %s4713_s28 = smov 8  }
   0xc   :  { %25 = dma.hbm_to_vmem [thread:$0]  %s7846_s0, 2048, %s20_s25, [#allocation3], %s4712_s27, %s4712_s27, %s4713_s28  }
   0xd   :  { %s4714_s8 = smov [#allocation4]  }
   0xe   :  { %s31_s9 = sshll.u32 %s4714_s8, 4  ;;  %s32_s9 = int_to_ptr.vmem [resolvable:$true] %s31_s9 }
   0xf   :  { %s4695_s10 = scalar_lea.vmem %s32_s9, 256  ;;  %p4700_p6 = scmp.lt.s32.totalorder %s32_s9, %s32_s9 }
  0x10   :  { %p4696_p5 = scmp.ne.s32.totalorder %s32_s9, %s4695_s10  ;;  %p4701_p7 = scmp.lt.s32.totalorder %s4695_s10, %s4695_s10 }
  0x12   :  { %p4702_p8 = por %p4701_p7, %p4700_p6 }
  0x14   :  { %p4703_p9 = pnand %p4702_p8, %p4696_p5 }
  0x16   :  { %4706 = shalt.err (!%p4703_p9)
}
  0x17   :  { %37 = dma.hbm_to_vmem [thread:$0]  %s7847_s1, 256, %s32_s9, [#allocation5], %s4712_s27, %s4712_s27, %s4713_s28  }
  0x18   :  { %4707 = dma.done.wait [#allocation3], 2048  }
  0x19   :  { %4708 = vsyncadd [#allocation3], 4294965248 }
  0x1a   :  { %4709 = dma.done.wait [#allocation5], 256  }
  0x1b   :  { %4710 = vsyncadd [#allocation5], 4294967040  ;;  %v71_v0 = vld [vmem:[#allocation4 + $0x8] sm:$0xff]  ;;  %v70_v1 = vld [vmem:[#allocation4] sm:$0xff]  ;;  %vm79_vm0 = vcmask 130048  }
  0x1c   :  { %4286 = vmatprep.subr.mxu0 %v71_v0  ;;  %4394 = vmatprep.subr.mxu1 %v71_v0  ;;  %v54_v2 = vld [vmem:[#allocation2] sm:$0xff]  ;;  %v55_v4 = vld [vmem:[#allocation2 + $0x8] sm:$0xff]  ;;  %v56_v6 = vld [vmem:[#allocation2 + $0x10] sm:$0xff]  ;;  %v7879_v53 = vmov 683565275  }
  0x1d   :  { %4287 = vmatpush3.msra.mxu0 %v71_v0  ;;  %4396 = vmatpush3.msra.mxu1 %v71_v0  ;;  %v62_v3 = vld [vmem:[#allocation2 + $0x40] sm:$0xff]  ;;  %v63_v5 = vld [vmem:[#allocation2 + $0x48] sm:$0xff]  ;;  %v64_v7 = vld [vmem:[#allocation2 + $0x50] sm:$0xff]  ;;  %v7862_v57 = vmov 2475754826  }
  0x1e   :  { %4288 = vmatprep.subr.mxu0 %v70_v1  ;;  %4395 = vmatprep.subr.mxu1 %v70_v1  ;;  %v57_v8 = vld [vmem:[#allocation2 + $0x18] sm:$0xff]  ;;  %v58_v10 = vld [vmem:[#allocation2 + $0x20] sm:$0xff]  ;;  %v59_v12 = vld [vmem:[#allocation2 + $0x28] sm:$0xff]  ;;  %v7858_v59 = vmov 2131351028  }
  0x1f   :  { %4289 = vmatpush3.msra.mxu0 %v70_v1  ;;  %4397 = vmatpush3.msra.mxu1 %v70_v1  ;;  %v65_v9 = vld [vmem:[#allocation2 + $0x58] sm:$0xff]  ;;  %v66_v11 = vld [vmem:[#allocation2 + $0x60] sm:$0xff]  ;;  %v67_v13 = vld [vmem:[#allocation2 + $0x68] sm:$0xff]  ;;  %v7860_v61 = vmov 2102212464  }
  0x20   :  { %4290 = vmatprep.mubr.msk.f32.mxu0 %vm79_vm0, %v54_v2  ;;  %4302 = vmatprep.mubr.msk.f32.mxu1 %vm79_vm0, %v62_v3  ;;  %v60_v14 = vld [vmem:[#allocation2 + $0x30] sm:$0xff]  ;;  %v61_v16 = vld [vmem:[#allocation2 + $0x38] sm:$0xff]  ;;  %v4786_v18 = vld [vmem:[%s7848_s2] ss:$0 sm:$0xff]  ;;  %v7902_v63 = vmov 920167782  }
  0x21   :  { %4291 = vmatmul.mubr.msk.f32.vlgmr.msra.gmra.mxu0 %vm79_vm0, %v55_v4  ;;  %4303 = vmatmul.mubr.msk.f32.vlgmr.msra.gmra.mxu1 %vm79_vm0, %v63_v5  ;;  %v68_v15 = vld [vmem:[#allocation2 + $0x70] sm:$0xff]  ;;  %v69_v17 = vld [vmem:[#allocation2 + $0x78] sm:$0xff] }
  0x22   :  { %4293 = vmatprep.mubr.msk.f32.mxu0 %vm79_vm0, %v56_v6  ;;  %4305 = vmatprep.mubr.msk.f32.mxu1 %vm79_vm0, %v64_v7  ;;  %v7866_v6 = vmov 1326507024  }
  0x25   :  { %4294 = vmatmul.mubr.msk.f32.gmra.mxu0 %vm79_vm0, %v57_v8  ;;  %4306 = vmatmul.mubr.msk.f32.gmra.mxu1 %vm79_vm0, %v65_v9 }
  0x26   :  { %4296 = vmatprep.mubr.msk.f32.mxu0 %vm79_vm0, %v58_v10  ;;  %4308 = vmatprep.mubr.msk.f32.mxu1 %vm79_vm0, %v66_v11 }
  0x29   :  { %4297 = vmatmul.mubr.msk.f32.gmra.mxu0 %vm79_vm0, %v59_v12  ;;  %4309 = vmatmul.mubr.msk.f32.gmra.mxu1 %vm79_vm0, %v67_v13 }
  0x2a   :  { %4299 = vmatprep.mubr.msk.f32.mxu0 %vm79_vm0, %v60_v14  ;;  %4311 = vmatprep.mubr.msk.f32.mxu1 %vm79_vm0, %v68_v15 }
  0x2d   :  { %4300 = vmatmul.mubr.msk.f32.gmra.mxu0 %vm79_vm0, %v61_v16  ;;  %4312 = vmatmul.mubr.msk.f32.gmra.mxu1 %vm79_vm0, %v69_v17 }
  0xe1   :  { %v4292_v19 = vpop.f32.mrf.mxu0  ;;  %v4304_v20 = vpop.f32.mrf.mxu1 }
  0xe2   :  { %v4789_v21 = vadd.f32 %v4292_v19, %v4786_v18  ;;  %v4792_v22 = vadd.f32 %v4304_v20, %v4786_v18 }
  0xe3   :  { %v194_v23 = vpop.f32.mrf.mxu0  ;;  %v234_v41 = vpop.f32.mrf.mxu1 }
  0xe4   :  { %8006 = vst [vmem:[#allocation8_spill] sm:$0xff] %v4792_v22  ;;  %v377_v24 = vand.u32 2147483647, %v4789_v21  ;;  %v380_v25 = vand.u32 2139095040, %v4789_v21  ;;  %v1209_v26 = vand.u32 2147483647, %v4792_v22  ;;  %v4799_v28 = vadd.f32 %v4786_v18, %v194_v23 }
  0xe5   :  { %v1212_v27 = vand.u32 2139095040, %v4792_v22  ;;  %v4807_v47 = vadd.f32 %v4786_v18, %v234_v41 }
  0xe6   :  { %v381_v29 = vshrl.u32 %v380_v25, 23  ;;  %v384_v30 = vand.u32 8388607, %v377_v24  ;;  %v1216_v32 = vand.u32 8388607, %v1209_v26  ;;  %v276_v34 = vand.u32 2139095040, %v4799_v28 }
  0xe7   :  { %v1213_v31 = vshrl.u32 %v1212_v27, 23  ;;  %8007 = vst [vmem:[#allocation9_spill] sm:$0xff] %v4807_v47  ;;  %v273_v50 = vand.u32 2147483647, %v4799_v28 }
  0xe8   :  { %v4062_v33 = vadd.s32 4294967169, %v381_v29  ;;  %v277_v37 = vshrl.u32 %v276_v34, 23  ;;  %v385_v38 = vor.u32 8388608, %v384_v30  ;;  %v1217_v39 = vor.u32 8388608, %v1216_v32 }
  0xe9   :  { %v4094_v35 = vadd.s32 4294967169, %v1213_v31 }
  0xea   :  { %v387_v36 = vadd.s32 1, %v4062_v33  ;;  %v4058_v42 = vadd.s32 4294967169, %v277_v37  ;;  %v4809_v48 = vshll.u32 %v385_v38, 8  ;;  %v4811_v49 = vshll.u32 %v1217_v39, 8 }
  0xeb   :  { %v1219_v40 = vadd.s32 1, %v4094_v35 }
  0xec   :  { %vm388_vm1 = vcmp.gt.s32.totalorder %v387_v36, 0  ;;  %v4814_v51 = vadd.s32 1, %v4058_v42 }
  0xed   :  { %v389_v43 = vsel %vm388_vm1, %v387_v36, 0  ;;  %vm1220_vm2 = vcmp.gt.s32.totalorder %v1219_v40, 0 }
  0xee   :  { %v390_v44 = vshrl.u32 %v389_v43, 5  ;;  %v391_v45 = vand.u32 31, %v389_v43  ;;  %v1221_v46 = vsel %vm1220_vm2, %v1219_v40, 0  ;;  %vm284_vm12 = vcmp.gt.s32.totalorder %v4814_v51, 0 }
  0xef   :  { %v4817_v55 = vshrl.u32 %v1221_v46, 5  ;;  %v1223_v56 = vand.u32 31, %v1221_v46 }
  0xf0   :  { %v392_v52 = vsub.s32 32, %v391_v45  ;;  %v394_v54 = vshll.u32 %v7879_v53, %v391_v45  ;;  %v397_v58 = vshll.u32 %v7862_v57, %v391_v45  ;;  %v400_v60 = vshll.u32 %v7858_v59, %v391_v45 }
  0xf1   :  { %v403_v62 = vshll.u32 %v7860_v61, %v391_v45  ;;  %v406_v0 = vshll.u32 %v7902_v63, %v391_v45  ;;  %vm409_vm3 = vcmp.lt.s32.totalorder %v390_v44, 1  ;;  %vm411_vm4 = vcmp.lt.s32.totalorder %v390_v44, 3 }
  0xf2   :  { %v395_v1 = vshrl.u32 %v7862_v57, %v392_v52  ;;  %v398_v2 = vshrl.u32 %v7858_v59, %v392_v52  ;;  %v401_v3 = vshrl.u32 %v7860_v61, %v392_v52  ;;  %v393_v4 = vshrl.u32 %v7879_v53, %v392_v52 }
  0xf3   :  { %v404_v5 = vshrl.u32 %v7902_v63, %v392_v52  ;;  %v407_v7 = vshrl.u32 %v7866_v6, %v392_v52  ;;  %v1224_v11 = vsub.s32 32, %v1223_v56  ;;  %vm412_vm5 = vcmp.lt.s32.totalorder %v390_v44, 4 }
  0xf4   :  { %v396_v8 = vor.u32 %v395_v1, %v394_v54  ;;  %v399_v9 = vor.u32 %v398_v2, %v397_v58  ;;  %v402_v10 = vor.u32 %v401_v3, %v400_v60  ;;  %v1226_v14 = vshll.u32 %v7879_v53, %v1223_v56 }
  0xf5   :  { %v405_v12 = vor.u32 %v404_v5, %v403_v62  ;;  %v408_v13 = vor.u32 %v407_v7, %v406_v0  ;;  %v1229_v27 = vshll.u32 %v7862_v57, %v1223_v56  ;;  %vm410_vm6 = vcmp.lt.s32.totalorder %v390_v44, 2 }
  0xf6   :  { %v413_v15 = vsel %vm409_vm3, %v393_v4, %v396_v8  ;;  %v414_v16 = vsel %vm412_vm5, %v402_v10, 2102212464  ;;  %v417_v17 = vsel %vm409_vm3, %v396_v8, %v399_v9  ;;  %v421_v19 = vsel %vm409_vm3, %v399_v9, %v402_v10 }
  0xf7   :  { %v415_v20 = vsel %vm411_vm4, %v399_v9, %v414_v16  ;;  %v418_v23 = vsel %vm412_vm5, %v405_v12, 920167782  ;;  %v422_v25 = vsel %vm412_vm5, %v408_v13, 1326507024  ;;  %v1227_v31 = vshrl.u32 %v7862_v57, %v1224_v11 }
  0xf8   :  { %v419_v29 = vsel %vm411_vm4, %v402_v10, %v418_v23  ;;  %v423_v30 = vsel %vm411_vm4, %v405_v12, %v422_v25  ;;  %v416_v32 = vsel %vm410_vm6, %v413_v15, %v415_v20  ;;  %v1230_v35 = vshrl.u32 %v7858_v59, %v1224_v11 }
  0xf9   :  { %v420_v33 = vsel %vm410_vm6, %v417_v17, %v419_v29  ;;  %v424_v34 = vsel %vm410_vm6, %v421_v19, %v423_v30  ;;  %v1228_v40 = vor.u32 %v1227_v31, %v1226_v14  ;;  %v1232_v42 = vshll.u32 %v7858_v59, %v1223_v56  ;;  %v4295_v31 = vpop.f32.mrf.mxu0 }
  0xfa   :  { %v4840_v36 = vmul.u32.u64.low %v4809_v48, %v424_v34  ;;  %v4841_v37 = vmul.u32.u64.high %v4809_v48, %v424_v34, %v4840_v36  ;;  %v4844_v38 = vmul.u32.u64.low %v4809_v48, %v420_v33  ;;  %v4845_v39 = vmul.u32.u64.high %v4809_v48, %v420_v33, %v4844_v38 }
  0xfb   :  { %v1231_v41 = vor.u32 %v1230_v35, %v1229_v27  ;;  %v1233_v43 = vshrl.u32 %v7860_v61, %v1224_v11  ;;  %v1235_v44 = vshll.u32 %v7860_v61, %v1223_v56  ;;  %v1236_v45 = vshrl.u32 %v7902_v63, %v1224_v11 }
  0xfc   :  { %v1238_v46 = vshll.u32 %v7902_v63, %v1223_v56  ;;  %v1239_v52 = vshrl.u32 %v7866_v6, %v1224_v11  ;;  %v432_v54 = vmul.u32 %v4809_v48, %v416_v32  ;;  %v1225_v58 = vshrl.u32 %v7879_v53, %v1224_v11 }
  0xfd   :  { %v1234_v60 = vor.u32 %v1233_v43, %v1232_v42  ;;  %vm1241_vm7 = vcmp.lt.s32.totalorder %v4817_v55, 1  ;;  %vm434_vm8 = vc.u32 %v4841_v37, %v4844_v38  ;;  %v435_v62 = vadd.s32 1, %v4845_v39 }
  0xfe   :  { %v1237_v0 = vor.u32 %v1236_v45, %v1235_v44  ;;  %vm1243_vm9 = vcmp.lt.s32.totalorder %v4817_v55, 3  ;;  %v1240_v1 = vor.u32 %v1239_v52, %v1238_v46  ;;  %vm1242_vm10 = vcmp.lt.s32.totalorder %v4817_v55, 2 }
  0xff   :  { %vm1244_vm11 = vcmp.lt.s32.totalorder %v4817_v55, 4  ;;  %v1249_v56 = vsel %vm1241_vm7, %v1228_v40, %v1231_v41  ;;  %v436_v48 = vsel %vm434_vm8, %v435_v62, %v4845_v39  ;;  %v1253_v4 = vsel %vm1241_vm7, %v1231_v41, %v1234_v60 }
 0x100   :  { %v1246_v2 = vsel %vm1244_vm11, %v1234_v60, 2102212464  ;;  %v1250_v3 = vsel %vm1244_vm11, %v1237_v0, 920167782  ;;  %v437_v5 = vadd.s32 %v436_v48, %v432_v54  ;;  %v1245_v7 = vsel %vm1241_vm7, %v1225_v58, %v1228_v40 }
 0x101   :  { %v1251_v8 = vsel %vm1243_vm9, %v1234_v60, %v1250_v3  ;;  %v1254_v9 = vsel %vm1244_vm11, %v1240_v1, 1326507024  ;;  %v1247_v10 = vsel %vm1243_vm9, %v1231_v41, %v1246_v2  ;;  %v280_v20 = vand.u32 8388607, %v273_v50 }
 0x102   :  { %v1252_v11 = vsel %vm1242_vm10, %v1249_v56, %v1251_v8  ;;  %v1255_v12 = vsel %vm1243_vm9, %v1237_v0, %v1254_v9  ;;  %v438_v13 = vadd.s32 536870912, %v437_v5  ;;  %v285_v23 = vsel %vm284_vm12, %v4814_v51, 0 }
 0x103   :  { %v1256_v14 = vsel %vm1242_vm10, %v1253_v4, %v1255_v12  ;;  %v4870_v15 = vmul.u32.u64.low %v4811_v49, %v1252_v11  ;;  %v4871_v16 = vmul.u32.u64.high %v4811_v49, %v1252_v11, %v4870_v15  ;;  %v1248_v27 = vsel %vm1242_vm10, %v1245_v7, %v1247_v10 }
 0x104   :  { %v4875_v17 = vmul.u32.u64.low %v4811_v49, %v1256_v14  ;;  %v4876_v19 = vmul.u32.u64.high %v4811_v49, %v1256_v14, %v4875_v17  ;;  %v4881_v25 = vshrl.u32 %v438_v13, 30  ;;  %v287_v29 = vand.u32 31, %v285_v23 }
 0x105   :  { %v1108_v30 = vand.u32 2139095040, %v4807_v47  ;;  %v1267_v33 = vadd.s32 1, %v4871_v16  ;;  %v1264_v35 = vmul.u32 %v4811_v49, %v1248_v27  ;;  %v281_v51 = vor.u32 8388608, %v280_v20 }
 0x106   :  { %v440_v32 = vshll.u32 %v4881_v25, 30  ;;  %v288_v34 = vsub.s32 32, %v287_v29  ;;  %vm1266_vm13 = vc.u32 %v4876_v19, %v4870_v15  ;;  %v4892_v36 = vadd.f32 %v4295_v31, %v4786_v18 }
 0x107   :  { %v1268_v39 = vsel %vm1266_vm13, %v1267_v33, %v4871_v16  ;;  %v1105_v40 = vand.u32 2147483647, %v4807_v47  ;;  %v1109_v41 = vshrl.u32 %v1108_v30, 23  ;;  %v290_v43 = vshll.u32 %v7879_v53, %v287_v29 }
 0x108   :  { %v4894_v55 = vsub.s32 %v437_v5, %v440_v32  ;;  %v1269_v42 = vadd.s32 %v1268_v39, %v1264_v35  ;;  %v291_v44 = vshrl.u32 %v7862_v57, %v288_v34  ;;  %v294_v49 = vshrl.u32 %v7858_v59, %v288_v34 }
 0x109   :  { %v286_v46 = vshrl.u32 %v285_v23, 5  ;;  %v293_v52 = vshll.u32 %v7862_v57, %v287_v29  ;;  %v297_v54 = vshrl.u32 %v7860_v61, %v288_v34  ;;  %v296_v62 = vshll.u32 %v7858_v59, %v287_v29 }
 0x10a   :  { %v443_v45 = vsub.s32 0, %v4894_v55  ;;  %v1270_v58 = vadd.s32 536870912, %v1269_v42  ;;  %v292_v60 = vor.u32 %v291_v44, %v290_v43  ;;  %v4905_v0 = vshll.u32 %v281_v51, 8 }
 0x10b   :  { %v295_v56 = vor.u32 %v294_v49, %v293_v52  ;;  %v299_v48 = vshll.u32 %v7860_v61, %v287_v29  ;;  %v300_v2 = vshrl.u32 %v7902_v63, %v288_v34  ;;  %v298_v4 = vor.u32 %v297_v54, %v296_v62 }
 0x10c   :  { %v4063_v1 = vmin.u32 %v443_v45, %v4894_v55  ;;  %v4910_v3 = vshrl.u32 %v1270_v58, 30  ;;  %v302_v5 = vshll.u32 %v7902_v63, %v287_v29  ;;  %v303_v7 = vshrl.u32 %v7866_v6, %v288_v34 }
 0x10d   :  { %v301_v9 = vor.u32 %v300_v2, %v299_v48  ;;  %vm305_vm14 = vcmp.lt.s32.totalorder %v286_v46, 1  ;;  %v4090_v10 = vadd.s32 4294967169, %v1109_v41  ;;  %vm306_vm15 = vcmp.lt.s32.totalorder %v286_v46, 2 }
 0x10e   :  { %8008 = vst [vmem:[#allocation10_spill] sm:$0xff] %v4910_v3  ;;  %v445_v8 = vclz %v4063_v1  ;;  %v1272_v11 = vshll.u32 %v4910_v3, 30  ;;  %v304_v12 = vor.u32 %v303_v7, %v302_v5  ;;  %vm308_vm0 = vcmp.lt.s32.totalorder %v286_v46, 4 }
 0x10f   :  { %vm307_vm1 = vcmp.lt.s32.totalorder %v286_v46, 3  ;;  %v313_v14 = vsel %vm305_vm14, %v292_v60, %v295_v56  ;;  %v314_v16 = vsel %vm308_vm0, %v301_v9, 920167782  ;;  %v310_v20 = vsel %vm308_vm0, %v298_v4, 2102212464 }
 0x110   :  { %v4064_v13 = vadd.s32 4294967294, %v445_v8  ;;  %v4916_v17 = vsub.s32 %v1269_v42, %v1272_v11  ;;  %v315_v23 = vsel %vm307_vm1, %v298_v4, %v314_v16  ;;  %v317_v27 = vsel %vm305_vm14, %v295_v56, %v298_v4 }
 0x111   :  { %v289_v29 = vshrl.u32 %v7879_v53, %v288_v34  ;;  %v316_v30 = vsel %vm306_vm15, %v313_v14, %v315_v23  ;;  %v318_v31 = vsel %vm308_vm0, %v304_v12, 1326507024  ;;  %v1115_v51 = vadd.s32 1, %v4090_v10 }
 0x112   :  { %vm4065_vm2 = vcmp.lt.s32.totalorder %v4064_v13, 0  ;;  %v1275_v33 = vsub.s32 0, %v4916_v17  ;;  %v319_v35 = vsel %vm307_vm1, %v301_v9, %v318_v31  ;;  %v311_v42 = vsel %vm307_vm1, %v295_v56, %v310_v20 }
 0x113   :  { %v448_v32 = vsel %vm4065_vm2, 0, %v4064_v13  ;;  %v309_v41 = vsel %vm305_vm14, %v289_v29, %v292_v60  ;;  %v320_v43 = vsel %vm306_vm15, %v317_v27, %v319_v35  ;;  %vm1116_vm3 = vcmp.gt.s32.totalorder %v1115_v51, 0 }
 0x114   :  { %v453_v39 = vsub.s32 4294967266, %v448_v32  ;;  %v4095_v44 = vmin.u32 %v1275_v33, %v4916_v17  ;;  %v4929_v34 = vmul.u32.u64.low %v4905_v0, %v320_v43  ;;  %v4930_v49 = vmul.u32.u64.high %v4905_v0, %v320_v43, %v4929_v34 }
 0x115   :  { %v4933_v45 = vmul.u32.u64.low %v4905_v0, %v316_v30  ;;  %v4934_v52 = vmul.u32.u64.high %v4905_v0, %v316_v30, %v4933_v45  ;;  %v1112_v54 = vand.u32 8388607, %v1105_v40  ;;  %v1117_v60 = vsel %vm1116_vm3, %v1115_v51, 0 }
 0x116   :  { %v1277_v58 = vclz %v4095_v44  ;;  %v454_v62 = vadd.s32 127, %v453_v39  ;;  %v312_v1 = vsel %vm306_vm15, %v309_v41, %v311_v42  ;;  %v1119_v56 = vand.u32 31, %v1117_v60 }
 0x117   :  { %v449_v48 = vsub.s32 32, %v448_v32  ;;  %vm330_vm4 = vc.u32 %v4930_v49, %v4933_v45  ;;  %v585_v4 = vand.u32 2147483647, %v4892_v36  ;;  %v433_v5 = vadd.s32 %v4844_v38, %v4841_v37 }
 0x118   :  { %v4096_v2 = vadd.s32 4294967294, %v1277_v58  ;;  %v331_v7 = vadd.s32 1, %v4934_v52  ;;  %v1113_v8 = vor.u32 8388608, %v1112_v54  ;;  %v1120_v9 = vsub.s32 32, %v1119_v56 }
 0x119   :  { %v1265_v10 = vadd.s32 %v4870_v15, %v4876_v19  ;;  %v328_v46 = vmul.u32 %v4905_v0, %v312_v1  ;;  %v588_v11 = vand.u32 2139095040, %v4892_v36  ;;  %v450_v12 = vshll.u32 %v4894_v55, %v448_v32 }
 0x11a   :  { %vm4097_vm5 = vcmp.lt.s32.totalorder %v4096_v2, 0  ;;  %v455_v13 = vshll.u32 %v454_v62, 23  ;;  %v332_v16 = vsel %vm330_vm4, %v331_v7, %v4934_v52  ;;  %v451_v20 = vshrl.u32 %v433_v5, %v449_v48 }
 0x11b   :  { %v1280_v14 = vsel %vm4097_vm5, 0, %v4096_v2  ;;  %v333_v38 = vadd.s32 %v332_v16, %v328_v46  ;;  %v4952_v23 = vshrl.u32 %v1117_v60, 5  ;;  %v1122_v27 = vshll.u32 %v7879_v53, %v1119_v56 }
 0x11c   :  { %v1285_v37 = vsub.s32 4294967266, %v1280_v14  ;;  %v1123_v15 = vshrl.u32 %v7862_v57, %v1120_v9  ;;  %v1125_v19 = vshll.u32 %v7862_v57, %v1119_v56  ;;  %v1126_v0 = vshrl.u32 %v7858_v59, %v1120_v9 }
 0x11d   :  { %v334_v30 = vadd.s32 536870912, %v333_v38  ;;  %v1128_v55 = vshll.u32 %v7858_v59, %v1119_v56  ;;  %v1129_v31 = vshrl.u32 %v7860_v61, %v1120_v9  ;;  %v456_v32 = vor.u32 4788187, %v455_v13 }
 0x11e   :  { %v1286_v29 = vadd.s32 127, %v1285_v37  ;;  %v1281_v33 = vsub.s32 32, %v1280_v14  ;;  %v1131_v35 = vshll.u32 %v7860_v61, %v1119_v56  ;;  %v4961_v51 = vshll.u32 %v1113_v8, 8 }
 0x11f   :  { %v4963_v41 = vshrl.u32 %v334_v30, 30  ;;  %v1132_v42 = vshrl.u32 %v7902_v63, %v1120_v9  ;;  %v589_v43 = vshrl.u32 %v588_v11, 23  ;;  %v1124_v44 = vor.u32 %v1123_v15, %v1122_v27 }
 0x120   :  { %v1287_v39 = vshll.u32 %v1286_v29, 23  ;;  %v1127_v34 = vor.u32 %v1126_v0, %v1125_v19  ;;  %v1134_v52 = vshll.u32 %v7902_v63, %v1119_v56  ;;  %v1135_v54 = vshrl.u32 %v7866_v6, %v1120_v9 }
 0x121   :  { %v452_v58 = vor.u32 %v451_v20, %v450_v12  ;;  %v336_v60 = vshll.u32 %v4963_v41, 30  ;;  %v1130_v62 = vor.u32 %v1129_v31, %v1128_v55  ;;  %vm1137_vm6 = vcmp.lt.s32.totalorder %v4952_v23, 1 }
 0x122   :  { %v457_v1 = vand.u32 2147483647, %v456_v32  ;;  %v1283_v48 = vshrl.u32 %v1265_v10, %v1281_v33  ;;  %v1133_v2 = vor.u32 %v1132_v42, %v1131_v35  ;;  %v1136_v5 = vor.u32 %v1135_v54, %v1134_v52 }
 0x123   :  { %v1288_v7 = vor.u32 4788187, %v1287_v39  ;;  %v4970_v8 = vsub.s32 %v333_v38, %v336_v60  ;;  %v1121_v46 = vshrl.u32 %v7879_v53, %v1120_v9  ;;  %vm1139_vm7 = vcmp.lt.s32.totalorder %v4952_v23, 3  ;;  %v4307_v60 = vpop.f32.mrf.mxu1 }
 0x124   :  { %v1282_v56 = vshll.u32 %v4916_v17, %v1280_v14  ;;  %vm1138_vm8 = vcmp.lt.s32.totalorder %v4952_v23, 2  ;;  %vm1140_vm9 = vcmp.lt.s32.totalorder %v4952_v23, 4  ;;  %v1145_v11 = vsel %vm1137_vm6, %v1124_v44, %v1127_v34 }
 0x125   :  { %v339_v10 = vsub.s32 0, %v4970_v8  ;;  %v1142_v12 = vsel %vm1140_vm9, %v1130_v62, 2102212464  ;;  %v1146_v13 = vsel %vm1140_vm9, %v1133_v2, 920167782  ;;  %v4070_v16 = vadd.s32 4294967169, %v589_v43 }
 0x126   :  { %v1284_v20 = vor.u32 %v1283_v48, %v1282_v56  ;;  %v1147_v9 = vsel %vm1139_vm7, %v1130_v62, %v1146_v13  ;;  %v1149_v37 = vsel %vm1137_vm6, %v1127_v34, %v1130_v62  ;;  %v1150_v17 = vsel %vm1140_vm9, %v1136_v5, 1326507024 }
 0x127   :  { %v1289_v14 = vand.u32 2147483647, %v1288_v7  ;;  %v4059_v38 = vmin.u32 %v339_v10, %v4970_v8  ;;  %v1141_v27 = vsel %vm1137_vm6, %v1121_v46, %v1124_v44  ;;  %v1148_v15 = vsel %vm1138_vm8, %v1145_v11, %v1147_v9 }
 0x128   :  { %v1143_v19 = vsel %vm1139_vm7, %v1127_v34, %v1142_v12  ;;  %v1151_v0 = vsel %vm1139_vm7, %v1133_v2, %v1150_v17  ;;  %v4994_v29 = vmul.u32.u64.low %v4961_v51, %v1148_v15  ;;  %v4995_v30 = vmul.u32.u64.high %v4961_v51, %v1148_v15, %v4994_v29 }
 0x129   :  { %v459_v55 = vcvt.s32.f32 %v452_v58  ;;  %v341_v31 = vclz %v4059_v38  ;;  %v1152_v32 = vsel %vm1138_vm8, %v1149_v37, %v1151_v0  ;;  %v592_v33 = vand.u32 8388607, %v585_v4 }
 0x12a   :  { %v1291_v35 = vcvt.s32.f32 %v1284_v20  ;;  %v5003_v39 = vmul.u32.u64.low %v4961_v51, %v1152_v32  ;;  %v5004_v42 = vmul.u32.u64.high %v4961_v51, %v1152_v32, %v5003_v39  ;;  %v595_v43 = vadd.s32 1, %v4070_v16 }
 0x12b   :  { %v4060_v44 = vadd.s32 4294967294, %v341_v31  ;;  %v1144_v34 = vsel %vm1138_vm8, %v1141_v27, %v1143_v19  ;;  %v5008_v52 = vmul.f32 %v459_v55, %v457_v1  ;;  %v1163_v58 = vadd.s32 1, %v4995_v30 }
 0x12c   :  { %v5010_v54 = vmul.f32 %v1291_v35, %v1289_v14  ;;  %vm596_vm10 = vcmp.gt.s32.totalorder %v595_v43, 0  ;;  %v329_v62 = vadd.s32 %v4933_v45, %v4930_v49  ;;  %v593_v48 = vor.u32 8388608, %v592_v33 }
 0x12d   :  { %vm4061_vm11 = vcmp.lt.s32.totalorder %v4060_v44, 0  ;;  %v597_v2 = vsel %vm596_vm10, %v595_v43, 0  ;;  %v1160_v7 = vmul.u32 %v4961_v51, %v1144_v34  ;;  %vm1162_vm12 = vc.u32 %v5004_v42, %v4994_v29 }
 0x12e   :  { %v344_v5 = vsel %vm4061_vm11, 0, %v4060_v44  ;;  %v5018_v23 = vshrl.u32 %v597_v2, 5  ;;  %v1164_v56 = vsel %vm1162_vm12, %v1163_v58, %v4995_v30  ;;  %v5022_v11 = vadd.f32 %v4307_v60, %v4786_v18 }
 0x12f   :  { %v345_v1 = vsub.s32 32, %v344_v5  ;;  %v349_v46 = vsub.s32 4294967266, %v344_v5  ;;  %v461_v49 = vxor.u32 2147483648, %v5008_v52  ;;  %v1293_v45 = vxor.u32 2147483648, %v5010_v54 }
 0x130   :  { %8009 = vst [vmem:[#allocation11_spill] sm:$0xff] %v5022_v11  ;;  %v1165_v10 = vadd.s32 %v1164_v56, %v1160_v7  ;;  %v599_v12 = vand.u32 31, %v597_v2  ;;  %v346_v51 = vshll.u32 %v4970_v8, %v344_v5  ;;  %v5027_v16 = vshll.u32 %v593_v48, 8 }
 0x131   :  { %v350_v13 = vadd.s32 127, %v349_v46  ;;  %v7857_v20 = vand.u32 2147483647, %v5022_v11  ;;  %vm617_vm13 = vcmp.lt.s32.totalorder %v5018_v23, 1  ;;  %vm618_vm14 = vcmp.lt.s32.totalorder %v5018_v23, 2 }
 0x132   :  { %v1166_v9 = vadd.s32 536870912, %v1165_v10  ;;  %v600_v37 = vsub.s32 32, %v599_v12  ;;  %v347_v17 = vshrl.u32 %v329_v62, %v345_v1  ;;  %v602_v38 = vshll.u32 %v7879_v53, %v599_v12 }
 0x133   :  { %v351_v14 = vshll.u32 %v350_v13, 23  ;;  %vm619_vm15 = vcmp.lt.s32.totalorder %v5018_v23, 3  ;;  %vm379_vm0 = vcmp.lt.s32.totalorder %v4789_v21, 0  ;;  %v605_v15 = vshll.u32 %v7862_v57, %v599_v12 }
 0x134   :  { %v5035_v8 = vshrl.u32 %v1166_v9, 30  ;;  %v603_v27 = vshrl.u32 %v7862_v57, %v600_v37  ;;  %v606_v19 = vshrl.u32 %v7858_v59, %v600_v37  ;;  %vm7889_vm1 = vcmp.lt.s32.totalorder %v4792_v22, 0 }
 0x135   :  { %v608_v0 = vshll.u32 %v7858_v59, %v599_v12  ;;  %v609_v30 = vshrl.u32 %v7860_v61, %v600_v37  ;;  %v611_v55 = vshll.u32 %v7860_v61, %v599_v12  ;;  %v612_v31 = vshrl.u32 %v7902_v63, %v600_v37 }
 0x136   :  { %8010 = vst [vmem:[#allocation12_spill] sm:$0xff] %v5035_v8  ;;  %v352_v32 = vor.u32 4788187, %v351_v14  ;;  %v1168_v33 = vshll.u32 %v5035_v8, 30  ;;  %v604_v35 = vor.u32 %v603_v27, %v602_v38  ;;  %v607_v39 = vor.u32 %v606_v19, %v605_v15  ;;  %v204_v15 = vpop.f32.mrf.mxu0 }
 0x137   :  { %v610_v43 = vor.u32 %v609_v30, %v608_v0  ;;  %v613_v44 = vor.u32 %v612_v31, %v611_v55  ;;  %v614_v34 = vshll.u32 %v7902_v63, %v599_v12  ;;  %v615_v58 = vshrl.u32 %v7866_v6, %v600_v37 }
 0x138   :  { %vm5050_vm2 = vcmp.le.f32.partialorder %v377_v24, 0.7853982  ;;  %v348_v62 = vor.u32 %v347_v17, %v346_v51  ;;  %v5054_v48 = vsub.s32 %v1165_v10, %v1168_v33  ;;  %vm620_vm3 = vcmp.lt.s32.totalorder %v5018_v23, 4 }
 0x139   :  { %v625_v2 = vsel %vm617_vm13, %v604_v35, %v607_v39  ;;  %v601_v5 = vshrl.u32 %v7879_v53, %v600_v37  ;;  %v616_v7 = vor.u32 %v615_v58, %v614_v34  ;;  %v622_v1 = vsel %vm620_vm3, %v610_v43, 2102212464 }
 0x13a   :  { %v626_v46 = vsel %vm620_vm3, %v613_v44, 920167782  ;;  %v353_v56 = vand.u32 2147483647, %v352_v32  ;;  %v1171_v12 = vsub.s32 0, %v5054_v48  ;;  %v629_v10 = vsel %vm617_vm13, %v607_v39, %v610_v43 }
 0x13b   :  { %v627_v24 = vsel %vm619_vm15, %v610_v43, %v626_v46  ;;  %v621_v51 = vsel %vm617_vm13, %v601_v5, %v604_v35  ;;  %v623_v13 = vsel %vm619_vm15, %v607_v39, %v622_v1  ;;  %v630_v37 = vsel %vm620_vm3, %v616_v7, 1326507024 }
 0x13c   :  { %v628_v9 = vsel %vm618_vm14, %v625_v2, %v627_v24  ;;  %v4091_v17 = vmin.u32 %v1171_v12, %v5054_v48  ;;  %v631_v14 = vsel %vm619_vm15, %v613_v44, %v630_v37  ;;  %v462_v19 = vsel %vm379_vm0, %v461_v49, %v5008_v52 }
 0x13d   :  { %v5075_v38 = vmul.u32.u64.low %v5027_v16, %v628_v9  ;;  %v5076_v27 = vmul.u32.u64.high %v5027_v16, %v628_v9, %v5075_v38  ;;  %v355_v0 = vcvt.s32.f32 %v348_v62  ;;  %v632_v30 = vsel %vm618_vm14, %v629_v10, %v631_v14 }
 0x13e   :  { %v1420_v55 = vand.u32 2139095040, %v5022_v11  ;;  %v1294_v31 = vsel %vm7889_vm1, %v1293_v45, %v5010_v54  ;;  %v1173_v32 = vclz %v4091_v17  ;;  %v624_v43 = vsel %vm618_vm14, %v621_v51, %v623_v13 }
 0x13f   :  { %v5089_v33 = vmul.u32.u64.low %v5027_v16, %v632_v30  ;;  %v5090_v35 = vmul.u32.u64.high %v5027_v16, %v632_v30, %v5089_v33  ;;  %v356_v39 = vmul.f32 %v355_v0, %v353_v56  ;;  %v5095_v49 = vadd.f32 %v4786_v18, %v204_v15 }
 0x140   :  { %v1421_v52 = vshrl.u32 %v1420_v55, 23  ;;  %vm5099_vm4 = vcmp.le.f32.partialorder %v1209_v26, 0.7853982  ;;  %v8013_v44 = vmov 0  ;;  %v4092_v54 = vadd.s32 4294967294, %v1173_v32 }
 0x141   :  { %v8014_v44 = vsel %vm5099_vm4, 4294967295, %v8013_v44  ;;  %v643_v45 = vadd.s32 1, %v5076_v27  ;;  %v1424_v34 = vand.u32 8388607, %v7857_v20  ;;  %v463_v58 = vsub.s32 4, %v4881_v25 }
 0x142   :  { %8015 = vst [vmem:[#allocation13_spill] sm:$0xff] %v8014_v44  ;;  %v465_v23 = vsel %vm5050_vm2, %v4789_v21, %v462_v19  ;;  %vm7926_vm5 = vcmp.lt.s32.totalorder %v4799_v28, 0  ;;  %v4102_v62 = vadd.s32 4294967169, %v1421_v52  ;;  %v5114_v26 = vsel %vm5099_vm4, %v4792_v22, %v1294_v31 }
 0x143   :  { %vm4093_vm6 = vcmp.lt.s32.totalorder %v4092_v54, 0  ;;  %v640_v2 = vmul.u32 %v5027_v16, %v624_v43  ;;  %vm642_vm7 = vc.u32 %v5090_v35, %v5075_v38  ;;  %v357_v5 = vxor.u32 2147483648, %v356_v39 }
 0x144   :  { %v644_v7 = vsel %vm642_vm7, %v643_v45, %v5076_v27  ;;  %v1427_v1 = vadd.s32 1, %v4102_v62  ;;  %v7856_v46 = vand.u32 2147483647, %v5095_v49  ;;  %4536 = vcosq.f32 %v465_v23 }
 0x145   :  { %v5121_v56 = vsel %vm4093_vm6, 0, %v4092_v54  ;;  %v645_v12 = vadd.s32 %v644_v7, %v640_v2  ;;  %v1425_v24 = vor.u32 8388608, %v1424_v34  ;;  %v5126_v10 = vsel %vm379_vm0, %v463_v58, %v4881_v25 }
 0x146   :  { %4538 = vsinq.f32 %v465_v23  ;;  %vm1428_vm8 = vcmp.gt.s32.totalorder %v1427_v1, 0  ;;  %v484_v16 = vand.u32 2139095040, %v5095_v49  ;;  %v1161_v51 = vadd.s32 %v4994_v29, %v5004_v42 }
 0x147   :  { %4540 = vcosq.f32 %v5114_v26  ;;  %v646_v13 = vadd.s32 536870912, %v645_v12  ;;  %v1429_v9 = vsel %vm1428_vm8, %v1427_v1, 0  ;;  %v5134_v37 = vsel %vm7926_vm5, %v357_v5, %v356_v39 }
 0x148   :  { %v1181_v17 = vsub.s32 4294967266, %v5121_v56  ;;  %v1431_v14 = vand.u32 31, %v1429_v9  ;;  %v5139_v25 = vand.u32 8388607, %v7856_v46  ;;  %v1177_v27 = vsub.s32 32, %v5121_v56 }
 0x149   :  { %v1178_v15 = vshll.u32 %v5054_v48, %v5121_v56  ;;  %v5144_v19 = vshrl.u32 %v646_v13, 30  ;;  %v5146_v29 = vshll.u32 %v1425_v24, 8  ;;  %v485_v55 = vshrl.u32 %v484_v16, 23 }
 0x14a   :  { %v1432_v42 = vsub.s32 32, %v1431_v14  ;;  %v1434_v0 = vshll.u32 %v7879_v53, %v1431_v14  ;;  %v1437_v30 = vshll.u32 %v7862_v57, %v1431_v14  ;;  %v1430_v32 = vshrl.u32 %v1429_v9, 5 }
 0x14b   :  { %v648_v31 = vshll.u32 %v5144_v19, 30  ;;  %v1440_v33 = vshll.u32 %v7858_v59, %v1431_v14  ;;  %v1443_v39 = vshll.u32 %v7860_v61, %v1431_v14  ;;  %v1182_v43 = vadd.s32 127, %v1181_v17  ;;  %v244_v17 = vpop.f32.mrf.mxu1 }
 0x14c   :  { %v1435_v48 = vshrl.u32 %v7862_v57, %v1432_v42  ;;  %v1438_v52 = vshrl.u32 %v7858_v59, %v1432_v42  ;;  %v1441_v54 = vshrl.u32 %v7860_v61, %v1432_v42  ;;  %v1179_v45 = vshrl.u32 %v1161_v51, %v1177_v27 }
 0x14d   :  { %v5156_v34 = vsub.s32 %v645_v12, %v648_v31  ;;  %v1444_v58 = vshrl.u32 %v7902_v63, %v1432_v42  ;;  %v1446_v23 = vshll.u32 %v7902_v63, %v1431_v14  ;;  %v1433_v62 = vshrl.u32 %v7879_v53, %v1432_v42 }
 0x14e   :  { %v1436_v2 = vor.u32 %v1435_v48, %v1434_v0  ;;  %v1439_v5 = vor.u32 %v1438_v52, %v1437_v30  ;;  %v1447_v7 = vshrl.u32 %v7866_v6, %v1432_v42  ;;  %v1442_v56 = vor.u32 %v1441_v54, %v1440_v33 }
 0x14f   :  { %v651_v1 = vsub.s32 0, %v5156_v34  ;;  %v1445_v24 = vor.u32 %v1444_v58, %v1443_v39  ;;  %vm1449_vm9 = vcmp.lt.s32.totalorder %v1430_v32, 1  ;;  %v1183_v16 = vshll.u32 %v1182_v43, 23 }
 0x150   :  { %v1448_v13 = vor.u32 %v1447_v7, %v1446_v23  ;;  %vm1451_vm10 = vcmp.lt.s32.totalorder %v1430_v32, 3  ;;  %vm1452_vm11 = vcmp.lt.s32.totalorder %v1430_v32, 4  ;;  %vm1450_vm12 = vcmp.lt.s32.totalorder %v1430_v32, 2 }
 0x151   :  { %v4071_v12 = vmin.u32 %v651_v1, %v5156_v34  ;;  %v1454_v51 = vsel %vm1452_vm11, %v1442_v56, 2102212464  ;;  %v4066_v9 = vadd.s32 4294967169, %v485_v55  ;;  %v5165_v14 = vpop.eup %4536  ;;  %v1453_v27 = vsel %vm1449_vm9, %v1433_v62, %v1436_v2 }
 0x152   :  { %v1457_v42 = vsel %vm1449_vm9, %v1436_v2, %v1439_v5  ;;  %v1458_v0 = vsel %vm1452_vm11, %v1445_v24, 920167782  ;;  %v489_v30 = vor.u32 8388608, %v5139_v25  ;;  %v1455_v39 = vsel %vm1451_vm10, %v1439_v5, %v1454_v51 }
 0x153   :  { %v5171_v31 = vpop.eup %4538  ;;  %v653_v33 = vclz %v4071_v12  ;;  %v1459_v43 = vsel %vm1451_vm10, %v1442_v56, %v1458_v0  ;;  %v1461_v55 = vsel %vm1449_vm9, %v1439_v5, %v1442_v56  ;;  %v1184_v52 = vor.u32 4788187, %v1183_v16 }
 0x154   :  { %v5176_v48 = vpop.eup %4540  ;;  %v1460_v54 = vsel %vm1450_vm12, %v1457_v42, %v1459_v43  ;;  %v1462_v58 = vsel %vm1452_vm11, %v1448_v13, 1326507024  ;;  %v5181_v23 = vadd.f32 %v4786_v18, %v244_v17  ;;  %v1180_v25 = vor.u32 %v1179_v45, %v1178_v15 }
 0x155   :  { %8016 = vst [vmem:[#allocation14_spill] sm:$0xff] %v5176_v48  ;;  %v4072_v62 = vadd.s32 4294967294, %v653_v33  ;;  %v1463_v2 = vsel %vm1451_vm10, %v1445_v24, %v1462_v58  ;;  %v491_v7 = vadd.s32 1, %v4066_v9  ;;  %v1456_v1 = vsel %vm1450_vm12, %v1453_v27, %v1455_v39 }
 0x156   :  { %8017 = vst [vmem:[#allocation15_spill] sm:$0xff] %v5181_v23  ;;  %v1464_v12 = vsel %vm1450_vm12, %v1461_v55, %v1463_v2  ;;  %v5187_v5 = vmul.u32.u64.low %v5146_v29, %v1460_v54  ;;  %v5188_v56 = vmul.u32.u64.high %v5146_v29, %v1460_v54, %v5187_v5  ;;  %v1185_v18 = vand.u32 2147483647, %v1184_v52 }
 0x157   :  { %vm4073_vm13 = vcmp.lt.s32.totalorder %v4072_v62, 0  ;;  %v5192_v16 = vmul.u32.u64.low %v5146_v29, %v1464_v12  ;;  %v5193_v13 = vmul.u32.u64.high %v5146_v29, %v1464_v12, %v5192_v16  ;;  %vm492_vm14 = vcmp.gt.s32.totalorder %v491_v7, 0 }
 0x158   :  { %v641_v15 = vadd.s32 %v5075_v38, %v5090_v35  ;;  %v656_v45 = vsel %vm4073_vm13, 0, %v4072_v62  ;;  %v493_v24 = vsel %vm492_vm14, %v491_v7, 0  ;;  %v5197_v9 = vshll.u32 %v489_v30, 8 }
 0x159   :  { %v657_v51 = vsub.s32 32, %v656_v45  ;;  %v661_v32 = vsub.s32 4294967266, %v656_v45  ;;  %v7855_v17 = vand.u32 2147483647, %v5181_v23  ;;  %v1187_v27 = vcvt.s32.f32 %v1180_v25 }
 0x15a   :  { %v1472_v42 = vmul.u32 %v5146_v29, %v1456_v1  ;;  %v1475_v0 = vadd.s32 1, %v5188_v56  ;;  %v495_v33 = vand.u32 31, %v493_v24  ;;  %v658_v39 = vshll.u32 %v5156_v34, %v656_v45 }
 0x15b   :  { %v659_v43 = vshrl.u32 %v641_v15, %v657_v51  ;;  %v662_v55 = vadd.s32 127, %v661_v32  ;;  %vm1474_vm15 = vc.u32 %v5193_v13, %v5187_v5  ;;  %v1188_v38 = vmul.f32 %v1187_v27, %v1185_v18 }
 0x15c   :  { %v1476_v35 = vsel %vm1474_vm15, %v1475_v0, %v5188_v56  ;;  %v496_v30 = vsub.s32 32, %v495_v33  ;;  %v498_v52 = vshll.u32 %v7879_v53, %v495_v33  ;;  %v501_v29 = vshll.u32 %v7862_v57, %v495_v33 }
 0x15d   :  { %v660_v54 = vor.u32 %v659_v43, %v658_v39  ;;  %v663_v58 = vshll.u32 %v662_v55, 23  ;;  %v1477_v25 = vadd.s32 %v1476_v35, %v1472_v42  ;;  %v504_v2 = vshll.u32 %v7858_v59, %v495_v33 }
 0x15e   :  { %v499_v62 = vshrl.u32 %v7862_v57, %v496_v30  ;;  %v502_v34 = vshrl.u32 %v7858_v59, %v496_v30  ;;  %v505_v7 = vshrl.u32 %v7860_v61, %v496_v30  ;;  %vm7901_vm0 = vcmp.lt.s32.totalorder %v4807_v47, 0 }
 0x15f   :  { %v664_v1 = vor.u32 4788187, %v663_v58  ;;  %v1478_v12 = vadd.s32 536870912, %v1477_v25  ;;  %v494_v56 = vshrl.u32 %v493_v24, 5  ;;  %v507_v16 = vshll.u32 %v7860_v61, %v495_v33 }
 0x160   :  { %vm5216_vm3 = vcmp.le.f32.partialorder %v273_v50, 0.7853982  ;;  %v500_v15 = vor.u32 %v499_v62, %v498_v52  ;;  %v503_v45 = vor.u32 %v502_v34, %v501_v29  ;;  %v506_v51 = vor.u32 %v505_v7, %v504_v2 }
 0x161   :  { %v508_v32 = vshrl.u32 %v7902_v63, %v496_v30  ;;  %v1189_v27 = vxor.u32 2147483648, %v1188_v38  ;;  %v5221_v42 = vshrl.u32 %v1478_v12, 30  ;;  %v510_v0 = vshll.u32 %v7902_v63, %v495_v33 }
 0x162   :  { %v511_v24 = vshrl.u32 %v7866_v6, %v496_v30  ;;  %vm5227_vm6 = vcmp.le.f32.partialorder %v1105_v40, 0.7853982  ;;  %v8021_v39 = vmov 0  ;;  %v665_v50 = vand.u32 2147483647, %v664_v1 }
 0x163   :  { %8020 = vst [vmem:[#allocation16_spill] sm:$0xff] %v5221_v42  ;;  %v8022_v39 = vsel %vm5227_vm6, 4294967295, %v8021_v39  ;;  %v667_v43 = vcvt.s32.f32 %v660_v54  ;;  %v509_v55 = vor.u32 %v508_v32, %v507_v16  ;;  %v1316_v35 = vand.u32 2139095040, %v5181_v23 }
 0x164   :  { %8023 = vst [vmem:[#allocation17_spill] sm:$0xff] %v8022_v39  ;;  %v1480_v52 = vshll.u32 %v5221_v42, 30  ;;  %v512_v58 = vor.u32 %v511_v24, %v510_v0  ;;  %vm513_vm7 = vcmp.lt.s32.totalorder %v494_v56, 1  ;;  %vm516_vm8 = vcmp.lt.s32.totalorder %v494_v56, 4 }
 0x165   :  { %vm515_vm9 = vcmp.lt.s32.totalorder %v494_v56, 3  ;;  %v518_v33 = vsel %vm516_vm8, %v506_v51, 2102212464  ;;  %v521_v29 = vsel %vm513_vm7, %v500_v15, %v503_v45  ;;  %v522_v62 = vsel %vm516_vm8, %v509_v55, 920167782 }
 0x166   :  { %v5234_v34 = vsub.s32 %v1477_v25, %v1480_v52  ;;  %v497_v40 = vshrl.u32 %v7879_v53, %v496_v30  ;;  %vm514_vm10 = vcmp.lt.s32.totalorder %v494_v56, 2  ;;  %v523_v54 = vsel %vm515_vm9, %v506_v51, %v522_v62  ;;  %v4298_v30 = vpop.f32.mrf.mxu0 }
 0x167   :  { %vm7920_vm11 = vcmp.lt.s32.totalorder %v4892_v36, 0  ;;  %v668_v2 = vmul.f32 %v667_v43, %v665_v50  ;;  %v524_v7 = vsel %vm514_vm10, %v521_v29, %v523_v54  ;;  %v525_v1 = vsel %vm513_vm7, %v503_v45, %v506_v51 }
 0x168   :  { %v526_v12 = vsel %vm516_vm8, %v512_v58, 1326507024  ;;  %v1483_v16 = vsub.s32 0, %v5234_v34  ;;  %v517_v32 = vsel %vm513_vm7, %v497_v40, %v500_v15  ;;  %v519_v25 = vsel %vm515_vm9, %v503_v45, %v518_v33 }
 0x169   :  { %v527_v0 = vsel %vm515_vm9, %v509_v55, %v526_v12  ;;  %v1190_v24 = vsel %vm7901_vm0, %v1189_v27, %v1188_v38  ;;  %v5249_v50 = vmul.u32.u64.low %v5197_v9, %v524_v7  ;;  %v5250_v43 = vmul.u32.u64.high %v5197_v9, %v524_v7, %v5249_v50 }
 0x16a   :  { %v528_v52 = vsel %vm514_vm10, %v525_v1, %v527_v0  ;;  %v361_v15 = vsel %vm5216_vm3, %v4799_v28, %v5134_v37  ;;  %vm5259_vm12 = vcmp.le.f32.partialorder %v585_v4, 0.7853982  ;;  %v8024_v45 = vmov 0  ;;  %v5273_v37 = vld [vmem:[%s7848_s2] ss:$0 sm:$0xff] }
 0x16b   :  { %v8025_v45 = vsel %vm5259_vm12, 4294967295, %v8024_v45  ;;  %v4103_v38 = vmin.u32 %v1483_v16, %v5234_v34  ;;  %v5265_v51 = vmul.u32.u64.low %v5197_v9, %v528_v52  ;;  %v5266_v27 = vmul.u32.u64.high %v5197_v9, %v528_v52, %v5265_v51 }
 0x16c   :  { %8026 = vst [vmem:[#allocation18_spill] sm:$0xff] %v8025_v45  ;;  %4542 = vsinq.f32 %v5114_v26  ;;  %v520_v55 = vsel %vm514_vm10, %v517_v32, %v519_v25  ;;  %v1317_v58 = vshrl.u32 %v1316_v35, 23  ;;  %v5276_v4 = vadd.f32 %v5273_v37, %v4298_v30  ;;  %v4310_v30 = vpop.f32.mrf.mxu1 }
 0x16d   :  { %v1193_v33 = vsel %vm5227_vm6, %v4807_v47, %v1190_v24  ;;  %v669_v29 = vxor.u32 2147483648, %v668_v2  ;;  %v1485_v62 = vclz %v4103_v38  ;;  %v1320_v26 = vand.u32 8388607, %v7855_v17 }
 0x16e   :  { %8027 = vst [vmem:[#allocation19_spill] sm:$0xff] %v5276_v4  ;;  %4544 = vcosq.f32 %v361_v15  ;;  %v539_v35 = vadd.s32 1, %v5250_v43  ;;  %v4098_v40 = vadd.s32 4294967169, %v1317_v58  ;;  %v536_v7 = vmul.u32 %v5197_v9, %v520_v55 }
 0x16f   :  { %4546 = vsinq.f32 %v361_v15  ;;  %v4104_v54 = vadd.s32 4294967294, %v1485_v62  ;;  %vm538_vm13 = vc.u32 %v5266_v27, %v5249_v50  ;;  %v796_v16 = vand.u32 2139095040, %v5276_v4  ;;  %v214_v15 = vpop.f32.mrf.mxu0 }
 0x170   :  { %4548 = vcosq.f32 %v1193_v33  ;;  %v540_v1 = vsel %vm538_vm13, %v539_v35, %v5250_v43  ;;  %v1323_v12 = vadd.s32 1, %v4098_v40  ;;  %v670_v32 = vsel %vm7920_vm11, %v669_v29, %v668_v2 }
 0x171   :  { %vm4105_vm14 = vcmp.lt.s32.totalorder %v4104_v54, 0  ;;  %v541_v25 = vadd.s32 %v540_v1, %v536_v7  ;;  %v1321_v0 = vor.u32 8388608, %v1320_v26  ;;  %v7854_v9 = vand.u32 2147483647, %v5276_v4 }
 0x172   :  { %v1488_v24 = vsel %vm4105_vm14, 0, %v4104_v54  ;;  %vm1324_vm15 = vcmp.gt.s32.totalorder %v1323_v12, 0  ;;  %v797_v52 = vshrl.u32 %v796_v16, 23  ;;  %v1473_v38 = vadd.s32 %v5187_v5, %v5193_v13 }
 0x173   :  { %v1489_v43 = vsub.s32 32, %v1488_v24  ;;  %v1493_v51 = vsub.s32 4294967266, %v1488_v24  ;;  %v542_v55 = vadd.s32 536870912, %v541_v25  ;;  %4550 = vsinq.f32 %v1193_v33 }
 0x174   :  { %v5300_v2 = vsel %vm5259_vm12, %v4892_v36, %v670_v32  ;;  %v1325_v58 = vsel %vm1324_vm15, %v1323_v12, 0  ;;  %v5303_v29 = vadd.f32 %v5273_v37, %v4310_v30  ;;  %v5308_v40 = vadd.f32 %v5273_v37, %v214_v15 }
 0x175   :  { %v1491_v62 = vshrl.u32 %v1473_v38, %v1489_v43  ;;  %v1494_v26 = vadd.s32 127, %v1493_v51  ;;  %v5305_v35 = vshrl.u32 %v542_v55, 30  ;;  %v1327_v5 = vand.u32 31, %v1325_v58 }
 0x176   :  { %8028 = vst [vmem:[#allocation20_spill] sm:$0xff] %v5303_v29  ;;  %v5310_v13 = vshll.u32 %v1321_v0, 8  ;;  %v4078_v33 = vadd.s32 4294967169, %v797_v52  ;;  %v5314_v54 = vand.u32 8388607, %v7854_v9  ;;  %v1490_v7 = vshll.u32 %v5234_v34, %v1488_v24 }
 0x177   :  { %v1495_v1 = vshll.u32 %v1494_v26, 23  ;;  %v544_v12 = vshll.u32 %v5305_v35, 30  ;;  %v1326_v16 = vshrl.u32 %v1325_v58, 5  ;;  %v1328_v32 = vsub.s32 32, %v1327_v5 }
 0x178   :  { %v1330_v30 = vshll.u32 %v7879_v53, %v1327_v5  ;;  %v1333_v15 = vshll.u32 %v7862_v57, %v1327_v5  ;;  %v1336_v38 = vshll.u32 %v7858_v59, %v1327_v5  ;;  %v1492_v52 = vor.u32 %v1491_v62, %v1490_v7 }
 0x179   :  { %v5321_v0 = vpop.eup %4542  ;;  %v1496_v43 = vor.u32 4788187, %v1495_v1  ;;  %v5323_v51 = vsub.s32 %v541_v25, %v544_v12  ;;  %v1339_v55 = vshll.u32 %v7860_v61, %v1327_v5  ;;  %v1331_v34 = vshrl.u32 %v7862_v57, %v1328_v32 }
 0x17a   :  { %8029 = vst [vmem:[#allocation21_spill] sm:$0xff] %v5321_v0  ;;  %v1334_v24 = vshrl.u32 %v7858_v59, %v1328_v32  ;;  %v1337_v58 = vshrl.u32 %v7860_v61, %v1328_v32  ;;  %v803_v26 = vadd.s32 1, %v4078_v33  ;;  %v1340_v46 = vshrl.u32 %v7902_v63, %v1328_v32 }
 0x17b   :  { %v5329_v56 = vpop.eup %4544  ;;  %v1497_v9 = vand.u32 2147483647, %v1496_v43  ;;  %v547_v17 = vsub.s32 0, %v5323_v51  ;;  %v1342_v62 = vshll.u32 %v7902_v63, %v1327_v5  ;;  %v1332_v7 = vor.u32 %v1331_v34, %v1330_v30 }
 0x17c   :  { %v5334_v25 = vpop.eup %4546  ;;  %v1335_v1 = vor.u32 %v1334_v24, %v1333_v15  ;;  %v1338_v12 = vor.u32 %v1337_v58, %v1336_v38  ;;  %v1343_v20 = vshrl.u32 %v7866_v6, %v1328_v32  ;;  %v1499_v61 = vcvt.s32.f32 %v1492_v52 }
 0x17d   :  { %v5337_v59 = vpop.eup %4548  ;;  %v4067_v33 = vmin.u32 %v547_v17, %v5323_v51  ;;  %v1341_v57 = vor.u32 %v1340_v46, %v1339_v55  ;;  %vm1345_vm7 = vcmp.lt.s32.totalorder %v1326_v16, 1  ;;  %v1329_v43 = vshrl.u32 %v7879_v53, %v1328_v32 }
 0x17e   :  { %8030 = vst [vmem:[#allocation22_spill] sm:$0xff] %v5337_v59  ;;  %v1344_v42 = vor.u32 %v1343_v20, %v1342_v62  ;;  %vm1347_vm8 = vcmp.lt.s32.totalorder %v1326_v16, 3  ;;  %vm1348_vm9 = vcmp.lt.s32.totalorder %v1326_v16, 4  ;;  %vm7888_vm10 = vcmp.lt.s32.totalorder %v5022_v11, 0 }
 0x17f   :  { %v1500_v5 = vmul.f32 %v1499_v61, %v1497_v9  ;;  %v549_v30 = vclz %v4067_v33  ;;  %vm1346_vm13 = vcmp.lt.s32.totalorder %v1326_v16, 2  ;;  %v1350_v15 = vsel %vm1348_vm9, %v1338_v12, 2102212464 }
 0x180   :  { %v1353_v38 = vsel %vm1345_vm7, %v1332_v7, %v1335_v1  ;;  %v1354_v34 = vsel %vm1348_vm9, %v1341_v57, 920167782  ;;  %v1357_v52 = vsel %vm1345_vm7, %v1335_v1, %v1338_v12  ;;  %v1358_v24 = vsel %vm1348_vm9, %v1344_v42, 1326507024  ;;  %v5344_v17 = vpop.eup %4550 }
 0x181   :  { %8031 = vst [vmem:[#allocation23_spill] sm:$0xff] %v5344_v17  ;;  %v537_v46 = vadd.s32 %v5249_v50, %v5266_v27  ;;  %v4068_v20 = vadd.s32 4294967294, %v549_v30  ;;  %v1355_v32 = vsel %vm1347_vm8, %v1338_v12, %v1354_v34  ;;  %v1349_v61 = vsel %vm1345_vm7, %v1329_v43, %v1332_v7 }
 0x182   :  { %v1351_v9 = vsel %vm1347_vm8, %v1335_v1, %v1350_v15  ;;  %v1359_v58 = vsel %vm1347_vm8, %v1341_v57, %v1358_v24  ;;  %v801_v62 = vor.u32 8388608, %v5314_v54  ;;  %v1356_v42 = vsel %vm1346_vm13, %v1353_v38, %v1355_v32 }
 0x183   :  { %vm4069_vm14 = vcmp.lt.s32.totalorder %v4068_v20, 0  ;;  %v1360_v33 = vsel %vm1346_vm13, %v1357_v52, %v1359_v58  ;;  %vm804_vm15 = vcmp.gt.s32.totalorder %v803_v26, 0  ;;  %v1501_v50 = vxor.u32 2147483648, %v1500_v5 }
 0x184   :  { %v552_v27 = vsel %vm4069_vm14, 0, %v4068_v20  ;;  %v5357_v12 = vmul.u32.u64.low %v5310_v13, %v1360_v33  ;;  %v5358_v30 = vmul.u32.u64.high %v5310_v13, %v1360_v33, %v5357_v12  ;;  %v1352_v1 = vsel %vm1346_vm13, %v1349_v61, %v1351_v9 }
 0x185   :  { %v553_v34 = vsub.s32 32, %v552_v27  ;;  %v557_v7 = vsub.s32 4294967266, %v552_v27  ;;  %v805_v43 = vsel %vm804_vm15, %v803_v26, 0  ;;  %v5366_v38 = vshll.u32 %v801_v62, 8 }
 0x186   :  { %v5362_v57 = vmul.u32.u64.low %v5310_v13, %v1356_v42  ;;  %v5363_v54 = vmul.u32.u64.high %v5310_v13, %v1356_v42, %v5362_v57  ;;  %v807_v15 = vand.u32 31, %v805_v43  ;;  %v554_v52 = vshll.u32 %v5323_v51, %v552_v27 }
 0x187   :  { %v555_v24 = vshrl.u32 %v537_v46, %v553_v34  ;;  %v558_v20 = vadd.s32 127, %v557_v7  ;;  %v1628_v32 = vand.u32 2139095040, %v5303_v29  ;;  %v1502_v58 = vsel %vm7888_vm10, %v1501_v50, %v1500_v5 }
 0x188   :  { %v1368_v16 = vmul.u32 %v5310_v13, %v1352_v1  ;;  %v806_v26 = vshrl.u32 %v805_v43, 5  ;;  %v808_v61 = vsub.s32 32, %v807_v15  ;;  %vm1370_vm7 = vc.u32 %v5358_v30, %v5362_v57 }
 0x189   :  { %v556_v9 = vor.u32 %v555_v24, %v554_v52  ;;  %v559_v42 = vshll.u32 %v558_v20, 23  ;;  %v810_v62 = vshll.u32 %v7879_v53, %v807_v15  ;;  %v1371_v51 = vadd.s32 1, %v5363_v54 }
 0x18a   :  { %v8032_v46 = vmov 2475754826   ;;  %v8033_v12 = vmov 2131351028   ;;  %v8034_v50 = vmov 2102212464   ;;  %v820_v20 = vshrl.u32 %v7902_v63, %v808_v61 }
 0x18b   :  { %v811_v33 = vshrl.u32 %v8032_v46, %v808_v61  ;;  %v813_v27 = vshll.u32 %v8032_v46, %v807_v15  ;;  %v814_v34 = vshrl.u32 %v8033_v12, %v808_v61  ;;  %v560_v5 = vor.u32 4788187, %v559_v42 }
 0x18c   :  { %v816_v13 = vshll.u32 %v8033_v12, %v807_v15  ;;  %v817_v7 = vshrl.u32 %v8034_v50, %v808_v61  ;;  %v819_v1 = vshll.u32 %v8034_v50, %v807_v15  ;;  %v1372_v43 = vsel %vm1370_vm7, %v1371_v51, %v5363_v54 }
 0x18d   :  { %v812_v52 = vor.u32 %v811_v33, %v810_v62  ;;  %v815_v24 = vor.u32 %v814_v34, %v813_v27  ;;  %v1373_v55 = vadd.s32 %v1372_v43, %v1368_v16  ;;  %v809_v6 = vshrl.u32 %v7879_v53, %v808_v61 }
 0x18e   :  { %v818_v48 = vor.u32 %v817_v7, %v816_v13  ;;  %v1629_v44 = vshrl.u32 %v1628_v32, 23  ;;  %v563_v0 = vcvt.s32.f32 %v556_v9  ;;  %v821_v22 = vor.u32 %v820_v20, %v819_v1 }
 0x18f   :  { %v822_v42 = vshll.u32 %v7902_v63, %v807_v15  ;;  %v8035_v59 = vmov 1326507024   ;;  %v561_v3 = vand.u32 2147483647, %v560_v5  ;;  %v1374_v39 = vadd.s32 536870912, %v1373_v55 }
 0x190   :  { %v823_v17 = vshrl.u32 %v8035_v59, %v808_v61  ;;  %vm825_vm8 = vcmp.lt.s32.totalorder %v806_v26, 1  ;;  %vm828_vm9 = vcmp.lt.s32.totalorder %v806_v26, 4  ;;  %vm826_vm13 = vcmp.lt.s32.totalorder %v806_v26, 2 }
 0x191   :  { %v830_v62 = vsel %vm828_vm9, %v818_v48, 2102212464  ;;  %v833_v51 = vsel %vm825_vm8, %v812_v52, %v815_v24  ;;  %v5388_v33 = vshrl.u32 %v1374_v39, 30  ;;  %vm827_vm14 = vcmp.lt.s32.totalorder %v806_v26, 3 }
 0x192   :  { %v824_v54 = vor.u32 %v823_v17, %v822_v42  ;;  %v829_v16 = vsel %vm825_vm8, %v809_v6, %v812_v52  ;;  %v834_v27 = vsel %vm828_vm9, %v821_v22, 920167782  ;;  %v831_v32 = vsel %vm827_vm14, %v815_v24, %v830_v62 }
 0x193   :  { %8036 = vst [vmem:[#allocation24_spill] sm:$0xff] %v5388_v33  ;;  %v835_v9 = vsel %vm827_vm14, %v818_v48, %v834_v27  ;;  %v837_v34 = vsel %vm825_vm8, %v815_v24, %v818_v48  ;;  %v564_v15 = vmul.f32 %v563_v0, %v561_v3  ;;  %v1376_v61 = vshll.u32 %v5388_v33, 30 }
 0x194   :  { %v838_v13 = vsel %vm828_vm9, %v824_v54, 1326507024  ;;  %v836_v5 = vsel %vm826_vm13, %v833_v51, %v835_v9  ;;  %v8037_v6 = vand.u32 2147483647, %v5303_v29  ;;  %v832_v48 = vsel %vm826_vm13, %v829_v16, %v831_v32  ;;  %v254_v54 = vpop.f32.mrf.mxu1 }
 0x195   :  { %v839_v7 = vsel %vm827_vm14, %v821_v22, %v838_v13  ;;  %v5394_v1 = vmul.u32.u64.low %v5366_v38, %v836_v5  ;;  %v5395_v43 = vmul.u32.u64.high %v5366_v38, %v836_v5, %v5394_v1  ;;  %v5400_v52 = vsub.s32 %v1373_v55, %v1376_v61 }
 0x196   :  { %v840_v17 = vsel %vm826_vm13, %v837_v34, %v839_v7  ;;  %v1632_v39 = vand.u32 8388607, %v8037_v6  ;;  %4552 = vcosq.f32 %v5300_v2  ;;  %v8038_v22 = vand.u32 2147483647, %v5022_v11 }
 0x197   :  { %v5404_v3 = vmul.u32.u64.low %v5366_v38, %v840_v17  ;;  %v5405_v0 = vmul.u32.u64.high %v5366_v38, %v840_v17, %v5404_v3  ;;  %v8039_v24 = vmov 0  ;;  %vm7925_vm7 = vcmp.lt.s32.totalorder %v5095_v49, 0 }
 0x198   :  { %vm5410_vm15 = vcmp.le.f32.partialorder %v8038_v22, 0.7853982  ;;  %v4110_v20 = vadd.s32 4294967169, %v1629_v44  ;;  %4554 = vsinq.f32 %v5300_v2  ;;  %v565_v26 = vxor.u32 2147483648, %v564_v15 }
 0x199   :  { %v8040_v24 = vsel %vm5410_vm15, 4294967295, %v8039_v24  ;;  %v1505_v55 = vsel %vm5410_vm15, %v5022_v11, %v1502_v58  ;;  %v1379_v42 = vsub.s32 0, %v5400_v52  ;;  %v848_v62 = vmul.u32 %v5366_v38, %v832_v48 }
 0x19a   :  { %8041 = vst [vmem:[#allocation25_spill] sm:$0xff] %v8040_v24  ;;  %v851_v51 = vadd.s32 1, %v5395_v43  ;;  %v1633_v16 = vor.u32 8388608, %v1632_v39  ;;  %v1635_v27 = vadd.s32 1, %v4110_v20  ;;  %vm850_vm8 = vc.u32 %v5405_v0, %v5394_v1 }
 0x19b   :  { %v4099_v32 = vmin.u32 %v1379_v42, %v5400_v52  ;;  %v7878_v44 = vand.u32 2147483647, %v5308_v40  ;;  %v692_v2 = vand.u32 2139095040, %v5308_v40  ;;  %4556 = vcosq.f32 %v1505_v55 }
 0x19c   :  { %v852_v58 = vsel %vm850_vm8, %v851_v51, %v5395_v43  ;;  %vm1636_vm9 = vcmp.gt.s32.totalorder %v1635_v27, 0  ;;  %v5429_v9 = vadd.f32 %v5273_v37, %v254_v54  ;;  %4558 = vsinq.f32 %v1505_v55 }
 0x19d   :  { %v1381_v38 = vclz %v4099_v32  ;;  %v853_v34 = vadd.s32 %v852_v58, %v848_v62  ;;  %v1637_v13 = vsel %vm1636_vm9, %v1635_v27, 0  ;;  %v5433_v61 = vsel %vm7925_vm7, %v565_v26, %v564_v15 }
 0x19e   :  { %v1369_v5 = vadd.s32 %v5362_v57, %v5358_v30  ;;  %v1639_v7 = vand.u32 31, %v1637_v13  ;;  %v5437_v17 = vshll.u32 %v1633_v16, 8  ;;  %v693_v39 = vshrl.u32 %v692_v2, 23 }
 0x19f   :  { %v4100_v6 = vadd.s32 4294967294, %v1381_v38  ;;  %v854_v43 = vadd.s32 536870912, %v853_v34  ;;  %v5441_v48 = vand.u32 8388607, %v7878_v44  ;;  %v5443_v3 = vshrl.u32 %v1637_v13, 5 }
 0x1a0   :  { %v1640_v22 = vsub.s32 32, %v1639_v7  ;;  %v1642_v20 = vshll.u32 %v7879_v53, %v1639_v7  ;;  %v1645_v15 = vshll.u32 %v8032_v46, %v1639_v7  ;;  %v1648_v30 = vshll.u32 %v8033_v12, %v1639_v7 }
 0x1a1   :  { %vm4101_vm13 = vcmp.lt.s32.totalorder %v4100_v6, 0  ;;  %v5447_v55 = vshrl.u32 %v854_v43, 30  ;;  %v1651_v57 = vshll.u32 %v8034_v50, %v1639_v7  ;;  %v1654_v62 = vshll.u32 %v7902_v63, %v1639_v7 }
 0x1a2   :  { %v1384_v26 = vsel %vm4101_vm13, 0, %v4100_v6  ;;  %v1643_v42 = vshrl.u32 %v8032_v46, %v1640_v22  ;;  %v1646_v54 = vshrl.u32 %v8033_v12, %v1640_v22  ;;  %v8043_v2 = vand.u32 2147483647, %v5095_v49 }
 0x1a3   :  { %8042 = vst [vmem:[#allocation26_spill] sm:$0xff] %v5447_v55  ;;  %v1385_v51 = vsub.s32 32, %v1384_v26  ;;  %v1386_v16 = vshll.u32 %v5400_v52, %v1384_v26  ;;  %v1389_v27 = vsub.s32 4294967266, %v1384_v26  ;;  %v856_v32 = vshll.u32 %v5447_v55, 30  ;;  %v5464_v44 = vpop.eup %4552 }
 0x1a4   :  { %vm5458_vm14 = vcmp.le.f32.partialorder %v8043_v2, 0.7853982  ;;  %v1644_v38 = vor.u32 %v1643_v42, %v1642_v20  ;;  %v1647_v13 = vor.u32 %v1646_v54, %v1645_v15  ;;  %v1649_v6 = vshrl.u32 %v8034_v50, %v1640_v22  ;;  %8046 = vst [vmem:[#allocation27_spill] sm:$0xff] %v5464_v44 }
 0x1a5   :  { %v1652_v43 = vshrl.u32 %v7902_v63, %v1640_v22  ;;  %v1387_v7 = vshrl.u32 %v1369_v5, %v1385_v51  ;;  %v1390_v53 = vadd.s32 127, %v1389_v27  ;;  %v5466_v52 = vsub.s32 %v853_v34, %v856_v32  ;;  %v5469_v24 = vpop.eup %4554 }
 0x1a6   :  { %v1655_v26 = vshrl.u32 %v8035_v59, %v1640_v22  ;;  %8047 = vst [vmem:[#allocation28_spill] sm:$0xff] %v5469_v24  ;;  %v8048_v2 = vmov 683565275   ;;  %v1650_v33 = vor.u32 %v1649_v6, %v1648_v30  ;;  %vm1657_vm8 = vcmp.lt.s32.totalorder %v5443_v3, 1 }
 0x1a7   :  { %v1641_v11 = vshrl.u32 %v8048_v2, %v1640_v22  ;;  %v1653_v47 = vor.u32 %v1652_v43, %v1651_v57  ;;  %v1388_v20 = vor.u32 %v1387_v7, %v1386_v16  ;;  %v1391_v15 = vshll.u32 %v1390_v53, 23 }
 0x1a8   :  { %v859_v42 = vsub.s32 0, %v5466_v52  ;;  %v1656_v54 = vor.u32 %v1655_v26, %v1654_v62  ;;  %vm1658_vm9 = vcmp.lt.s32.totalorder %v5443_v3, 2  ;;  %vm1659_vm13 = vcmp.lt.s32.totalorder %v5443_v3, 3  ;;  %v5477_v5 = vpop.eup %4556 }
 0x1a9   :  { %vm1660_vm10 = vcmp.lt.s32.totalorder %v5443_v3, 4  ;;  %v4074_v34 = vadd.s32 4294967169, %v693_v39  ;;  %8049 = vst [vmem:[#allocation29_spill] sm:$0xff] %v5477_v5  ;;  %v1392_v51 = vor.u32 4788187, %v1391_v15  ;;  %v1665_v57 = vsel %vm1657_vm8, %v1644_v38, %v1647_v13  ;;  %v5482_v53 = vpop.eup %4558 }
 0x1aa   :  { %v4079_v22 = vmin.u32 %v859_v42, %v5466_v52  ;;  %v1662_v30 = vsel %vm1660_vm10, %v1650_v33, 2102212464  ;;  %8050 = vst [vmem:[#allocation30_spill] sm:$0xff] %v5482_v53  ;;  %v1661_v62 = vsel %vm1657_vm8, %v1641_v11, %v1644_v38  ;;  %v1666_v16 = vsel %vm1660_vm10, %v1653_v47, 920167782 }
 0x1ab   :  { %v1669_v27 = vsel %vm1657_vm8, %v1647_v13, %v1650_v33  ;;  %v1670_v32 = vsel %vm1660_vm10, %v1656_v54, 1326507024  ;;  %v1393_v39 = vand.u32 2147483647, %v1392_v51  ;;  %v1395_v6 = vcvt.s32.f32 %v1388_v20 }
 0x1ac   :  { %v861_v43 = vclz %v4079_v22  ;;  %v1667_v7 = vsel %vm1659_vm13, %v1650_v33, %v1666_v16  ;;  %vm7900_vm1 = vcmp.lt.s32.totalorder %v5181_v23, 0  ;;  %v1663_v26 = vsel %vm1659_vm13, %v1647_v13, %v1662_v30 }
 0x1ad   :  { %v1668_v15 = vsel %vm1658_vm9, %v1665_v57, %v1667_v7  ;;  %v1671_v11 = vsel %vm1659_vm13, %v1653_v47, %v1670_v32  ;;  %v699_v38 = vadd.s32 1, %v4074_v34  ;;  %v5501_v20 = vsel %vm5458_vm14, %v5095_v49, %v5433_v61 }
 0x1ae   :  { %v1396_v42 = vmul.f32 %v1395_v6, %v1393_v39  ;;  %v4080_v33 = vadd.s32 4294967294, %v861_v43  ;;  %v1672_v54 = vsel %vm1658_vm9, %v1669_v27, %v1671_v11  ;;  %v1664_v47 = vsel %vm1658_vm9, %v1661_v62, %v1663_v26 }
 0x1af   :  { %v5506_v13 = vmul.u32.u64.low %v5437_v17, %v1672_v54  ;;  %v5507_v51 = vmul.u32.u64.high %v5437_v17, %v1672_v54, %v5506_v13  ;;  %v5510_v22 = vmul.u32.u64.low %v5437_v17, %v1668_v15  ;;  %v5511_v30 = vmul.u32.u64.high %v5437_v17, %v1668_v15, %v5510_v22 }
 0x1b0   :  { %vm4081_vm10 = vcmp.lt.s32.totalorder %v4080_v33, 0  ;;  %v697_v61 = vor.u32 8388608, %v5441_v48  ;;  %vm700_vm8 = vcmp.gt.s32.totalorder %v699_v38, 0  ;;  %v849_v34 = vadd.s32 %v5394_v1, %v5405_v0 }
 0x1b1   :  { %v864_v57 = vsel %vm4081_vm10, 0, %v4080_v33  ;;  %v7890_v16 = vand.u32 2147483647, %v5429_v9  ;;  %v1524_v27 = vand.u32 2139095040, %v5429_v9  ;;  %v1397_v32 = vxor.u32 2147483648, %v1396_v42 }
 0x1b2   :  { %v865_v39 = vsub.s32 32, %v864_v57  ;;  %v869_v6 = vsub.s32 4294967266, %v864_v57  ;;  %v701_v43 = vsel %vm700_vm8, %v699_v38, 0  ;;  %4560 = vcosq.f32 %v5501_v20 }
 0x1b3   :  { %v1680_v3 = vmul.u32 %v5437_v17, %v1664_v47  ;;  %vm1682_vm9 = vc.u32 %v5507_v51, %v5510_v22  ;;  %v1683_v48 = vadd.s32 1, %v5511_v30  ;;  %v866_v1 = vshll.u32 %v5466_v52, %v864_v57 }
 0x1b4   :  { %v867_v0 = vshrl.u32 %v849_v34, %v865_v39  ;;  %v870_v62 = vadd.s32 127, %v869_v6  ;;  %v5527_v7 = vshll.u32 %v697_v61, 8  ;;  %v703_v15 = vand.u32 31, %v701_v43 }
 0x1b5   :  { %v1684_v26 = vsel %vm1682_vm9, %v1683_v48, %v5511_v30  ;;  %v1525_v11 = vshrl.u32 %v1524_v27, 23  ;;  %v5532_v38 = vand.u32 8388607, %v7890_v16  ;;  %v1398_v17 = vsel %vm7900_vm1, %v1397_v32, %v1396_v42 }
 0x1b6   :  { %v868_v33 = vor.u32 %v867_v0, %v866_v1  ;;  %v871_v54 = vshll.u32 %v870_v62, 23  ;;  %v1685_v13 = vadd.s32 %v1684_v26, %v1680_v3  ;;  %v702_v47 = vshrl.u32 %v701_v43, 5 }
 0x1b7   :  { %v704_v52 = vsub.s32 32, %v703_v15  ;;  %v706_v34 = vshll.u32 %v8048_v2, %v703_v15  ;;  %v709_v61 = vshll.u32 %v8032_v46, %v703_v15  ;;  %v712_v27 = vshll.u32 %v8033_v12, %v703_v15 }
 0x1b8   :  { %v872_v57 = vor.u32 4788187, %v871_v54  ;;  %v875_v30 = vcvt.s32.f32 %v868_v33  ;;  %v1686_v39 = vadd.s32 536870912, %v1685_v13  ;;  %v8051_v6 = vand.u32 2147483647, %v5181_v23 }
 0x1b9   :  { %v8052_v48 = vmov 0  ;;  %vm7904_vm10 = vcmp.lt.s32.totalorder %v5276_v4, 0  ;;  %v707_v42 = vshrl.u32 %v8032_v46, %v704_v52  ;;  %v710_v32 = vshrl.u32 %v8033_v12, %v704_v52 }
 0x1ba   :  { %vm5541_vm13 = vcmp.le.f32.partialorder %v8051_v6, 0.7853982  ;;  %v713_v43 = vshrl.u32 %v8034_v50, %v704_v52  ;;  %v715_v3 = vshll.u32 %v8034_v50, %v703_v15  ;;  %v873_v1 = vand.u32 2147483647, %v872_v57  ;;  %v4301_v57 = vpop.f32.mrf.mxu0 }
 0x1bb   :  { %v8053_v48 = vsel %vm5541_vm13, 4294967295, %v8052_v48  ;;  %v5550_v0 = vshrl.u32 %v1686_v39, 30  ;;  %v716_v62 = vshrl.u32 %v7902_v63, %v704_v52  ;;  %v718_v26 = vshll.u32 %v7902_v63, %v703_v15 }
 0x1bc   :  { %8054 = vst [vmem:[#allocation31_spill] sm:$0xff] %v8053_v48  ;;  %v708_v33 = vor.u32 %v707_v42, %v706_v34  ;;  %v711_v54 = vor.u32 %v710_v32, %v709_v61  ;;  %v714_v6 = vor.u32 %v713_v43, %v712_v27  ;;  %v719_v16 = vshrl.u32 %v8035_v59, %v704_v52 }
 0x1bd   :  { %8055 = vst [vmem:[#allocation32_spill] sm:$0xff] %v5550_v0  ;;  %v876_v5 = vmul.f32 %v875_v30, %v873_v1  ;;  %v1688_v53 = vshll.u32 %v5550_v0, 30  ;;  %v717_v8 = vor.u32 %v716_v62, %v715_v3  ;;  %v4106_v55 = vadd.s32 4294967169, %v1525_v11 }
 0x1be   :  { %v705_v44 = vshrl.u32 %v8048_v2, %v704_v52  ;;  %v720_v24 = vor.u32 %v719_v16, %v718_v26  ;;  %vm721_vm8 = vcmp.lt.s32.totalorder %v702_v47, 1  ;;  %vm724_vm9 = vcmp.lt.s32.totalorder %v702_v47, 4 }
 0x1bf   :  { %v877_v39 = vxor.u32 2147483648, %v876_v5  ;;  %v5557_v45 = vsub.s32 %v1685_v13, %v1688_v53  ;;  %v726_v15 = vsel %vm724_vm9, %v714_v6, 2102212464  ;;  %v729_v34 = vsel %vm721_vm8, %v708_v33, %v711_v54  ;;  %v5561_v42 = vpop.eup %4560 }
 0x1c0   :  { %vm723_vm1 = vcmp.lt.s32.totalorder %v702_v47, 3  ;;  %v730_v61 = vsel %vm724_vm9, %v717_v8, 920167782  ;;  %v733_v30 = vsel %vm721_vm8, %v711_v54, %v714_v6  ;;  %v734_v27 = vsel %vm724_vm9, %v720_v24, 1326507024 }
 0x1c1   :  { %v1691_v11 = vsub.s32 0, %v5557_v45  ;;  %vm722_vm0 = vcmp.lt.s32.totalorder %v702_v47, 2  ;;  %v731_v16 = vsel %vm723_vm1, %v714_v6, %v730_v61  ;;  %v5565_v52 = vadd.f32 %v5273_v37, %v4301_v57 }
 0x1c2   :  { %v725_v53 = vsel %vm721_vm8, %v705_v44, %v708_v33  ;;  %v727_v13 = vsel %vm723_vm1, %v711_v54, %v726_v15  ;;  %v732_v32 = vsel %vm722_vm0, %v729_v34, %v731_v16  ;;  %v735_v43 = vsel %vm723_vm1, %v717_v8, %v734_v27 }
 0x1c3   :  { %v5571_v3 = vsel %vm5541_vm13, %v5181_v23, %v1398_v17  ;;  %v878_v24 = vsel %vm7904_vm10, %v877_v39, %v876_v5  ;;  %v4111_v1 = vmin.u32 %v1691_v11, %v5557_v45  ;;  %v736_v62 = vsel %vm722_vm0, %v733_v30, %v735_v43 }
 0x1c4   :  { %v5577_v26 = vmul.u32.u64.low %v5527_v7, %v736_v62  ;;  %v5578_v6 = vmul.u32.u64.high %v5527_v7, %v736_v62, %v5577_v26  ;;  %v1529_v44 = vor.u32 8388608, %v5532_v38  ;;  %v1531_v47 = vadd.s32 1, %v4106_v55 }
 0x1c5   :  { %v1693_v33 = vclz %v4111_v1  ;;  %v728_v8 = vsel %vm722_vm0, %v725_v53, %v727_v13  ;;  %v5582_v54 = vmul.u32.u64.low %v5527_v7, %v732_v32  ;;  %v5583_v57 = vmul.u32.u64.high %v5527_v7, %v732_v32, %v5582_v54 }
 0x1c6   :  { %4562 = vsinq.f32 %v5501_v20  ;;  %v8056_v5 = vand.u32 2147483647, %v5276_v4  ;;  %v8057_v17 = vmov 0  ;;  %v1681_v39 = vadd.s32 %v5510_v22, %v5507_v51 }
 0x1c7   :  { %vm1532_vm8 = vcmp.gt.s32.totalorder %v1531_v47, 0  ;;  %4564 = vcosq.f32 %v5571_v3  ;;  %v4112_v38 = vadd.s32 4294967294, %v1693_v33  ;;  %v744_v20 = vmul.u32 %v5527_v7, %v728_v8 }
 0x1c8   :  { %vm5589_vm1 = vcmp.le.f32.partialorder %v8056_v5, 0.7853982  ;;  %v1533_v15 = vsel %vm1532_vm8, %v1531_v47, 0  ;;  %vm746_vm0 = vc.u32 %v5578_v6, %v5582_v54  ;;  %v5604_v61 = vshll.u32 %v1529_v44, 8 }
 0x1c9   :  { %v8058_v17 = vsel %vm5589_vm1, 4294967295, %v8057_v17  ;;  %v5599_v55 = vsel %vm5589_vm1, %v5276_v4, %v878_v24  ;;  %v1535_v34 = vand.u32 31, %v1533_v15  ;;  %vm4113_vm9 = vcmp.lt.s32.totalorder %v4112_v38, 0 }
 0x1ca   :  { %8059 = vst [vmem:[#allocation33_spill] sm:$0xff] %v8058_v17  ;;  %v747_v51 = vadd.s32 1, %v5583_v57  ;;  %v1004_v30 = vand.u32 2139095040, %v5565_v52  ;;  %v1696_v27 = vsel %vm4113_vm9, 0, %v4112_v38  ;;  %v5612_v43 = vshrl.u32 %v1533_v15, 5 }
 0x1cb   :  { %v1536_v11 = vsub.s32 32, %v1535_v34  ;;  %v1538_v16 = vshll.u32 %v8048_v2, %v1535_v34  ;;  %v1541_v53 = vshll.u32 %v8032_v46, %v1535_v34  ;;  %v1697_v7 = vsub.s32 32, %v1696_v27 }
 0x1cc   :  { %v1701_v13 = vsub.s32 4294967266, %v1696_v27  ;;  %v748_v32 = vsel %vm746_vm0, %v747_v51, %v5583_v57  ;;  %v1698_v24 = vshll.u32 %v5557_v45, %v1696_v27  ;;  %v1544_v33 = vshll.u32 %v8033_v12, %v1535_v34 }
 0x1cd   :  { %v749_v1 = vadd.s32 %v748_v32, %v744_v20  ;;  %v1539_v62 = vshrl.u32 %v8032_v46, %v1536_v11  ;;  %v1542_v26 = vshrl.u32 %v8033_v12, %v1536_v11  ;;  %v1699_v44 = vshrl.u32 %v1681_v39, %v1697_v7 }
 0x1ce   :  { %v1702_v47 = vadd.s32 127, %v1701_v13  ;;  %v1545_v8 = vshrl.u32 %v8034_v50, %v1536_v11  ;;  %v1547_v57 = vshll.u32 %v8034_v50, %v1535_v34  ;;  %v8060_v45 = vmov 920167782  }
 0x1cf   :  { %v750_v5 = vadd.s32 536870912, %v749_v1  ;;  %v1540_v38 = vor.u32 %v1539_v62, %v1538_v16  ;;  %v1543_v22 = vor.u32 %v1542_v26, %v1541_v53  ;;  %v1700_v15 = vor.u32 %v1699_v44, %v1698_v24 }
 0x1d0   :  { %v1703_v51 = vshll.u32 %v1702_v47, 23  ;;  %v1546_v63 = vor.u32 %v1545_v8, %v1544_v33  ;;  %v1548_v20 = vshrl.u32 %v8060_v45, %v1536_v11  ;;  %v1550_v32 = vshll.u32 %v8060_v45, %v1535_v34 }
 0x1d1   :  { %v5621_v27 = vshrl.u32 %v750_v5, 30  ;;  %v1551_v39 = vshrl.u32 %v8035_v59, %v1536_v11  ;;  %vm1553_vm8 = vcmp.lt.s32.totalorder %v5612_v43, 1  ;;  %v1707_v13 = vcvt.s32.f32 %v1700_v15  ;;  %v1944_v15 = vld [vmem:[%s7849_s3 + $0x38] sm:$0xff] }
 0x1d2   :  { %v1704_v7 = vor.u32 4788187, %v1703_v51  ;;  %v1537_v16 = vshrl.u32 %v8048_v2, %v1536_v11  ;;  %v1549_v53 = vor.u32 %v1548_v20, %v1547_v57  ;;  %vm1555_vm0 = vcmp.lt.s32.totalorder %v5612_v43, 3  ;;  %4314 = vmatprep.subr.mxu1 %v1944_v15 }
 0x1d3   :  { %8061 = vst [vmem:[#allocation34_spill] sm:$0xff] %v5621_v27  ;;  %v752_v62 = vshll.u32 %v5621_v27, 30  ;;  %v1552_v24 = vor.u32 %v1551_v39, %v1550_v32  ;;  %vm1556_vm9 = vcmp.lt.s32.totalorder %v5612_v43, 4  ;;  %v5630_v26 = vpop.eup %4562  ;;  %vm1554_vm10 = vcmp.lt.s32.totalorder %v5612_v43, 2  ;;  %4315 = vmatpush3.msra.mxu1 %v1944_v15  ;;  %v1941_v43 = vld [vmem:[%s7849_s3 + $0x20] sm:$0xff] }
 0x1d4   :  { %v1705_v44 = vand.u32 2147483647, %v1704_v7  ;;  %v1558_v34 = vsel %vm1556_vm9, %v1546_v63, 2102212464  ;;  %v1561_v47 = vsel %vm1553_vm8, %v1540_v38, %v1543_v22  ;;  %v5635_v33 = vpop.eup %4564  ;;  %v1562_v8 = vsel %vm1556_vm9, %v1549_v53, 920167782 }
 0x1d5   :  { %8062 = vst [vmem:[#allocation35_spill] sm:$0xff] %v5635_v33  ;;  %v5637_v11 = vsub.s32 %v749_v1, %v752_v62  ;;  %v1565_v5 = vsel %vm1553_vm8, %v1543_v22, %v1546_v63  ;;  %v1005_v57 = vshrl.u32 %v1004_v30, 23  ;;  %v1557_v20 = vsel %vm1553_vm8, %v1537_v16, %v1540_v38  ;;  %v1943_v38 = vld [vmem:[%s7849_s3 + $0x30] sm:$0xff] }
 0x1d6   :  { %v1708_v51 = vmul.f32 %v1707_v13, %v1705_v44  ;;  %v1563_v32 = vsel %vm1555_vm0, %v1546_v63, %v1562_v8  ;;  %v1566_v39 = vsel %vm1556_vm9, %v1552_v24, 1326507024  ;;  %v1559_v7 = vsel %vm1555_vm0, %v1543_v22, %v1558_v34  ;;  %4316 = vmatprep.subr.mxu1 %v1943_v38  ;;  %v1942_v8 = vld [vmem:[%s7849_s3 + $0x28] sm:$0xff] }
 0x1d7   :  { %v755_v1 = vsub.s32 0, %v5637_v11  ;;  %v1564_v30 = vsel %vm1554_vm10, %v1561_v47, %v1563_v32  ;;  %v1567_v62 = vsel %vm1555_vm0, %v1549_v53, %v1566_v39  ;;  %v4086_v34 = vadd.s32 4294967169, %v1005_v57  ;;  %v4313_v47 = vpop.f32.mrf.mxu1  ;;  %4317 = vmatpush3.msra.mxu1 %v1943_v38  ;;  %v224_v39 = vpop.f32.mrf.mxu0 }
 0x1d8   :  { %v1709_v13 = vxor.u32 2147483648, %v1708_v51  ;;  %v1568_v63 = vsel %vm1554_vm10, %v1565_v5, %v1567_v62  ;;  %v5661_v16 = vmul.u32.u64.low %v5604_v61, %v1564_v30  ;;  %v5662_v24 = vmul.u32.u64.high %v5604_v61, %v1564_v30, %v5661_v16  ;;  %4318 = vmatprep.subr.mxu1 %v1942_v8 }
 0x1d9   :  { %v4075_v22 = vmin.u32 %v755_v1, %v5637_v11  ;;  %v5667_v44 = vmul.u32.u64.low %v5604_v61, %v1568_v63  ;;  %v5668_v53 = vmul.u32.u64.high %v5604_v61, %v1568_v63, %v5667_v44  ;;  %4566 = vsinq.f32 %v5571_v3  ;;  %4319 = vmatpush3.msra.mxu1 %v1942_v8 }
 0x1da   :  { %vm7905_vm8 = vcmp.lt.s32.totalorder %v5303_v29, 0  ;;  %v1560_v5 = vsel %vm1554_vm10, %v1557_v20, %v1559_v7  ;;  %v8063_v15 = vand.u32 2147483647, %v5565_v52  ;;  %4568 = vcosq.f32 %v5599_v55  ;;  %4320 = vmatprep.subr.mxu1 %v1941_v43 }
 0x1db   :  { %v8064_v57 = vand.u32 2147483647, %v5303_v29  ;;  %v8065_v1 = vmov 0  ;;  %v757_v30 = vclz %v4075_v22  ;;  %v1011_v3 = vadd.s32 1, %v4086_v34  ;;  %4321 = vmatpush3.msra.mxu1 %v1941_v43 }
 0x1dc   :  { %v1008_v32 = vand.u32 8388607, %v8063_v15  ;;  %v1710_v20 = vsel %vm7905_vm8, %v1709_v13, %v1708_v51  ;;  %v1579_v7 = vadd.s32 1, %v5662_v24  ;;  %v5693_v38 = vadd.f32 %v5273_v37, %v4313_v47  ;;  %v1940_v51 = vld [vmem:[%s7849_s3 + $0x18] sm:$0xff] }
 0x1dd   :  { %vm5682_vm0 = vcmp.le.f32.partialorder %v8064_v57, 0.7853982  ;;  %v4076_v63 = vadd.s32 4294967294, %v757_v30  ;;  %v1576_v44 = vmul.u32 %v5604_v61, %v1560_v5  ;;  %vm1578_vm10 = vc.u32 %v5668_v53, %v5661_v16  ;;  %4322 = vmatprep.subr.mxu1 %v1940_v51  ;;  %v1939_v61 = vld [vmem:[%s7849_s3 + $0x10] sm:$0xff] }
 0x1de   :  { %v8066_v1 = vsel %vm5682_vm0, 4294967295, %v8065_v1  ;;  %v1009_v62 = vor.u32 8388608, %v1008_v32  ;;  %v5699_v22 = vadd.f32 %v5273_v37, %v224_v39  ;;  %v745_v13 = vadd.s32 %v5582_v54, %v5578_v6  ;;  %4323 = vmatpush3.msra.mxu1 %v1940_v51  ;;  %v1938_v6 = vld [vmem:[%s7849_s3 + $0x8] sm:$0xff] }
 0x1df   :  { %8067 = vst [vmem:[#allocation36_spill] sm:$0xff] %v8066_v1  ;;  %v1580_v34 = vsel %vm1578_vm10, %v1579_v7, %v5662_v24  ;;  %vm1012_vm9 = vcmp.gt.s32.totalorder %v1011_v3, 0  ;;  %v5714_v37 = vsel %vm5682_vm0, %v5303_v29, %v1710_v20  ;;  %vm4077_vm8 = vcmp.lt.s32.totalorder %v4076_v63, 0  ;;  %4324 = vmatprep.subr.mxu1 %v1939_v61 }
 0x1e0   :  { %v1581_v8 = vadd.s32 %v1580_v34, %v1576_v44  ;;  %v1013_v5 = vsel %vm1012_vm9, %v1011_v3, 0  ;;  %v760_v54 = vsel %vm4077_vm8, 0, %v4076_v63  ;;  %v5719_v15 = vshll.u32 %v1009_v62, 8  ;;  %4325 = vmatpush3.msra.mxu1 %v1939_v61  ;;  %v1937_v3 = vld [vmem:[%s7849_s3] sm:$0xff] }
 0x1e1   :  { %v1015_v24 = vand.u32 31, %v1013_v5  ;;  %v1836_v32 = vand.u32 2139095040, %v5693_v38  ;;  %v761_v39 = vsub.s32 32, %v760_v54  ;;  %v765_v57 = vsub.s32 4294967266, %v760_v54  ;;  %4326 = vmatprep.subr.mxu1 %v1938_v6 }
 0x1e2   :  { %v1582_v30 = vadd.s32 536870912, %v1581_v8  ;;  %v5722_v43 = vshrl.u32 %v1013_v5, 5  ;;  %v762_v20 = vshll.u32 %v5637_v11, %v760_v54  ;;  %4327 = vmatpush3.msra.mxu1 %v1938_v6  ;;  %4570 = vsinq.f32 %v5599_v55 }
 0x1e3   :  { %v1016_v7 = vsub.s32 32, %v1015_v24  ;;  %v1018_v63 = vshll.u32 %v8048_v2, %v1015_v24  ;;  %v1021_v62 = vshll.u32 %v8032_v46, %v1015_v24  ;;  %v763_v44 = vshrl.u32 %v745_v13, %v761_v39  ;;  %4328 = vmatprep.subr.mxu1 %v1937_v3 }
 0x1e4   :  { %v766_v51 = vadd.s32 127, %v765_v57  ;;  %v5730_v34 = vshrl.u32 %v1582_v30, 30  ;;  %v1024_v5 = vshll.u32 %v8033_v12, %v1015_v24  ;;  %v1027_v11 = vshll.u32 %v8034_v50, %v1015_v24  ;;  %4329 = vmatpush3.msra.mxu1 %v1937_v3 }
 0x1e5   :  { %v1019_v61 = vshrl.u32 %v8032_v46, %v1016_v7  ;;  %v1022_v47 = vshrl.u32 %v8033_v12, %v1016_v7  ;;  %v1025_v1 = vshrl.u32 %v8034_v50, %v1016_v7  ;;  %v764_v54 = vor.u32 %v763_v44, %v762_v20 }
 0x1e6   :  { %8068 = vst [vmem:[#allocation37_spill] sm:$0xff] %v5730_v34  ;;  %v767_v29 = vshll.u32 %v766_v51, 23  ;;  %v1584_v0 = vshll.u32 %v5730_v34, 30  ;;  %v1028_v13 = vshrl.u32 %v8060_v45, %v1016_v7  ;;  %v1837_v6 = vshrl.u32 %v1836_v32, 23  ;;  %v5739_v33 = vpop.eup %4566 }
 0x1e7   :  { %v1020_v39 = vor.u32 %v1019_v61, %v1018_v63  ;;  %v1023_v57 = vor.u32 %v1022_v47, %v1021_v62  ;;  %v1026_v30 = vor.u32 %v1025_v1, %v1024_v5  ;;  %8069 = vst [vmem:[#allocation38_spill] sm:$0xff] %v5739_v33  ;;  %v1017_v17 = vshrl.u32 %v8048_v2, %v1016_v7  ;;  %v5744_v27 = vpop.eup %4568 }
 0x1e8   :  { %v768_v48 = vor.u32 4788187, %v767_v29  ;;  %v5741_v23 = vsub.s32 %v1581_v8, %v1584_v0  ;;  %v1029_v4 = vor.u32 %v1028_v13, %v1027_v11  ;;  %v771_v20 = vcvt.s32.f32 %v764_v54 }
 0x1e9   :  { %v1030_v44 = vshll.u32 %v8060_v45, %v1015_v24  ;;  %v1031_v51 = vshrl.u32 %v8035_v59, %v1016_v7  ;;  %vm1033_vm8 = vcmp.lt.s32.totalorder %v5722_v43, 1  ;;  %vm1035_vm10 = vcmp.lt.s32.totalorder %v5722_v43, 3 }
 0x1ea   :  { %v769_v47 = vand.u32 2147483647, %v768_v48  ;;  %v1587_v1 = vsub.s32 0, %v5741_v23  ;;  %vm1036_vm9 = vcmp.lt.s32.totalorder %v5722_v43, 4  ;;  %v1041_v8 = vsel %vm1033_vm8, %v1020_v39, %v1023_v57 }
 0x1eb   :  { %v1032_v29 = vor.u32 %v1031_v51, %v1030_v44  ;;  %v1038_v0 = vsel %vm1036_vm9, %v1026_v30, 2102212464  ;;  %v1042_v32 = vsel %vm1036_vm9, %v1029_v4, 920167782  ;;  %vm1034_vm11 = vcmp.lt.s32.totalorder %v5722_v43, 2 }
 0x1ec   :  { %v772_v3 = vmul.f32 %v771_v20, %v769_v47  ;;  %v4107_v24 = vmin.u32 %v1587_v1, %v5741_v23  ;;  %v1043_v48 = vsel %vm1035_vm10, %v1026_v30, %v1042_v32  ;;  %v1045_v63 = vsel %vm1033_vm8, %v1023_v57, %v1026_v30 }
 0x1ed   :  { %v1044_v7 = vsel %vm1034_vm11, %v1041_v8, %v1043_v48  ;;  %v1046_v62 = vsel %vm1036_vm9, %v1032_v29, 1326507024  ;;  %v4118_v5 = vadd.s32 4294967169, %v1837_v6  ;;  %v1037_v11 = vsel %vm1033_vm8, %v1017_v17, %v1020_v39 }
 0x1ee   :  { %v1589_v61 = vclz %v4107_v24  ;;  %v1039_v54 = vsel %vm1035_vm10, %v1023_v57, %v1038_v0  ;;  %v1047_v13 = vsel %vm1035_vm10, %v1029_v4, %v1046_v62  ;;  %v8070_v30 = vand.u32 2147483647, %v5693_v38 }
 0x1ef   :  { %v1048_v20 = vsel %vm1034_vm11, %v1045_v63, %v1047_v13  ;;  %v5771_v44 = vmul.u32.u64.low %v5719_v15, %v1044_v7  ;;  %v5772_v51 = vmul.u32.u64.high %v5719_v15, %v1044_v7, %v5771_v44  ;;  %v773_v47 = vxor.u32 2147483648, %v772_v3 }
 0x1f0   :  { %v1840_v6 = vand.u32 8388607, %v8070_v30  ;;  %v4108_v1 = vadd.s32 4294967294, %v1589_v61  ;;  %v5778_v17 = vmul.u32.u64.low %v5719_v15, %v1048_v20  ;;  %v5779_v39 = vmul.u32.u64.high %v5719_v15, %v1048_v20, %v5778_v17 }
 0x1f1   :  { %vm7921_vm8 = vcmp.lt.s32.totalorder %v5308_v40, 0  ;;  %v1040_v4 = vsel %vm1034_vm11, %v1037_v11, %v1039_v54  ;;  %v1843_v57 = vadd.s32 1, %v4118_v5  ;;  %4572 = vcosq.f32 %v5714_v37 }
 0x1f2   :  { %v1577_v29 = vadd.s32 %v5661_v16, %v5668_v53  ;;  %vm4109_vm10 = vcmp.lt.s32.totalorder %v4108_v1, 0  ;;  %v900_v0 = vand.u32 2139095040, %v5699_v22  ;;  %v1059_v32 = vadd.s32 1, %v5772_v51 }
 0x1f3   :  { %v1592_v8 = vsel %vm4109_vm10, 0, %v4108_v1  ;;  %v1841_v24 = vor.u32 8388608, %v1840_v6  ;;  %vm1844_vm9 = vcmp.gt.s32.totalorder %v1843_v57, 0  ;;  %v5792_v55 = vsel %vm7921_vm8, %v773_v47, %v772_v3 }
 0x1f4   :  { %v1593_v43 = vsub.s32 32, %v1592_v8  ;;  %v1597_v48 = vsub.s32 4294967266, %v1592_v8  ;;  %v1056_v7 = vmul.u32 %v5719_v15, %v1040_v4  ;;  %v1594_v63 = vshll.u32 %v5741_v23, %v1592_v8 }
 0x1f5   :  { %vm1058_vm11 = vc.u32 %v5779_v39, %v5771_v44  ;;  %v1845_v16 = vsel %vm1844_vm9, %v1843_v57, 0  ;;  %v901_v53 = vshrl.u32 %v900_v0, 23  ;;  %v5801_v13 = vshll.u32 %v1841_v24, 8 }
 0x1f6   :  { %v1595_v62 = vshrl.u32 %v1577_v29, %v1593_v43  ;;  %v1598_v5 = vadd.s32 127, %v1597_v48  ;;  %v1060_v61 = vsel %vm1058_vm11, %v1059_v32, %v5772_v51  ;;  %v5799_v11 = vshrl.u32 %v1845_v16, 5 }
 0x1f7   :  { %v1061_v54 = vadd.s32 %v1060_v61, %v1056_v7  ;;  %v1847_v3 = vand.u32 31, %v1845_v16  ;;  %v4082_v23 = vadd.s32 4294967169, %v901_v53  ;;  %v8071_v51 = vand.u32 2147483647, %v5308_v40 }
 0x1f8   :  { %v1596_v15 = vor.u32 %v1595_v62, %v1594_v63  ;;  %v1599_v30 = vshll.u32 %v1598_v5, 23  ;;  %vm1865_vm10 = vcmp.lt.s32.totalorder %v5799_v11, 1  ;;  %vm7930_vm11 = vcmp.lt.s32.totalorder %v5429_v9, 0 }
 0x1f9   :  { %v1062_v6 = vadd.s32 536870912, %v1061_v54  ;;  %v1848_v47 = vsub.s32 32, %v1847_v3  ;;  %v1850_v1 = vshll.u32 %v8048_v2, %v1847_v3  ;;  %v1853_v17 = vshll.u32 %v8032_v46, %v1847_v3 }
 0x1fa   :  { %vm5809_vm9 = vcmp.le.f32.partialorder %v8071_v51, 0.7853982  ;;  %v1600_v57 = vor.u32 4788187, %v1599_v30  ;;  %v1603_v29 = vcvt.s32.f32 %v1596_v15  ;;  %v1856_v0 = vshll.u32 %v8033_v12, %v1847_v3  ;;  %v5826_v30 = vpop.eup %4570 }
 0x1fb   :  { %v1859_v8 = vshll.u32 %v8034_v50, %v1847_v3  ;;  %v5816_v32 = vshrl.u32 %v1062_v6, 30  ;;  %v1849_v24 = vshrl.u32 %v8048_v2, %v1848_v47  ;;  %v1851_v43 = vshrl.u32 %v8032_v46, %v1848_v47 }
 0x1fc   :  { %v1854_v48 = vshrl.u32 %v8033_v12, %v1848_v47  ;;  %v1601_v7 = vand.u32 2147483647, %v1600_v57  ;;  %v1857_v63 = vshrl.u32 %v8034_v50, %v1848_v47  ;;  %v1860_v16 = vshrl.u32 %v8060_v45, %v1848_v47 }
 0x1fd   :  { %v1862_v53 = vshll.u32 %v8060_v45, %v1847_v3  ;;  %v1064_v62 = vshll.u32 %v5816_v32, 30  ;;  %v1852_v5 = vor.u32 %v1851_v43, %v1850_v1  ;;  %v1863_v15 = vshrl.u32 %v8035_v59, %v1848_v47 }
 0x1fe   :  { %v1855_v61 = vor.u32 %v1854_v48, %v1853_v17  ;;  %v1604_v6 = vmul.f32 %v1603_v29, %v1601_v7  ;;  %v1858_v51 = vor.u32 %v1857_v63, %v1856_v0  ;;  %v1861_v20 = vor.u32 %v1860_v16, %v1859_v8  ;;  %v5829_v57 = vpop.eup %4572 }
 0x1ff   :  { %vm1867_vm8 = vcmp.lt.s32.totalorder %v5799_v11, 3  ;;  %8074 = vst [vmem:[#allocation39_spill] sm:$0xff] %v5829_v57  ;;  %v5831_v34 = vsub.s32 %v1061_v54, %v1064_v62  ;;  %v1864_v33 = vor.u32 %v1863_v15, %v1862_v53  ;;  %vm1866_vm7 = vcmp.lt.s32.totalorder %v5799_v11, 2 }
 0x200   :  { %vm1868_vm5 = vcmp.lt.s32.totalorder %v5799_v11, 4  ;;  %v1605_v3 = vxor.u32 2147483648, %v1604_v6  ;;  %v1873_v47 = vsel %vm1865_vm10, %v1852_v5, %v1855_v61  ;;  %v1877_v54 = vsel %vm1865_vm10, %v1855_v61, %v1858_v51 }
 0x201   :  { %v1870_v1 = vsel %vm1868_vm5, %v1858_v51, 2102212464  ;;  %v1874_v17 = vsel %vm1868_vm5, %v1861_v20, 920167782  ;;  %v1067_v29 = vsub.s32 0, %v5831_v34  ;;  %v1869_v48 = vsel %vm1865_vm10, %v1849_v24, %v1852_v5 }
 0x202   :  { %v1875_v0 = vsel %vm1867_vm8, %v1858_v51, %v1874_v17  ;;  %v8075_v8 = vand.u32 2147483647, %v5699_v22  ;;  %v1871_v7 = vsel %vm1867_vm8, %v1855_v61, %v1870_v1  ;;  %v1878_v16 = vsel %vm1868_vm5, %v1864_v33, 1326507024  ;;  %v264_v17 = vpop.f32.mrf.mxu1 }
 0x203   :  { %v1876_v63 = vsel %vm1866_vm7, %v1873_v47, %v1875_v0  ;;  %4574 = vsinq.f32 %v5714_v37  ;;  %v777_v53 = vsel %vm5809_vm9, %v5308_v40, %v5792_v55  ;;  %v4087_v62 = vmin.u32 %v1067_v29, %v5831_v34 }
 0x204   :  { %v904_v43 = vand.u32 8388607, %v8075_v8  ;;  %v1879_v15 = vsel %vm1867_vm8, %v1861_v20, %v1878_v16  ;;  %v1606_v24 = vsel %vm7930_vm11, %v1605_v3, %v1604_v6  ;;  %v1872_v55 = vsel %vm1866_vm7, %v1869_v48, %v1871_v7 }
 0x205   :  { %v1880_v5 = vsel %vm1866_vm7, %v1877_v54, %v1879_v15  ;;  %v5863_v33 = vmul.u32.u64.low %v5801_v13, %v1876_v63  ;;  %v5864_v61 = vmul.u32.u64.high %v5801_v13, %v1876_v63, %v5863_v33  ;;  %v1069_v37 = vclz %v4087_v62 }
 0x206   :  { %v5870_v51 = vmul.u32.u64.low %v5801_v13, %v1880_v5  ;;  %v5871_v1 = vmul.u32.u64.high %v5801_v13, %v1880_v5, %v5870_v51  ;;  %v8076_v20 = vsel %vm5050_vm2, 0, %v5126_v10  ;;  %4576 = vcosq.f32 %v777_v53 }
 0x207   :  { %v5877_v6 = vadd.s32 3, %v8076_v20  ;;  %v905_v3 = vor.u32 8388608, %v904_v43  ;;  %v907_v47 = vadd.s32 1, %v4082_v23  ;;  %4578 = vsinq.f32 %v777_v53 }
 0x208   :  { %v8077_v29 = vand.u32 2147483647, %v5429_v9  ;;  %v8078_v11 = vmov 0  ;;  %v1057_v0 = vadd.s32 %v5771_v44, %v5779_v39  ;;  %v4088_v54 = vadd.s32 4294967294, %v1069_v37  ;;  %v4665_v44 = vld [vmem:[%s7848_s2] ss:$0 sm:$0xff] }
 0x209   :  { %v1888_v10 = vmul.u32 %v5801_v13, %v1872_v55  ;;  %v1891_v23 = vadd.s32 1, %v5864_v61  ;;  %vm908_vm2 = vcmp.gt.s32.totalorder %v907_v47, 0  ;;  %vm1890_vm8 = vc.u32 %v5871_v1, %v5863_v33 }
 0x20a   :  { %vm5881_vm5 = vcmp.le.f32.partialorder %v8077_v29, 0.7853982  ;;  %vm4089_vm7 = vcmp.lt.s32.totalorder %v4088_v54, 0  ;;  %v909_v8 = vsel %vm908_vm2, %v907_v47, 0  ;;  %v5899_v39 = vadd.f32 %v4665_v44, %v264_v17 }
 0x20b   :  { %v8079_v11 = vsel %vm5881_vm5, 4294967295, %v8078_v11  ;;  %v5890_v60 = vsel %vm5881_vm5, %v5429_v9, %v1606_v24  ;;  %v1072_v43 = vsel %vm4089_vm7, 0, %v4088_v54  ;;  %v1892_v48 = vsel %vm1890_vm8, %v1891_v23, %v5864_v61 }
 0x20c   :  { %8080 = vst [vmem:[#allocation40_spill] sm:$0xff] %v8079_v11  ;;  %v911_v7 = vand.u32 31, %v909_v8  ;;  %v5902_v63 = vshll.u32 %v905_v3, 8  ;;  %v1073_v13 = vsub.s32 32, %v1072_v43  ;;  %v1077_v16 = vsub.s32 4294967266, %v1072_v43 }
 0x20d   :  { %v1893_v53 = vadd.s32 %v1892_v48, %v1888_v10  ;;  %v910_v62 = vshrl.u32 %v909_v8, 5  ;;  %v1074_v15 = vshll.u32 %v5831_v34, %v1072_v43  ;;  %vm7934_vm10 = vcmp.lt.s32.totalorder %v5565_v52, 0 }
 0x20e   :  { %v912_v24 = vsub.s32 32, %v911_v7  ;;  %v914_v5 = vshll.u32 %v8048_v2, %v911_v7  ;;  %v917_v37 = vshll.u32 %v8032_v46, %v911_v7  ;;  %v1075_v55 = vshrl.u32 %v1057_v0, %v1073_v13 }
 0x20f   :  { %v1078_v51 = vadd.s32 127, %v1077_v16  ;;  %v1894_v20 = vadd.s32 536870912, %v1893_v53  ;;  %v920_v47 = vshll.u32 %v8033_v12, %v911_v7  ;;  %v923_v29 = vshll.u32 %v8034_v50, %v911_v7 }
 0x210   :  { %v915_v61 = vshrl.u32 %v8032_v46, %v912_v24  ;;  %v918_v3 = vshrl.u32 %v8033_v12, %v912_v24  ;;  %v921_v17 = vshrl.u32 %v8034_v50, %v912_v24  ;;  %v1076_v54 = vor.u32 %v1075_v55, %v1074_v15  ;;  %v5915_v8 = vpop.eup %4574 }
 0x211   :  { %v1079_v34 = vshll.u32 %v1078_v51, 23  ;;  %v5912_v10 = vshrl.u32 %v1894_v20, 30  ;;  %v924_v23 = vshrl.u32 %v8060_v45, %v912_v24  ;;  %8081 = vst [vmem:[#allocation41_spill] sm:$0xff] %v5915_v8  ;;  %v913_v0 = vshrl.u32 %v8048_v2, %v912_v24 }
 0x212   :  { %v916_v44 = vor.u32 %v915_v61, %v914_v5  ;;  %v919_v43 = vor.u32 %v918_v3, %v917_v37  ;;  %v922_v48 = vor.u32 %v921_v17, %v920_v47  ;;  %v926_v15 = vshll.u32 %v8060_v45, %v911_v7 }
 0x213   :  { %v1080_v13 = vor.u32 4788187, %v1079_v34  ;;  %v1896_v16 = vshll.u32 %v5912_v10, 30  ;;  %v925_v57 = vor.u32 %v924_v23, %v923_v29  ;;  %v1083_v55 = vcvt.s32.f32 %v1076_v54  ;;  %v5922_v20 = vpop.eup %4576 }
 0x214   :  { %v927_v51 = vshrl.u32 %v8035_v59, %v912_v24  ;;  %vm929_vm2 = vcmp.lt.s32.totalorder %v910_v62, 1  ;;  %vm930_vm7 = vcmp.lt.s32.totalorder %v910_v62, 2  ;;  %vm931_vm8 = vcmp.lt.s32.totalorder %v910_v62, 3  ;;  %v5926_v5 = vpop.eup %4578 }
 0x215   :  { %v1081_v8 = vand.u32 2147483647, %v1080_v13  ;;  %v5924_v11 = vsub.s32 %v1893_v53, %v1896_v16  ;;  %vm932_vm11 = vcmp.lt.s32.totalorder %v910_v62, 4  ;;  %v937_v61 = vsel %vm929_vm2, %v916_v44, %v919_v43 }
 0x216   :  { %v928_v37 = vor.u32 %v927_v51, %v926_v15  ;;  %v934_v47 = vsel %vm932_vm11, %v922_v48, 2102212464  ;;  %v938_v3 = vsel %vm932_vm11, %v925_v57, 920167782  ;;  %v933_v24 = vsel %vm929_vm2, %v913_v0, %v916_v44 }
 0x217   :  { %v1084_v7 = vmul.f32 %v1083_v55, %v1081_v8  ;;  %v1899_v17 = vsub.s32 0, %v5924_v11  ;;  %v939_v29 = vsel %vm931_vm8, %v922_v48, %v938_v3  ;;  %v935_v54 = vsel %vm931_vm8, %v919_v43, %v934_v47 }
 0x218   :  { %v940_v53 = vsel %vm930_vm7, %v937_v61, %v939_v29  ;;  %v941_v34 = vsel %vm929_vm2, %v919_v43, %v922_v48  ;;  %v942_v23 = vsel %vm932_vm11, %v928_v37, 1326507024  ;;  %v359_v8 = vsub.s32 4, %v4963_v41  ;;  %v8127_v37 = vld [vmem:[#allocation9_spill] sm:$0xff] }
 0x219   :  { %v1085_v13 = vxor.u32 2147483648, %v1084_v7  ;;  %v4119_v16 = vmin.u32 %v1899_v17, %v5924_v11  ;;  %v943_v15 = vsel %vm931_vm8, %v925_v57, %v942_v23  ;;  %v7931_v51 = vand.u32 2147483647, %v5899_v39 }
 0x21a   :  { %v944_v55 = vsel %vm930_vm7, %v941_v34, %v943_v15  ;;  %v5940_v0 = vmul.u32.u64.low %v5902_v63, %v940_v53  ;;  %v5941_v44 = vmul.u32.u64.high %v5902_v63, %v940_v53, %v5940_v0  ;;  %v936_v61 = vsel %vm930_vm7, %v933_v24, %v935_v54 }
 0x21b   :  { %v1901_v47 = vclz %v4119_v16  ;;  %v5946_v43 = vmul.u32.u64.low %v5902_v63, %v944_v55  ;;  %v5947_v48 = vmul.u32.u64.high %v5902_v63, %v944_v55, %v5946_v43  ;;  %4580 = vcosq.f32 %v5890_v60 }
 0x21c   :  { %v8082_v57 = vand.u32 2147483647, %v5565_v52  ;;  %v1086_v3 = vsel %vm7934_vm10, %v1085_v13, %v1084_v7  ;;  %v1732_v17 = vand.u32 2139095040, %v5899_v39  ;;  %4582 = vsinq.f32 %v5890_v60 }
 0x21d   :  { %v4120_v62 = vadd.s32 4294967294, %v1901_v47  ;;  %vm8085_vm2 = vcmp.lt.s32.totalorder %v4799_v28, 0  ;;  %v952_v54 = vmul.u32 %v5902_v63, %v936_v61  ;;  %v955_v53 = vadd.s32 1, %v5941_v44 }
 0x21e   :  { %vm5952_vm11 = vcmp.le.f32.partialorder %v8082_v57, 0.7853982  ;;  %v360_v24 = vsel %vm8085_vm2, %v359_v8, %v4963_v41  ;;  %v1733_v34 = vshrl.u32 %v1732_v17, 23  ;;  %v1736_v23 = vand.u32 8388607, %v7931_v51 }
 0x21f   :  { %v1089_v7 = vsel %vm5952_vm11, %v5565_v52, %v1086_v3  ;;  %vm4121_vm7 = vcmp.lt.s32.totalorder %v4120_v62, 0  ;;  %vm954_vm8 = vc.u32 %v5947_v48, %v5940_v0  ;;  %v362_v41 = vsel %vm5216_vm3, 0, %v360_v24 }
 0x220   :  { %v1904_v60 = vsel %vm4121_vm7, 0, %v4120_v62  ;;  %v956_v13 = vsel %vm954_vm8, %v955_v53, %v5941_v44  ;;  %v4114_v63 = vadd.s32 4294967169, %v1733_v34  ;;  %v1889_v15 = vadd.s32 %v5863_v33, %v5871_v1 }
 0x221   :  { %v1905_v8 = vsub.s32 32, %v1904_v60  ;;  %v1909_v55 = vsub.s32 4294967266, %v1904_v60  ;;  %v957_v47 = vadd.s32 %v956_v13, %v952_v54  ;;  %4584 = vcosq.f32 %v1089_v7 }
 0x222   :  { %v1737_v61 = vor.u32 8388608, %v1736_v23  ;;  %v1739_v43 = vadd.s32 1, %v4114_v63  ;;  %v366_v57 = vadd.s32 3, %v362_v41  ;;  %v1906_v3 = vshll.u32 %v5924_v11, %v1904_v60 }
 0x223   :  { %v1907_v18 = vshrl.u32 %v1889_v15, %v1905_v8  ;;  %v1910_v17 = vadd.s32 127, %v1909_v55  ;;  %v958_v62 = vadd.s32 536870912, %v957_v47  ;;  %4586 = vsinq.f32 %v1089_v7 }
 0x224   :  { %v5980_v44 = vadd.s32 %v5940_v0, %v5947_v48  ;;  %vm1740_vm3 = vcmp.gt.s32.totalorder %v1739_v43, 0  ;;  %v5982_v24 = vand.u32 3, %v366_v57  ;;  %v5987_v23 = vshll.u32 %v1737_v61, 8 }
 0x225   :  { %v1908_v33 = vor.u32 %v1907_v18, %v1906_v3  ;;  %v1911_v1 = vshll.u32 %v1910_v17, 23  ;;  %v5984_v53 = vshrl.u32 %v958_v62, 30  ;;  %v1741_v54 = vsel %vm1740_vm3, %v1739_v43, 0 }
 0x226   :  { %v1743_v34 = vand.u32 31, %v1741_v54  ;;  %v5990_v11 = vand.u32 3, %v5877_v6  ;;  %v5994_v41 = vshrl.u32 %v1741_v54, 5  ;;  %v8086_v60 = vand.u32 2147483647, %v5693_v38 }
 0x227   :  { %v1912_v0 = vor.u32 4788187, %v1911_v1  ;;  %v960_v48 = vshll.u32 %v5984_v53, 30  ;;  %v8087_v13 = vmov 0  ;;  %v1915_v43 = vcvt.s32.f32 %v1908_v33 }
 0x228   :  { %vm5999_vm8 = vcmp.le.f32.partialorder %v8086_v60, 0.7853982  ;;  %v1744_v63 = vsub.s32 32, %v1743_v34  ;;  %v1746_v15 = vshll.u32 %v8048_v2, %v1743_v34  ;;  %v1749_v6 = vshll.u32 %v8032_v46, %v1743_v34  ;;  %v6006_v55 = vpop.eup %4580 }
 0x229   :  { %v8088_v13 = vsel %vm5999_vm8, 4294967295, %v8087_v13  ;;  %v1752_v8 = vshll.u32 %v8033_v12, %v1743_v34  ;;  %v1913_v61 = vand.u32 2147483647, %v1912_v0  ;;  %v6008_v57 = vsub.s32 %v957_v47, %v960_v48  ;;  %v6011_v18 = vpop.eup %4582 }
 0x22a   :  { %v1755_v3 = vshll.u32 %v8034_v50, %v1743_v34  ;;  %v1747_v17 = vshrl.u32 %v8032_v46, %v1744_v63  ;;  %v1750_v62 = vshrl.u32 %v8033_v12, %v1744_v63  ;;  %v1753_v1 = vshrl.u32 %v8034_v50, %v1744_v63 }
 0x22b   :  { %v1758_v54 = vshll.u32 %v8060_v45, %v1743_v34  ;;  %v1916_v60 = vmul.f32 %v1915_v43, %v1913_v61  ;;  %v963_v51 = vsub.s32 0, %v6008_v57  ;;  %v1756_v0 = vshrl.u32 %v8060_v45, %v1744_v63 }
 0x22c   :  { %v1759_v47 = vshrl.u32 %v8035_v59, %v1744_v63  ;;  %v1748_v33 = vor.u32 %v1747_v17, %v1746_v15  ;;  %v1751_v48 = vor.u32 %v1750_v62, %v1749_v6  ;;  %v1754_v7 = vor.u32 %v1753_v1, %v1752_v8 }
 0x22d   :  { %v1917_v16 = vxor.u32 2147483648, %v1916_v60  ;;  %v4083_v29 = vmin.u32 %v963_v51, %v6008_v57  ;;  %v1745_v12 = vshrl.u32 %v8048_v2, %v1744_v63  ;;  %v1757_v50 = vor.u32 %v1756_v0, %v1755_v3 }
 0x22e   :  { %v1760_v34 = vor.u32 %v1759_v47, %v1758_v54  ;;  %vm1763_vm2 = vcmp.lt.s32.totalorder %v5994_v41, 3  ;;  %vm1764_vm0 = vcmp.lt.s32.totalorder %v5994_v41, 4  ;;  %v6027_v15 = vpop.eup %4584  ;;  %vm8089_vm3 = vcmp.lt.s32.totalorder %v5693_v38, 0 }
 0x22f   :  { %v1918_v6 = vsel %vm8089_vm3, %v1917_v16, %v1916_v60  ;;  %v965_v8 = vclz %v4083_v29  ;;  %v1766_v51 = vsel %vm1764_vm0, %v1754_v7, 2102212464  ;;  %vm8090_vm10 = vcmp.lt.s32.totalorder %v5994_v41, 1 }
 0x230   :  { %v1769_v63 = vsel %vm8090_vm10, %v1748_v33, %v1751_v48  ;;  %v1770_v61 = vsel %vm1764_vm0, %v1757_v50, 920167782  ;;  %v8091_v43 = vxor.u32 2147483648, %v5334_v25  ;;  %vm8092_vm5 = vcmp.eq.s32.totalorder %v5982_v24, 0  ;;  %v6044_v29 = vpop.eup %4586  ;;  %vm8093_vm7 = vmmov %vm8090_vm10 }
 0x231   :  { %v1921_v16 = vsel %vm5999_vm8, %v5693_v38, %v1918_v6  ;;  %v4084_v17 = vadd.s32 4294967294, %v965_v8  ;;  %v1771_v62 = vsel %vm1763_vm2, %v1754_v7, %v1770_v61  ;;  %v1773_v1 = vsel %vm8090_vm10, %v1751_v48, %v1754_v7 }
 0x232   :  { %v371_v3 = vsel %vm8092_vm5, %v5329_v56, %v8091_v43  ;;  %v1765_v54 = vsel %vm8093_vm7, %v1745_v12, %v1748_v33  ;;  %v1767_v60 = vsel %vm1763_vm2, %v1751_v48, %v1766_v51  ;;  %vm8094_vm5 = vcmp.lt.s32.totalorder %v5994_v41, 2 }
 0x233   :  { %v1772_v0 = vsel %vm8094_vm5, %v1769_v63, %v1771_v62  ;;  %v1774_v47 = vsel %vm1764_vm0, %v1760_v34, 1326507024  ;;  %vm472_vm3 = vcmp.lt.s32.totalorder %v5990_v11, 2  ;;  %vm4085_vm8 = vcmp.lt.s32.totalorder %v4084_v17, 0  ;;  %vm8095_vm10 = vmmov %vm8094_vm5 }
 0x234   :  { %v1775_v6 = vsel %vm1763_vm2, %v1757_v50, %v1774_v47  ;;  %v6065_v7 = vmul.u32.u64.low %v5987_v23, %v1772_v0  ;;  %v6066_v8 = vmul.u32.u64.high %v5987_v23, %v1772_v0, %v6065_v7  ;;  %vm469_vm7 = vweird.f32 %v4789_v21  ;;  %vm8096_vm0 = vmmov %vm8095_vm10 }
 0x235   :  { %4588 = vcosq.f32 %v1921_v16  ;;  %v968_v12 = vsel %vm4085_vm8, 0, %v4084_v17  ;;  %v1776_v33 = vsel %vm8095_vm10, %v1773_v1, %v1775_v6  ;;  %vm372_vm5 = vcmp.eq.s32.totalorder %v5982_v24, 2 }
 0x236   :  { %v969_v48 = vsub.s32 32, %v968_v12  ;;  %v973_v34 = vsub.s32 4294967266, %v968_v12  ;;  %v1768_v51 = vsel %vm8096_vm0, %v1765_v54, %v1767_v60  ;;  %v8097_v50 = vxor.u32 2147483648, %v5329_v56 }
 0x237   :  { %v970_v61 = vshll.u32 %v6008_v57, %v968_v12  ;;  %v6079_v43 = vmul.u32.u64.low %v5987_v23, %v1776_v33  ;;  %v6080_v62 = vmul.u32.u64.high %v5987_v23, %v1776_v33, %v6079_v43  ;;  %vm8098_vm2 = vcmp.lt.s32.totalorder %v5982_v24, 2 }
 0x238   :  { %v374_v63 = vsel %vm372_vm5, %v8097_v50, %v5334_v25  ;;  %v971_v1 = vshrl.u32 %v5980_v44, %v969_v48  ;;  %v974_v0 = vadd.s32 127, %v973_v34  ;;  %v1787_v47 = vadd.s32 1, %v6066_v8 }
 0x239   :  { %v375_v17 = vsel %vm8098_vm2, %v371_v3, %v374_v63  ;;  %vm8099_vm8 = vweird.f32 %v4799_v28  ;;  %4590 = vsinq.f32 %v1921_v16  ;;  %vm8100_vm10 = vcmask 523264  }
 0x23a   :  { %v376_v41 = vsel %vm8099_vm8, nan, %v375_v17  ;;  %v8101_v56 = vxor.u32 2147483648, %v5171_v31  ;;  %vm8102_vm5 = vcmp.eq.s32.totalorder %v5990_v11, 0  ;;  %v477_v24 = vxor.u32 2147483648, %v5165_v14 }
 0x23b   :  { %4330 = vmatprep.mubr.msk.f32.mxu1 %vm8100_vm10, %v376_v41  ;;  %v567_v57 = vsub.s32 4, %v5305_v35  ;;  %v972_v44 = vor.u32 %v971_v1, %v970_v61  ;;  %v975_v3 = vshll.u32 %v974_v0, 23  ;;  %vm476_vm0 = vcmp.eq.s32.totalorder %v5990_v11, 2 }
 0x23c   :  { %v475_v25 = vsel %vm8102_vm5, %v5165_v14, %v8101_v56  ;;  %v671_v28 = vsub.s32 4, %v5144_v19  ;;  %v1784_v16 = vmul.u32 %v5987_v23, %v1768_v51  ;;  %vm1786_vm8 = vc.u32 %v6080_v62, %v6065_v7 }
 0x23d   :  { %v478_v54 = vsel %vm476_vm0, %v477_v24, %v5171_v31  ;;  %vm8103_vm10 = vcmp.lt.s32.totalorder %v5095_v49, 0  ;;  %v8104_v60 = vand.u32 2147483647, %v5699_v22  ;;  %v976_v12 = vor.u32 4788187, %v975_v3 }
 0x23e   :  { %v568_v14 = vsel %vm8103_vm10, %v567_v57, %v5305_v35  ;;  %v1788_v33 = vsel %vm1786_vm8, %v1787_v47, %v6066_v8  ;;  %v479_v23 = vsel %vm472_vm3, %v475_v25, %v478_v54  ;;  %vm573_vm2 = vweird.f32 %v5095_v49  ;;  %v8111_v25 = vld [vmem:[#allocation27_spill] sm:$0xff]  ;;  %v8112_v57 = vld [vmem:[#allocation34_spill] sm:$0xff] }
 0x23f   :  { %vm6107_vm5 = vcmp.le.f32.partialorder %v8104_v60, 0.7853982  ;;  %v578_v31 = vxor.u32 2147483648, %v5630_v26  ;;  %v1789_v48 = vadd.s32 %v1788_v33, %v1784_v16  ;;  %v480_v35 = vsel %vm469_vm7, nan, %v479_v23 }
 0x240   :  { %v570_v34 = vsel %vm5458_vm14, 0, %v568_v14  ;;  %vm8107_vm0 = vcmp.lt.s32.totalorder %v4892_v36, 0  ;;  %v977_v50 = vand.u32 2147483647, %v976_v12  ;;  %v979_v8 = vcvt.s32.f32 %v972_v44 }
 0x241   :  { %v672_v51 = vsel %vm8107_vm0, %v671_v28, %v5144_v19  ;;  %vm8108_vm8 = vcmask 523264   ;;  %v574_v11 = vadd.s32 3, %v570_v34  ;;  %v6127_v43 = vadd.s32 %v6065_v7, %v6080_v62  ;;  %v8110_v19 = vld [vmem:[#allocation28_spill] sm:$0xff] }
 0x242   :  { %4331 = vmatmul.mubr.msk.f32.vlgmr.msra.gmra.mxu1 %vm8108_vm8, %v480_v35  ;;  %v674_v61 = vsel %vm5259_vm12, 0, %v672_v51  ;;  %v1790_v21 = vadd.s32 536870912, %v1789_v48  ;;  %v581_v17 = vxor.u32 2147483648, %v5561_v42  ;;  %v980_v1 = vmul.f32 %v979_v8, %v977_v50  ;;  %v6136_v3 = vpop.eup %4588  ;;  %v8116_v35 = vld [vmem:[#allocation26_spill] sm:$0xff] }
 0x243   :  { %v678_v58 = vadd.s32 3, %v674_v61  ;;  %v575_v0 = vand.u32 3, %v574_v11  ;;  %v682_v47 = vxor.u32 2147483648, %v8110_v19  ;;  %v685_v24 = vxor.u32 2147483648, %v8111_v25  ;;  %v8118_v11 = vld [vmem:[#allocation19_spill] sm:$0xff] }
 0x244   :  { %v6132_v41 = vshrl.u32 %v1790_v21, 30  ;;  %v775_v44 = vsub.s32 4, %v8112_v57  ;;  %v981_v7 = vxor.u32 2147483648, %v980_v1  ;;  %vm8113_vm0 = vcmp.lt.s32.totalorder %v5699_v22, 0 }
 0x245   :  { %v679_v56 = vand.u32 3, %v678_v58  ;;  %vm576_vm12 = vcmp.lt.s32.totalorder %v575_v0, 2  ;;  %vm577_vm3 = vcmp.eq.s32.totalorder %v575_v0, 0  ;;  %vm580_vm7 = vcmp.eq.s32.totalorder %v575_v0, 2 }
 0x246   :  { %v1792_v62 = vshll.u32 %v6132_v41, 30  ;;  %v579_v28 = vsel %vm577_vm3, %v5561_v42, %v578_v31  ;;  %v582_v16 = vsel %vm580_vm7, %v581_v17, %v5630_v26  ;;  %v982_v54 = vsel %vm8113_vm0, %v981_v7, %v980_v1  ;;  %v6151_v23 = vpop.eup %4590 }
 0x247   :  { %vm680_vm10 = vcmp.lt.s32.totalorder %v679_v56, 2  ;;  %v583_v14 = vsel %vm576_vm12, %v579_v28, %v582_v16  ;;  %vm681_vm8 = vcmp.eq.s32.totalorder %v679_v56, 0  ;;  %vm684_vm14 = vcmp.eq.s32.totalorder %v679_v56, 2 }
 0x248   :  { %v985_v60 = vsel %vm6107_vm5, %v5699_v22, %v982_v54  ;;  %v6146_v12 = vsub.s32 %v1789_v48, %v1792_v62  ;;  %v584_v33 = vsel %vm573_vm2, nan, %v583_v14  ;;  %v683_v42 = vsel %vm681_vm8, %v8111_v25, %v682_v47 }
 0x249   :  { %4592 = vcosq.f32 %v985_v60  ;;  %vm8114_vm3 = vcmask 523264   ;;  %v686_v26 = vsel %vm684_vm14, %v685_v24, %v8110_v19  ;;  %vm8115_vm12 = vcmp.lt.s32.totalorder %v5308_v40, 0 }
 0x24a   :  { %4333 = vmatprep.mubr.msk.f32.mxu1 %vm8114_vm3, %v584_v33  ;;  %v776_v31 = vsel %vm8115_vm12, %v775_v44, %v8112_v57  ;;  %v879_v34 = vsub.s32 4, %v8116_v35  ;;  %4594 = vsinq.f32 %v985_v60  ;;  %v1795_v48 = vsub.s32 0, %v6146_v12  ;;  %vm8120_vm0 = vmmov %vm8114_vm3 }
 0x24b   :  { %v687_v49 = vsel %vm680_vm10, %v683_v42, %v686_v26  ;;  %v778_v51 = vsel %vm5809_vm9, 0, %v776_v31  ;;  %vm8117_vm2 = vweird.f32 %v4892_v36  ;;  %vm781_vm7 = vweird.f32 %v5308_v40  ;;  %v8126_v26 = vld [vmem:[#allocation12_spill] sm:$0xff] }
 0x24c   :  { %v688_v50 = vsel %vm8117_vm2, nan, %v687_v49  ;;  %v782_v8 = vadd.s32 3, %v778_v51  ;;  %vm8119_vm14 = vcmp.lt.s32.totalorder %v8118_v11, 0  ;;  %v4115_v61 = vmin.u32 %v1795_v48, %v6146_v12 }
 0x24d   :  { %v880_v63 = vsel %vm8119_vm14, %v879_v34, %v8116_v35  ;;  %4334 = vmatmul.mubr.msk.f32.gmra.mxu1 %vm8120_vm0, %v688_v50  ;;  %v786_v21 = vxor.u32 2147483648, %v5926_v5  ;;  %v789_v17 = vxor.u32 2147483648, %v5922_v20  ;;  %vm885_vm9 = vweird.f32 %v8118_v11 }
 0x24e   :  { %v882_v58 = vsel %vm5589_vm1, 0, %v880_v63  ;;  %v783_v36 = vand.u32 3, %v782_v8  ;;  %v983_v0 = vsub.s32 4, %v5984_v53  ;;  %v1797_v19 = vclz %v4115_v61 }
 0x24f   :  { %v886_v1 = vadd.s32 3, %v882_v58  ;;  %v890_v47 = vxor.u32 2147483648, %v5826_v30  ;;  %v893_v56 = vxor.u32 2147483648, %v5744_v27  ;;  %v1087_v25 = vsub.s32 4, %v5816_v32 }
 0x250   :  { %vm784_vm10 = vcmp.lt.s32.totalorder %v783_v36, 2  ;;  %vm785_vm8 = vcmp.eq.s32.totalorder %v783_v36, 0  ;;  %vm788_vm3 = vcmp.eq.s32.totalorder %v783_v36, 2  ;;  %v4116_v57 = vadd.s32 4294967294, %v1797_v19 }
 0x251   :  { %v887_v24 = vand.u32 3, %v886_v1  ;;  %v787_v44 = vsel %vm785_vm8, %v5922_v20, %v786_v21  ;;  %v790_v7 = vsel %vm788_vm3, %v789_v17, %v5926_v5  ;;  %vm8122_vm1 = vcmp.lt.s32.totalorder %v5699_v22, 0 }
 0x252   :  { %v984_v62 = vsel %vm8122_vm1, %v983_v0, %v5984_v53  ;;  %v791_v28 = vsel %vm784_vm10, %v787_v44, %v790_v7  ;;  %vm4117_vm0 = vcmp.lt.s32.totalorder %v4116_v57, 0  ;;  %vm8123_vm8 = vcmask 523264  }
 0x253   :  { %vm888_vm12 = vcmp.lt.s32.totalorder %v887_v24, 2  ;;  %vm889_vm2 = vcmp.eq.s32.totalorder %v887_v24, 0  ;;  %vm892_vm14 = vcmp.eq.s32.totalorder %v887_v24, 2  ;;  %v792_v16 = vsel %vm781_vm7, nan, %v791_v28  ;;  %vm8125_vm3 = vmmov %vm8123_vm8  ;;  %v8134_v28 = vld [vmem:[#allocation10_spill] sm:$0xff] }
 0x254   :  { %v891_v54 = vsel %vm889_vm2, %v5744_v27, %v890_v47  ;;  %v894_v14 = vsel %vm892_vm14, %v893_v56, %v5826_v30  ;;  %v1800_v60 = vsel %vm4117_vm0, 0, %v4116_v57  ;;  %4336 = vmatprep.mubr.msk.f32.mxu1 %vm8123_vm8, %v792_v16  ;;  %v986_v5 = vsel %vm6107_vm5, 0, %v984_v62 }
 0x255   :  { %v895_v20 = vsel %vm888_vm12, %v891_v54, %v894_v14  ;;  %vm8124_vm10 = vcmp.lt.s32.totalorder %v5565_v52, 0  ;;  %v1801_v33 = vsub.s32 32, %v1800_v60  ;;  %v1805_v42 = vsub.s32 4294967266, %v1800_v60 }
 0x256   :  { %v1088_v53 = vsel %vm8124_vm10, %v1087_v25, %v5816_v32  ;;  %v896_v40 = vsel %vm885_vm9, nan, %v895_v20  ;;  %vm989_vm7 = vweird.f32 %v5699_v22  ;;  %v990_v27 = vadd.s32 3, %v986_v5  ;;  %v4593_v32 = vpop.eup %4592  ;;  %v8136_v22 = vld [vmem:[#allocation22_spill] sm:$0xff] }
 0x257   :  { %4337 = vmatmul.mubr.msk.f32.gmra.mxu1 %vm8125_vm3, %v896_v40  ;;  %v1090_v30 = vsel %vm5952_vm11, 0, %v1088_v53  ;;  %vm1093_vm1 = vweird.f32 %v5565_v52  ;;  %v1098_v6 = vxor.u32 2147483648, %v6044_v29  ;;  %v1191_v31 = vsub.s32 4, %v8126_v26  ;;  %v4595_v51 = vpop.eup %4594  ;;  %v8141_v40 = vld [vmem:[#allocation24_spill] sm:$0xff] }
 0x258   :  { %v1802_v35 = vshll.u32 %v6146_v12, %v1800_v60  ;;  %v1803_v34 = vshrl.u32 %v6127_v43, %v1801_v33  ;;  %v1806_v48 = vadd.s32 127, %v1805_v42  ;;  %v1094_v49 = vadd.s32 3, %v1090_v30  ;;  %v8135_v60 = vld [vmem:[#allocation23_spill] sm:$0xff]  ;;  %v8140_v33 = vld [vmem:[#allocation21_spill] sm:$0xff] }
 0x259   :  { %v991_v50 = vand.u32 3, %v990_v27  ;;  %v997_v8 = vxor.u32 2147483648, %v4593_v32  ;;  %v1101_v11 = vxor.u32 2147483648, %v6027_v15  ;;  %vm8128_vm11 = vcmp.lt.s32.totalorder %v8127_v37, 0 }
 0x25a   :  { %v1192_v63 = vsel %vm8128_vm11, %v1191_v31, %v8126_v26  ;;  %v1804_v61 = vor.u32 %v1803_v34, %v1802_v35  ;;  %v1807_v21 = vshll.u32 %v1806_v48, 23  ;;  %v994_v17 = vxor.u32 2147483648, %v4595_v51  ;;  %v8143_v26 = vld [vmem:[#allocation14_spill] sm:$0xff] }
 0x25b   :  { %v1095_v4 = vand.u32 3, %v1094_v49  ;;  %vm1731_vm5 = vcmp.lt.s32.totalorder %v5899_v39, 0  ;;  %vm992_vm9 = vcmp.lt.s32.totalorder %v991_v50, 2  ;;  %vm993_vm12 = vcmp.eq.s32.totalorder %v991_v50, 0 }
 0x25c   :  { %vm996_vm2 = vcmp.eq.s32.totalorder %v991_v50, 2  ;;  %v1194_v12 = vsel %vm5227_vm6, 0, %v1192_v63  ;;  %v8130_v58 = vand.u32 2147483647, %v5899_v39  ;;  %v1808_v1 = vor.u32 4788187, %v1807_v21  ;;  %vm8133_vm6 = vmmov %vm8125_vm3 }
 0x25d   :  { %v1811_v0 = vcvt.s32.f32 %v1804_v61  ;;  %v995_v19 = vsel %vm993_vm12, %v4593_v32, %v994_v17  ;;  %v998_v47 = vsel %vm996_vm2, %v997_v8, %v4595_v51  ;;  %vm1096_vm0 = vcmp.lt.s32.totalorder %v1095_v4, 2  ;;  %v8144_v32 = vld [vmem:[#allocation38_spill] sm:$0xff]  ;;  %v8145_v50 = vld [vmem:[#allocation15_spill] sm:$0xff] }
 0x25e   :  { %vm6215_vm14 = vcmp.le.f32.partialorder %v8130_v58, 0.7853982  ;;  %v999_v56 = vsel %vm992_vm9, %v995_v19, %v998_v47  ;;  %vm1097_vm8 = vcmp.eq.s32.totalorder %v1095_v4, 0  ;;  %vm1100_vm10 = vcmp.eq.s32.totalorder %v1095_v4, 2  ;;  %v8150_v47 = vld [vmem:[#allocation16_spill] sm:$0xff] }
 0x25f   :  { %v1809_v25 = vand.u32 2147483647, %v1808_v1  ;;  %v1000_v24 = vsel %vm989_vm7, nan, %v999_v56  ;;  %v1099_v57 = vsel %vm1097_vm8, %v6027_v15, %v1098_v6  ;;  %v1102_v44 = vsel %vm1100_vm10, %v1101_v11, %v6044_v29  ;;  %vm8137_vm7 = vmmov %vm8133_vm6  ;;  %v8138_v29 = vld [vmem:[#allocation8_spill] sm:$0xff] }
 0x260   :  { %4339 = vmatprep.mubr.msk.f32.mxu1 %vm8133_vm6, %v1000_v24  ;;  %v1103_v7 = vsel %vm1096_vm0, %v1099_v57, %v1102_v44  ;;  %vm1197_vm3 = vweird.f32 %v8127_v37  ;;  %v1198_v62 = vadd.s32 3, %v1194_v12  ;;  %v1295_v16 = vsub.s32 4, %v8134_v28  ;;  %v8148_v12 = vld [vmem:[#allocation35_spill] sm:$0xff] }
 0x261   :  { %v1812_v54 = vmul.f32 %v1811_v0, %v1809_v25  ;;  %v1104_v14 = vsel %vm1093_vm1, nan, %v1103_v7  ;;  %v1202_v20 = vxor.u32 2147483648, %v8135_v60  ;;  %v1205_v5 = vxor.u32 2147483648, %v8136_v22  ;;  %v8152_v44 = vld [vmem:[#allocation11_spill] sm:$0xff] }
 0x262   :  { %4340 = vmatmul.mubr.msk.f32.gmra.mxu1 %vm8137_vm7, %v1104_v14  ;;  %v1199_v15 = vand.u32 3, %v1198_v62  ;;  %vm8139_vm11 = vcmp.lt.s32.totalorder %v8138_v29, 0  ;;  %v1306_v42 = vxor.u32 2147483648, %v8140_v33  ;;  %v1399_v27 = vsub.s32 4, %v8141_v40  ;;  %v8154_v62 = vld [vmem:[#allocation37_spill] sm:$0xff] }
 0x263   :  { %v1296_v53 = vsel %vm8139_vm11, %v1295_v16, %v8134_v28  ;;  %v1813_v30 = vxor.u32 2147483648, %v1812_v54  ;;  %v1309_v31 = vxor.u32 2147483648, %v8143_v26  ;;  %v1410_v35 = vxor.u32 2147483648, %v8144_v32 }
 0x264   :  { %v1298_v52 = vsel %vm5099_vm4, 0, %v1296_v53  ;;  %vm1200_vm1 = vcmp.lt.s32.totalorder %v1199_v15, 2  ;;  %vm1201_vm9 = vcmp.eq.s32.totalorder %v1199_v15, 0  ;;  %vm1204_vm12 = vcmp.eq.s32.totalorder %v1199_v15, 2  ;;  %vm8149_vm4 = vmmov %vm8133_vm6 }
 0x265   :  { %v1302_v34 = vadd.s32 3, %v1298_v52  ;;  %v1814_v48 = vsel %vm1731_vm5, %v1813_v30, %v1812_v54  ;;  %v1203_v49 = vsel %vm1201_vm9, %v8136_v22, %v1202_v20  ;;  %v1206_v51 = vsel %vm1204_vm12, %v1205_v5, %v8135_v60  ;;  %vm8151_vm11 = vmmov %vm8149_vm4  ;;  %v8157_v5 = vld [vmem:[#allocation30_spill] sm:$0xff] }
 0x266   :  { %vm8146_vm2 = vcmp.lt.s32.totalorder %v8145_v50, 0  ;;  %v1817_v11 = vsel %vm6215_vm14, %v5899_v39, %v1814_v48  ;;  %v1207_v63 = vsel %vm1200_vm1, %v1203_v49, %v1206_v51  ;;  %v1413_v58 = vxor.u32 2147483648, %v8148_v12 }
 0x267   :  { %v1400_v8 = vsel %vm8146_vm2, %v1399_v27, %v8141_v40  ;;  %v1303_v61 = vand.u32 3, %v1302_v34  ;;  %4596 = vcosq.f32 %v1817_v11  ;;  %v1208_v4 = vsel %vm1197_vm3, nan, %v1207_v63  ;;  %v8161_v40 = vld [vmem:[#allocation32_spill] sm:$0xff] }
 0x268   :  { %v1402_v17 = vsel %vm5541_vm13, 0, %v1400_v8  ;;  %4598 = vsinq.f32 %v1817_v11  ;;  %4342 = vmatprep.mubr.msk.f32.mxu1 %vm8149_vm4, %v1208_v4  ;;  %v1503_v56 = vsub.s32 4, %v8150_v47  ;;  %vm1301_vm13 = vweird.f32 %v8138_v29  ;;  %v8158_v29 = vld [vmem:[#allocation29_spill] sm:$0xff] }
 0x269   :  { %v1406_v43 = vadd.s32 3, %v1402_v17  ;;  %vm1304_vm0 = vcmp.lt.s32.totalorder %v1303_v61, 2  ;;  %vm1305_vm8 = vcmp.eq.s32.totalorder %v1303_v61, 0  ;;  %vm1308_vm10 = vcmp.eq.s32.totalorder %v1303_v61, 2 }
 0x26a   :  { %v1307_v1 = vsel %vm1305_vm8, %v8143_v26, %v1306_v42  ;;  %v1310_v0 = vsel %vm1308_vm10, %v1309_v31, %v8140_v33  ;;  %vm8153_vm1 = vcmp.lt.s32.totalorder %v8152_v44, 0  ;;  %v1607_v28 = vsub.s32 4, %v8154_v62  ;;  %v8159_v33 = vld [vmem:[#allocation40_spill] sm:$0xff] }
 0x26b   :  { %v1407_v19 = vand.u32 3, %v1406_v43  ;;  %v1311_v37 = vsel %vm1304_vm0, %v1307_v1, %v1310_v0  ;;  %v1504_v7 = vsel %vm8153_vm1, %v1503_v56, %v8150_v47  ;;  %vm1405_vm9 = vweird.f32 %v8145_v50  ;;  %v8164_v50 = vld [vmem:[#allocation36_spill] sm:$0xff]  ;;  %v8167_v1 = vld [vmem:[#allocation41_spill] sm:$0xff] }
 0x26c   :  { %v1312_v25 = vsel %vm1301_vm13, nan, %v1311_v37  ;;  %v1506_v14 = vsel %vm5410_vm15, 0, %v1504_v7  ;;  %vm1509_vm12 = vweird.f32 %v8152_v44  ;;  %vm8156_vm2 = vcmp.lt.s32.totalorder %v5429_v9, 0 }
 0x26d   :  { %vm1408_vm6 = vcmp.lt.s32.totalorder %v1407_v19, 2  ;;  %vm1409_vm3 = vcmp.eq.s32.totalorder %v1407_v19, 0  ;;  %vm1412_vm7 = vcmp.eq.s32.totalorder %v1407_v19, 2  ;;  %4343 = vmatmul.mubr.msk.f32.gmra.mxu1 %vm8151_vm11, %v1312_v25  ;;  %v1510_v20 = vadd.s32 3, %v1506_v14 }
 0x26e   :  { %v1411_v24 = vsel %vm1409_vm3, %v8148_v12, %v1410_v35  ;;  %v1414_v57 = vsel %vm1412_vm7, %v1413_v58, %v8144_v32  ;;  %v1608_v22 = vsel %vm8156_vm2, %v1607_v28, %v8154_v62  ;;  %v1514_v15 = vxor.u32 2147483648, %v8157_v5  ;;  %v8162_v32 = vld [vmem:[#allocation20_spill] sm:$0xff]  ;;  %vm8166_vm2 = vmmov %vm8149_vm4 }
 0x26f   :  { %v1415_v16 = vsel %vm1408_vm6, %v1411_v24, %v1414_v57  ;;  %v1517_v53 = vxor.u32 2147483648, %v8158_v29  ;;  %vm8160_vm0 = vnez %v8159_v33  ;;  %v1711_v27 = vsub.s32 4, %v8161_v40 }
 0x270   :  { %v1416_v60 = vsel %vm1405_vm9, nan, %v1415_v16  ;;  %v1610_v42 = vsel %vm8160_vm0, 0, %v1608_v22  ;;  %v1511_v30 = vand.u32 3, %v1510_v20  ;;  %vm1613_vm15 = vweird.f32 %v5429_v9 }
 0x271   :  { %4345 = vmatprep.mubr.msk.f32.mxu1 %vm8149_vm4, %v1416_v60  ;;  %v1614_v6 = vadd.s32 3, %v1610_v42  ;;  %v1815_v52 = vsub.s32 4, %v6132_v41  ;;  %v1618_v26 = vxor.u32 2147483648, %v6011_v18  ;;  %v1621_v31 = vxor.u32 2147483648, %v6006_v55 }
 0x272   :  { %vm8163_vm8 = vcmp.lt.s32.totalorder %v8162_v32, 0  ;;  %v1919_v34 = vsub.s32 4, %v5912_v10  ;;  %vm1512_vm10 = vcmp.lt.s32.totalorder %v1511_v30, 2  ;;  %vm1513_vm13 = vcmp.eq.s32.totalorder %v1511_v30, 0 }
 0x273   :  { %v1712_v35 = vsel %vm8163_vm8, %v1711_v27, %v8161_v40  ;;  %vm1516_vm6 = vcmp.eq.s32.totalorder %v1511_v30, 2  ;;  %v1615_v48 = vand.u32 3, %v1614_v6  ;;  %v1515_v49 = vsel %vm1513_vm13, %v8158_v29, %v1514_v15 }
 0x274   :  { %v1518_v51 = vsel %vm1516_vm6, %v1517_v53, %v8157_v5  ;;  %vm8165_vm3 = vnez %v8164_v50  ;;  %vm1717_vm7 = vweird.f32 %v8162_v32  ;;  %v1816_v11 = vsel %vm1731_vm5, %v1815_v52, %v6132_v41  ;;  %v4597_v63 = vpop.eup %4596  ;;  %v8168_v41 = vld [vmem:[#allocation39_spill] sm:$0xff]  ;;  %vm8172_vm6 = vmmov %vm8166_vm2 }
 0x275   :  { %v1714_v8 = vsel %vm8165_vm3, 0, %v1712_v35  ;;  %v1519_v61 = vsel %vm1512_vm10, %v1515_v49, %v1518_v51  ;;  %vm1616_vm11 = vcmp.lt.s32.totalorder %v1615_v48, 2  ;;  %vm1617_vm1 = vcmp.eq.s32.totalorder %v1615_v48, 0  ;;  %v4599_v21 = vpop.eup %4598 }
 0x276   :  { %vm1620_vm9 = vcmp.eq.s32.totalorder %v1615_v48, 2  ;;  %v1520_v17 = vsel %vm1509_vm12, nan, %v1519_v61  ;;  %v1619_v4 = vsel %vm1617_vm1, %v6006_v55, %v1618_v26  ;;  %v1718_v12 = vadd.s32 3, %v1714_v8  ;;  %vm8170_vm12 = vmmov %vm8166_vm2 }
 0x277   :  { %v1622_v43 = vsel %vm1620_vm9, %v1621_v31, %v6011_v18  ;;  %4346 = vmatmul.mubr.msk.f32.gmra.mxu1 %vm8166_vm2, %v1520_v17  ;;  %v1722_v0 = vxor.u32 2147483648, %v8167_v1  ;;  %v1725_v19 = vxor.u32 2147483648, %v8168_v41  ;;  %v1818_v47 = vsel %vm6215_vm14, 0, %v1816_v11  ;;  %vm8173_vm9 = vmmov %vm8166_vm2 }
 0x278   :  { %v1623_v58 = vsel %vm1616_vm11, %v1619_v4, %v1622_v43  ;;  %v1719_v37 = vand.u32 3, %v1718_v12  ;;  %v1822_v25 = vadd.s32 3, %v1818_v47  ;;  %vm8169_vm5 = vcmp.lt.s32.totalorder %v5693_v38, 0 }
 0x279   :  { %v1624_v56 = vsel %vm1613_vm15, nan, %v1623_v58  ;;  %v1920_v55 = vsel %vm8169_vm5, %v1919_v34, %v5912_v10  ;;  %v1826_v18 = vxor.u32 2147483648, %v4599_v21  ;;  %v1829_v24 = vxor.u32 2147483648, %v4597_v63  ;;  %vm8174_vm5 = vmmov %vm8172_vm6 }
 0x27a   :  { %4348 = vmatprep.mubr.msk.f32.mxu1 %vm8170_vm12, %v1624_v56  ;;  %vm8171_vm4 = vnez %v8088_v13  ;;  %v1930_v44 = vxor.u32 2147483648, %v6151_v23  ;;  %vm1721_vm0 = vcmp.eq.s32.totalorder %v1719_v37, 0  ;;  %vm1724_vm14 = vcmp.eq.s32.totalorder %v1719_v37, 2 }
 0x27b   :  { %v1922_v57 = vsel %vm8171_vm4, 0, %v1920_v55  ;;  %v1823_v36 = vand.u32 3, %v1822_v25  ;;  %v1933_v9 = vxor.u32 2147483648, %v6136_v3  ;;  %vm1720_vm15 = vcmp.lt.s32.totalorder %v1719_v37, 2 }
 0x27c   :  { %v1723_v7 = vsel %vm1721_vm0, %v8168_v41, %v1722_v0  ;;  %v1726_v62 = vsel %vm1724_vm14, %v1725_v19, %v8167_v1  ;;  %v1926_v10 = vadd.s32 3, %v1922_v57  ;;  %vm1821_vm3 = vweird.f32 %v5899_v39  ;;  %v6329_v39 = vld [vmem:[%s7850_s4] ss:$0 sm:$0xff] }
 0x27d   :  { %v1727_v28 = vsel %vm1720_vm15, %v1723_v7, %v1726_v62  ;;  %vm1824_vm8 = vcmp.lt.s32.totalorder %v1823_v36, 2  ;;  %vm1825_vm10 = vcmp.eq.s32.totalorder %v1823_v36, 0  ;;  %vm1828_vm13 = vcmp.eq.s32.totalorder %v1823_v36, 2 }
 0x27e   :  { %v1728_v13 = vsel %vm1717_vm7, nan, %v1727_v28  ;;  %v1827_v16 = vsel %vm1825_vm10, %v4597_v63, %v1826_v18  ;;  %v1830_v54 = vsel %vm1828_vm13, %v1829_v24, %v4599_v21  ;;  %v1927_v14 = vand.u32 3, %v1926_v10 }
 0x27f   :  { %4349 = vmatmul.mubr.msk.f32.gmra.mxu1 %vm8172_vm6, %v1728_v13  ;;  %v1831_v60 = vsel %vm1824_vm8, %v1827_v16, %v1830_v54  ;;  %vm1925_vm7 = vweird.f32 %v5693_v38  ;;  %v8175_v58 = vmov 2131351028   ;;  %v8176_v0 = vmov 2102212464  }
 0x280   :  { %v1832_v20 = vsel %vm1821_vm3, nan, %v1831_v60  ;;  %vm1929_vm11 = vcmp.eq.s32.totalorder %v1927_v14, 0  ;;  %vm1932_vm1 = vcmp.eq.s32.totalorder %v1927_v14, 2  ;;  %vm1928_vm2 = vcmp.lt.s32.totalorder %v1927_v14, 2 }
 0x281   :  { %4351 = vmatprep.mubr.msk.f32.mxu1 %vm8173_vm9, %v1832_v20  ;;  %v1931_v22 = vsel %vm1929_vm11, %v6136_v3, %v1930_v44  ;;  %v1934_v5 = vsel %vm1932_vm1, %v1933_v9, %v6151_v23 }
 0x282   :  { %v1935_v15 = vsel %vm1928_vm2, %v1931_v22, %v1934_v5 }
 0x283   :  { %v1936_v29 = vsel %vm1925_vm7, nan, %v1935_v15 }
 0x284   :  { %4352 = vmatmul.mubr.msk.f32.gmra.mxu1 %vm8174_vm5, %v1936_v29 }
 0x302   :  { %v4332_v53 = vpop.f32.mrf.mxu1 }
 0x303   :  { %v6332_v33 = vadd.f32 %v4332_v53, %v6329_v39 }
 0x304   :  { %v2067_v42 = vpop.f32.mrf.mxu1 }
 0x305   :  { %v2250_v3 = vand.u32 2147483647, %v6332_v33  ;;  %v2253_v23 = vand.u32 2139095040, %v6332_v33  ;;  %v6337_v38 = vadd.f32 %v6329_v39, %v2067_v42 }
 0x307   :  { %v2254_v40 = vshrl.u32 %v2253_v23, 23  ;;  %v2257_v27 = vand.u32 8388607, %v2250_v3  ;;  %v2146_v30 = vand.u32 2147483647, %v6337_v38  ;;  %v2149_v6 = vand.u32 2139095040, %v6337_v38 }
 0x309   :  { %v4143_v52 = vadd.s32 4294967169, %v2254_v40  ;;  %v2150_v26 = vshrl.u32 %v2149_v6, 23  ;;  %v2153_v31 = vand.u32 8388607, %v2146_v30  ;;  %v2258_v35 = vor.u32 8388608, %v2257_v27 }
 0x30b   :  { %v2260_v32 = vadd.s32 1, %v4143_v52  ;;  %v4139_v34 = vadd.s32 4294967169, %v2150_v26  ;;  %v2154_v48 = vor.u32 8388608, %v2153_v31  ;;  %v6348_v61 = vshll.u32 %v2258_v35, 8 }
 0x30d   :  { %vm2261_vm12 = vcmp.gt.s32.totalorder %v2260_v32, 0  ;;  %v4335_v49 = vpop.f32.mrf.mxu1  ;;  %v2156_v50 = vadd.s32 1, %v4139_v34  ;;  %v6350_v21 = vshll.u32 %v2154_v48, 8 }
 0x30e   :  { %v2262_v51 = vsel %vm2261_vm12, %v2260_v32, 0  ;;  %v6346_v8 = vadd.f32 %v4335_v49, %v6329_v39 }
 0x30f   :  { %v2263_v11 = vshrl.u32 %v2262_v51, 5  ;;  %v2264_v63 = vand.u32 31, %v2262_v51  ;;  %vm2157_vm4 = vcmp.gt.s32.totalorder %v2156_v50, 0 }
 0x310   :  { %v2458_v43 = vand.u32 2147483647, %v6346_v8  ;;  %v2158_v36 = vsel %vm2157_vm4, %v2156_v50, 0  ;;  %v2461_v15 = vand.u32 2139095040, %v6346_v8 }
 0x311   :  { %v2265_v17 = vsub.s32 32, %v2264_v63  ;;  %v2267_v4 = vshll.u32 %v8048_v2, %v2264_v63  ;;  %v2270_v12 = vshll.u32 %v8032_v46, %v2264_v63  ;;  %v2273_v1 = vshll.u32 %v8175_v58, %v2264_v63 }
 0x312   :  { %v2276_v41 = vshll.u32 %v8176_v0, %v2264_v63  ;;  %v2279_v19 = vshll.u32 %v8060_v45, %v2264_v63  ;;  %vm2282_vm0 = vcmp.lt.s32.totalorder %v2263_v11, 1  ;;  %vm2284_vm14 = vcmp.lt.s32.totalorder %v2263_v11, 3 }
 0x313   :  { %v2268_v47 = vshrl.u32 %v8032_v46, %v2265_v17  ;;  %v2271_v56 = vshrl.u32 %v8175_v58, %v2265_v17  ;;  %v2274_v37 = vshrl.u32 %v8176_v0, %v2265_v17  ;;  %v2266_v25 = vshrl.u32 %v8048_v2, %v2265_v17 }
 0x314   :  { %v2277_v55 = vshrl.u32 %v8060_v45, %v2265_v17  ;;  %v2280_v18 = vshrl.u32 %v8035_v59, %v2265_v17  ;;  %vm2285_vm15 = vcmp.lt.s32.totalorder %v2263_v11, 4  ;;  %v2160_v62 = vand.u32 31, %v2158_v36 }
 0x315   :  { %v2269_v24 = vor.u32 %v2268_v47, %v2267_v4  ;;  %v2272_v57 = vor.u32 %v2271_v56, %v2270_v12  ;;  %v2275_v44 = vor.u32 %v2274_v37, %v2273_v1  ;;  %vm2283_vm8 = vcmp.lt.s32.totalorder %v2263_v11, 2 }
 0x316   :  { %v2278_v9 = vor.u32 %v2277_v55, %v2276_v41  ;;  %v2281_v7 = vor.u32 %v2280_v18, %v2279_v19  ;;  %v2161_v20 = vsub.s32 32, %v2160_v62  ;;  %v2159_v23 = vshrl.u32 %v2158_v36, 5 }
 0x317   :  { %v2286_v10 = vsel %vm2282_vm0, %v2266_v25, %v2269_v24  ;;  %v2287_v28 = vsel %vm2285_vm15, %v2275_v44, 2102212464  ;;  %v2290_v13 = vsel %vm2282_vm0, %v2269_v24, %v2272_v57  ;;  %v2294_v16 = vsel %vm2282_vm0, %v2272_v57, %v2275_v44 }
 0x318   :  { %v2288_v54 = vsel %vm2284_vm14, %v2272_v57, %v2287_v28  ;;  %v2291_v14 = vsel %vm2285_vm15, %v2278_v9, 920167782  ;;  %v2295_v60 = vsel %vm2285_vm15, %v2281_v7, 1326507024  ;;  %v2163_v26 = vshll.u32 %v8048_v2, %v2160_v62 }
 0x319   :  { %v2292_v22 = vsel %vm2284_vm14, %v2275_v44, %v2291_v14  ;;  %v2296_v5 = vsel %vm2284_vm14, %v2278_v9, %v2295_v60  ;;  %v2289_v29 = vsel %vm2283_vm8, %v2286_v10, %v2288_v54  ;;  %v2164_v31 = vshrl.u32 %v8032_v46, %v2161_v20 }
 0x31a   :  { %v2293_v53 = vsel %vm2283_vm8, %v2290_v13, %v2292_v22  ;;  %v2297_v42 = vsel %vm2283_vm8, %v2294_v16, %v2296_v5  ;;  %v2166_v32 = vshll.u32 %v8032_v46, %v2160_v62  ;;  %v2167_v35 = vshrl.u32 %v8175_v58, %v2161_v20 }
 0x31b   :  { %v6373_v40 = vmul.u32.u64.low %v6348_v61, %v2297_v42  ;;  %v6374_v27 = vmul.u32.u64.high %v6348_v61, %v2297_v42, %v6373_v40  ;;  %v6377_v6 = vmul.u32.u64.low %v6348_v61, %v2293_v53  ;;  %v6378_v52 = vmul.u32.u64.high %v6348_v61, %v2293_v53, %v6377_v6  ;;  %v2077_v53 = vpop.f32.mrf.mxu1 }
 0x31c   :  { %v2169_v34 = vshll.u32 %v8175_v58, %v2160_v62  ;;  %v2170_v48 = vshrl.u32 %v8176_v0, %v2161_v20  ;;  %v2172_v49 = vshll.u32 %v8176_v0, %v2160_v62  ;;  %v2173_v51 = vshrl.u32 %v8060_v45, %v2161_v20 }
 0x31d   :  { %v2165_v50 = vor.u32 %v2164_v31, %v2163_v26  ;;  %v2168_v11 = vor.u32 %v2167_v35, %v2166_v32  ;;  %v2175_v63 = vshll.u32 %v8060_v45, %v2160_v62  ;;  %v2176_v17 = vshrl.u32 %v8035_v59, %v2161_v20 }
 0x31e   :  { %v2305_v4 = vmul.u32 %v6348_v61, %v2289_v29  ;;  %vm2307_vm10 = vc.u32 %v6374_v27, %v6377_v6  ;;  %v2308_v12 = vadd.s32 1, %v6378_v52  ;;  %v2171_v1 = vor.u32 %v2170_v48, %v2169_v34  ;;  %v4338_v34 = vpop.f32.mrf.mxu1 }
 0x31f   :  { %v2162_v41 = vshrl.u32 %v8048_v2, %v2161_v20  ;;  %v2174_v19 = vor.u32 %v2173_v51, %v2172_v49  ;;  %v2177_v47 = vor.u32 %v2176_v17, %v2175_v63  ;;  %vm2178_vm13 = vcmp.lt.s32.totalorder %v2159_v23, 1 }
 0x320   :  { %v2309_v56 = vsel %vm2307_vm10, %v2308_v12, %v6378_v52  ;;  %vm2180_vm6 = vcmp.lt.s32.totalorder %v2159_v23, 3  ;;  %vm2181_vm3 = vcmp.lt.s32.totalorder %v2159_v23, 4  ;;  %v2186_v37 = vsel %vm2178_vm13, %v2165_v50, %v2168_v11 }
 0x321   :  { %v2310_v25 = vadd.s32 %v2309_v56, %v2305_v4  ;;  %v2183_v55 = vsel %vm2181_vm3, %v2171_v1, 2102212464  ;;  %v2187_v18 = vsel %vm2181_vm3, %v2174_v19, 920167782  ;;  %v2190_v61 = vsel %vm2178_vm13, %v2168_v11, %v2171_v1 }
 0x322   :  { %vm2179_vm11 = vcmp.lt.s32.totalorder %v2159_v23, 2  ;;  %v2182_v24 = vsel %vm2178_vm13, %v2162_v41, %v2165_v50  ;;  %v2188_v57 = vsel %vm2180_vm6, %v2171_v1, %v2187_v18  ;;  %v2191_v44 = vsel %vm2181_vm3, %v2177_v47, 1326507024 }
 0x323   :  { %v2311_v36 = vadd.s32 536870912, %v2310_v25  ;;  %v2184_v9 = vsel %vm2180_vm6, %v2168_v11, %v2183_v55  ;;  %v2189_v7 = vsel %vm2179_vm11, %v2186_v37, %v2188_v57  ;;  %v2192_v62 = vsel %vm2180_vm6, %v2174_v19, %v2191_v44 }
 0x324   :  { %v2193_v10 = vsel %vm2179_vm11, %v2190_v61, %v2192_v62  ;;  %v6398_v28 = vmul.u32.u64.low %v6350_v21, %v2189_v7  ;;  %v6399_v13 = vmul.u32.u64.high %v6350_v21, %v2189_v7, %v6398_v28  ;;  %v2462_v60 = vshrl.u32 %v2461_v15, 23 }
 0x325   :  { %v6401_v16 = vshrl.u32 %v2311_v36, 30  ;;  %v6404_v54 = vmul.u32.u64.low %v6350_v21, %v2193_v10  ;;  %v6405_v14 = vmul.u32.u64.high %v6350_v21, %v2193_v10, %v6404_v54  ;;  %v2185_v20 = vsel %vm2179_vm11, %v2182_v24, %v2184_v9 }
 0x326   :  { %v4151_v5 = vadd.s32 4294967169, %v2462_v60  ;;  %v2465_v29 = vand.u32 8388607, %v2458_v43  ;;  %v2204_v42 = vadd.s32 1, %v6399_v13  ;;  %v2201_v40 = vmul.u32 %v6350_v21, %v2185_v20 }
 0x327   :  { %v2313_v22 = vshll.u32 %v6401_v16, 30  ;;  %vm2203_vm1 = vc.u32 %v6405_v14, %v6398_v28  ;;  %v6417_v15 = vadd.f32 %v6329_v39, %v2077_v53  ;;  %v2306_v21 = vadd.s32 %v6377_v6, %v6374_v27 }
 0x328   :  { %v2205_v52 = vsel %vm2203_vm1, %v2204_v42, %v6399_v13  ;;  %v2468_v26 = vadd.s32 1, %v4151_v5  ;;  %v2466_v35 = vor.u32 8388608, %v2465_v29  ;;  %v6425_v63 = vadd.f32 %v4338_v34, %v6329_v39 }
 0x329   :  { %v6411_v23 = vsub.s32 %v2310_v25, %v2313_v22  ;;  %v2206_v32 = vadd.s32 %v2205_v52, %v2201_v40  ;;  %v2354_v11 = vand.u32 2147483647, %v6417_v15  ;;  %v6428_v4 = vadd.s32 %v6398_v28, %v6405_v14 }
 0x32a   :  { %vm2469_vm9 = vcmp.gt.s32.totalorder %v2468_v26, 0  ;;  %8177 = vst [vmem:[#allocation18_spill] sm:$0xff] %v6425_v63  ;;  %v6432_v1 = vshll.u32 %v2466_v35, 8  ;;  %v2357_v27 = vand.u32 2139095040, %v6417_v15  ;;  %vm2252_vm15 = vcmp.lt.s32.totalorder %v6332_v33, 0 }
 0x32b   :  { %v2316_v31 = vsub.s32 0, %v6411_v23  ;;  %v2207_v49 = vadd.s32 536870912, %v2206_v32  ;;  %v2470_v51 = vsel %vm2469_vm9, %v2468_v26, 0  ;;  %vm6504_vm10 = vcmp.le.f32.partialorder %v2250_v3, 0.7853982 }
 0x32c   :  { %v2472_v50 = vand.u32 31, %v2470_v51  ;;  %v6434_v41 = vshrl.u32 %v2470_v51, 5  ;;  %v2358_v5 = vshrl.u32 %v2357_v27, 23  ;;  %vm7991_vm13 = vcmp.lt.s32.totalorder %v6337_v38, 0 }
 0x32d   :  { %v4144_v48 = vmin.u32 %v2316_v31, %v6411_v23  ;;  %v6430_v12 = vshrl.u32 %v2207_v49, 30  ;;  %vm6523_vm1 = vcmp.le.f32.partialorder %v2146_v30, 0.7853982 }
 0x32e   :  { %v2473_v19 = vsub.s32 32, %v2472_v50  ;;  %v2475_v47 = vshll.u32 %v8048_v2, %v2472_v50  ;;  %v2478_v37 = vshll.u32 %v8032_v46, %v2472_v50  ;;  %v2481_v25 = vshll.u32 %v8175_v58, %v2472_v50 }
 0x32f   :  { %v2318_v17 = vclz %v4144_v48  ;;  %v2209_v56 = vshll.u32 %v6430_v12, 30  ;;  %v2484_v24 = vshll.u32 %v8176_v0, %v2472_v50  ;;  %v2487_v10 = vshll.u32 %v8060_v45, %v2472_v50 }
 0x330   :  { %v2476_v55 = vshrl.u32 %v8032_v46, %v2473_v19  ;;  %v2479_v18 = vshrl.u32 %v8175_v58, %v2473_v19  ;;  %v2482_v61 = vshrl.u32 %v8176_v0, %v2473_v19  ;;  %v2485_v44 = vshrl.u32 %v8060_v45, %v2473_v19 }
 0x331   :  { %v4145_v6 = vadd.s32 4294967294, %v2318_v17  ;;  %v6445_v57 = vsub.s32 %v2206_v32, %v2209_v56  ;;  %v2488_v36 = vshrl.u32 %v8035_v59, %v2473_v19  ;;  %v2474_v60 = vshrl.u32 %v8048_v2, %v2473_v19  ;;  %v2087_v17 = vpop.f32.mrf.mxu1 }
 0x332   :  { %v2477_v7 = vor.u32 %v2476_v55, %v2475_v47  ;;  %v2480_v62 = vor.u32 %v2479_v18, %v2478_v37  ;;  %v2483_v14 = vor.u32 %v2482_v61, %v2481_v25  ;;  %v2486_v20 = vor.u32 %v2485_v44, %v2484_v24 }
 0x333   :  { %vm4146_vm2 = vcmp.lt.s32.totalorder %v4145_v6, 0  ;;  %v2212_v54 = vsub.s32 0, %v6445_v57  ;;  %v2489_v22 = vor.u32 %v2488_v36, %v2487_v10  ;;  %vm2490_vm7 = vcmp.lt.s32.totalorder %v6434_v41, 1 }
 0x334   :  { %v2321_v9 = vsel %vm4146_vm2, 0, %v4145_v6  ;;  %vm2491_vm5 = vcmp.lt.s32.totalorder %v6434_v41, 2  ;;  %vm2492_vm12 = vcmp.lt.s32.totalorder %v6434_v41, 3  ;;  %vm2493_vm4 = vcmp.lt.s32.totalorder %v6434_v41, 4 }
 0x335   :  { %v2322_v28 = vsub.s32 32, %v2321_v9  ;;  %v2326_v13 = vsub.s32 4294967266, %v2321_v9  ;;  %v2323_v29 = vshll.u32 %v6411_v23, %v2321_v9  ;;  %v4140_v40 = vmin.u32 %v2212_v54, %v6445_v57 }
 0x336   :  { %v2495_v31 = vsel %vm2493_vm4, %v2483_v14, 2102212464  ;;  %v2498_v32 = vsel %vm2490_vm7, %v2477_v7, %v2480_v62  ;;  %v2499_v35 = vsel %vm2493_vm4, %v2486_v20, 920167782  ;;  %v2502_v34 = vsel %vm2490_vm7, %v2480_v62, %v2483_v14 }
 0x337   :  { %v2324_v53 = vshrl.u32 %v2306_v21, %v2322_v28  ;;  %v2327_v42 = vadd.s32 127, %v2326_v13  ;;  %v2214_v26 = vclz %v4140_v40  ;;  %v2503_v48 = vsel %vm2493_vm4, %v2489_v22, 1326507024 }
 0x338   :  { %v4147_v23 = vadd.s32 4294967169, %v2358_v5  ;;  %v2494_v50 = vsel %vm2490_vm7, %v2474_v60, %v2477_v7  ;;  %v2496_v19 = vsel %vm2492_vm12, %v2480_v62, %v2495_v31  ;;  %v2500_v47 = vsel %vm2492_vm12, %v2483_v14, %v2499_v35  ;;  %v4341_v7 = vpop.f32.mrf.mxu1 }
 0x339   :  { %v2328_v52 = vshll.u32 %v2327_v42, 23  ;;  %v2325_v49 = vor.u32 %v2324_v53, %v2323_v29  ;;  %v4141_v21 = vadd.s32 4294967294, %v2214_v26  ;;  %v2504_v27 = vsel %vm2492_vm12, %v2486_v20, %v2503_v48 }
 0x33a   :  { %v2364_v6 = vadd.s32 1, %v4147_v23  ;;  %v2501_v37 = vsel %vm2491_vm5, %v2498_v32, %v2500_v47  ;;  %v2505_v25 = vsel %vm2491_vm5, %v2502_v34, %v2504_v27  ;;  %v2361_v9 = vand.u32 8388607, %v2354_v11 }
 0x33b   :  { %v2329_v51 = vor.u32 4788187, %v2328_v52  ;;  %vm4142_vm0 = vcmp.lt.s32.totalorder %v4141_v21, 0  ;;  %v6469_v18 = vmul.u32.u64.low %v6432_v1, %v2505_v25  ;;  %v6470_v61 = vmul.u32.u64.high %v6432_v1, %v2505_v25, %v6469_v18 }
 0x33c   :  { %v2217_v55 = vsel %vm4142_vm0, 0, %v4141_v21  ;;  %vm2365_vm14 = vcmp.gt.s32.totalorder %v2364_v6, 0  ;;  %v2332_v24 = vcvt.s32.f32 %v2325_v49  ;;  %v2497_v62 = vsel %vm2491_vm5, %v2494_v50, %v2496_v19  ;;  %v3814_v19 = vld [vmem:[%s7851_s5 + $0x20] sm:$0xff] }
 0x33d   :  { %v2330_v56 = vand.u32 2147483647, %v2329_v51  ;;  %v2218_v44 = vsub.s32 32, %v2217_v55  ;;  %v2222_v36 = vsub.s32 4294967266, %v2217_v55  ;;  %v2366_v13 = vsel %vm2365_vm14, %v2364_v6, 0 }
 0x33e   :  { %v6477_v10 = vmul.u32.u64.low %v6432_v1, %v2501_v37  ;;  %v6478_v28 = vmul.u32.u64.high %v6432_v1, %v2501_v37, %v6477_v10  ;;  %v2219_v14 = vshll.u32 %v6445_v57, %v2217_v55  ;;  %v2368_v22 = vand.u32 31, %v2366_v13 }
 0x33f   :  { %v2333_v54 = vmul.f32 %v2332_v24, %v2330_v56  ;;  %v2220_v60 = vshrl.u32 %v6428_v4, %v2218_v44  ;;  %v2223_v20 = vadd.s32 127, %v2222_v36  ;;  %v2666_v5 = vand.u32 2147483647, %v6425_v63 }
 0x340   :  { %v6486_v41 = vadd.f32 %v6329_v39, %v2087_v17  ;;  %v6489_v29 = vadd.f32 %v4341_v7, %v6329_v39  ;;  %vm2515_vm8 = vc.u32 %v6470_v61, %v6477_v10  ;;  %v2362_v57 = vor.u32 8388608, %v2361_v9 }
 0x341   :  { %v2221_v53 = vor.u32 %v2220_v60, %v2219_v14  ;;  %v2224_v42 = vshll.u32 %v2223_v20, 23  ;;  %v2513_v4 = vmul.u32 %v6432_v1, %v2497_v62  ;;  %v2516_v40 = vadd.s32 1, %v6478_v28 }
 0x342   :  { %8178 = vst [vmem:[#allocation28_spill] sm:$0xff] %v6486_v41  ;;  %8179 = vst [vmem:[#allocation27_spill] sm:$0xff] %v6489_v29  ;;  %v2369_v52 = vsub.s32 32, %v2368_v22  ;;  %v2669_v26 = vand.u32 2139095040, %v6425_v63  ;;  %v2334_v31 = vxor.u32 2147483648, %v2333_v54  ;;  %v2367_v35 = vshrl.u32 %v2366_v13, 5 }
 0x343   :  { %v2225_v32 = vor.u32 4788187, %v2224_v42  ;;  %v2371_v34 = vshll.u32 %v8048_v2, %v2368_v22  ;;  %v2228_v48 = vcvt.s32.f32 %v2221_v53  ;;  %v2517_v23 = vsel %vm2515_vm8, %v2516_v40, %v6478_v28 }
 0x344   :  { %v2372_v49 = vshrl.u32 %v8032_v46, %v2369_v52  ;;  %v2374_v51 = vshll.u32 %v8032_v46, %v2368_v22  ;;  %v2518_v50 = vadd.s32 %v2517_v23, %v2513_v4  ;;  %v2375_v1 = vshrl.u32 %v8175_v58, %v2369_v52 }
 0x345   :  { %v2226_v21 = vand.u32 2147483647, %v2225_v32  ;;  %v2377_v17 = vshll.u32 %v8175_v58, %v2368_v22  ;;  %v2378_v27 = vshrl.u32 %v8176_v0, %v2369_v52  ;;  %v2380_v6 = vshll.u32 %v8176_v0, %v2368_v22 }
 0x346   :  { %v2373_v47 = vor.u32 %v2372_v49, %v2371_v34  ;;  %v2381_v56 = vshrl.u32 %v8060_v45, %v2369_v52  ;;  %v2519_v25 = vadd.s32 536870912, %v2518_v50  ;;  %v2376_v55 = vor.u32 %v2375_v1, %v2374_v51 }
 0x347   :  { %v2229_v37 = vmul.f32 %v2228_v48, %v2226_v21  ;;  %v2402_v18 = vshll.u32 %v2362_v57, 8  ;;  %v2379_v24 = vor.u32 %v2378_v27, %v2377_v17  ;;  %v2383_v36 = vshll.u32 %v8060_v45, %v2368_v22 }
 0x348   :  { %v2382_v44 = vor.u32 %v2381_v56, %v2380_v6  ;;  %v2384_v3 = vshrl.u32 %v8035_v59, %v2369_v52  ;;  %v2335_v9 = vsel %vm2252_vm15, %v2334_v31, %v2333_v54  ;;  %v6516_v7 = vshrl.u32 %v2519_v25, 30 }
 0x349   :  { %vm2386_vm6 = vcmp.lt.s32.totalorder %v2367_v35, 1  ;;  %v2670_v62 = vshrl.u32 %v2669_v26, 23  ;;  %v2370_v28 = vshrl.u32 %v8048_v2, %v2369_v52  ;;  %vm2389_vm3 = vcmp.lt.s32.totalorder %v2367_v35, 4 }
 0x34a   :  { %v2385_v13 = vor.u32 %v2384_v3, %v2383_v36  ;;  %v2394_v14 = vsel %vm2386_vm6, %v2373_v47, %v2376_v55  ;;  %v2521_v60 = vshll.u32 %v6516_v7, 30  ;;  %vm2388_vm11 = vcmp.lt.s32.totalorder %v2367_v35, 3 }
 0x34b   :  { %v2391_v20 = vsel %vm2389_vm3, %v2379_v24, 2102212464  ;;  %v2395_v22 = vsel %vm2389_vm3, %v2382_v44, 920167782  ;;  %v2230_v53 = vxor.u32 2147483648, %v2229_v37  ;;  %vm2387_vm9 = vcmp.lt.s32.totalorder %v2367_v35, 2 }
 0x34c   :  { %v2396_v42 = vsel %vm2388_vm11, %v2379_v24, %v2395_v22  ;;  %v2398_v57 = vsel %vm2386_vm6, %v2376_v55, %v2379_v24  ;;  %v6528_v4 = vsub.s32 %v2518_v50, %v2521_v60  ;;  %v2390_v40 = vsel %vm2386_vm6, %v2370_v28, %v2373_v47 }
 0x34d   :  { %v2397_v52 = vsel %vm2387_vm9, %v2394_v14, %v2396_v42  ;;  %v2399_v26 = vsel %vm2389_vm3, %v2385_v13, 1326507024  ;;  %v2392_v31 = vsel %vm2388_vm11, %v2376_v55, %v2391_v20  ;;  %v6539_v30 = vsel %vm6504_vm10, %v6332_v33, %v2335_v9 }
 0x34e   :  { %v2400_v32 = vsel %vm2388_vm11, %v2382_v44, %v2399_v26  ;;  %v6532_v34 = vmul.u32.u64.low %v2402_v18, %v2397_v52  ;;  %v6533_v48 = vmul.u32.u64.high %v2402_v18, %v2397_v52, %v6532_v34  ;;  %v2524_v23 = vsub.s32 0, %v6528_v4 }
 0x34f   :  { %v2401_v49 = vsel %vm2387_vm9, %v2398_v57, %v2400_v32  ;;  %v4159_v51 = vadd.s32 4294967169, %v2670_v62  ;;  %v2673_v1 = vand.u32 8388607, %v2666_v5  ;;  %v7939_v17 = vand.u32 2147483647, %v6486_v41 }
 0x350   :  { %v6543_v21 = vmul.u32.u64.low %v2402_v18, %v2401_v49  ;;  %v6544_v50 = vmul.u32.u64.high %v2402_v18, %v2401_v49, %v6543_v21  ;;  %v4152_v47 = vmin.u32 %v2524_v23, %v6528_v4  ;;  %v2393_v27 = vsel %vm2387_vm9, %v2390_v40, %v2392_v31 }
 0x351   :  { %v2676_v6 = vadd.s32 1, %v4159_v51  ;;  %v2565_v56 = vand.u32 2139095040, %v6486_v41  ;;  %v2231_v25 = vsel %vm7991_vm13, %v2230_v53, %v2229_v37  ;;  %v2514_v55 = vadd.s32 %v6477_v10, %v6470_v61 }
 0x352   :  { %v2412_v24 = vadd.s32 1, %v6533_v48  ;;  %v2674_v44 = vor.u32 8388608, %v2673_v1  ;;  %v2526_v36 = vclz %v4152_v47  ;;  %v6559_v9 = vand.u32 8388607, %v7939_v17 }
 0x353   :  { %vm2677_vm2 = vcmp.gt.s32.totalorder %v2676_v6, 0  ;;  %v2566_v3 = vshrl.u32 %v2565_v56, 23  ;;  %4600 = vcosq.f32 %v6539_v30  ;;  %v2409_v35 = vmul.u32 %v2402_v18, %v2393_v27 }
 0x354   :  { %vm2411_vm7 = vc.u32 %v6544_v50, %v6532_v34  ;;  %v2678_v37 = vsel %vm2677_vm2, %v2676_v6, 0  ;;  %v6567_v61 = vsel %vm6523_vm1, %v6337_v38, %v2231_v25  ;;  %v4153_v10 = vadd.s32 4294967294, %v2526_v36 }
 0x355   :  { %v2413_v62 = vsel %vm2411_vm7, %v2412_v24, %v6533_v48  ;;  %v2680_v28 = vand.u32 31, %v2678_v37  ;;  %v2679_v14 = vshrl.u32 %v2678_v37, 5  ;;  %v6570_v60 = vshll.u32 %v2674_v44, 8 }
 0x356   :  { %v2414_v13 = vadd.s32 %v2413_v62, %v2409_v35  ;;  %v4155_v20 = vadd.s32 4294967169, %v2566_v3  ;;  %vm4154_vm5 = vcmp.lt.s32.totalorder %v4153_v10, 0  ;;  %v2570_v53 = vor.u32 8388608, %v6559_v9 }
 0x357   :  { %v2681_v18 = vsub.s32 32, %v2680_v28  ;;  %v2683_v22 = vshll.u32 %v8048_v2, %v2680_v28  ;;  %v2529_v42 = vsel %vm4154_vm5, 0, %v4153_v10  ;;  %v2686_v40 = vshll.u32 %v8032_v46, %v2680_v28 }
 0x358   :  { %v2415_v57 = vadd.s32 536870912, %v2414_v13  ;;  %v2689_v52 = vshll.u32 %v8175_v58, %v2680_v28  ;;  %v2530_v26 = vsub.s32 32, %v2529_v42  ;;  %v2531_v31 = vshll.u32 %v6528_v4, %v2529_v42 }
 0x359   :  { %v2534_v32 = vsub.s32 4294967266, %v2529_v42  ;;  %v2692_v48 = vshll.u32 %v8176_v0, %v2680_v28  ;;  %v2684_v49 = vshrl.u32 %v8032_v46, %v2681_v18  ;;  %v2687_v51 = vshrl.u32 %v8175_v58, %v2681_v18 }
 0x35a   :  { %v6578_v23 = vshrl.u32 %v2415_v57, 30  ;;  %v2690_v21 = vshrl.u32 %v8176_v0, %v2681_v18  ;;  %v2532_v1 = vshrl.u32 %v2514_v55, %v2530_v26  ;;  %v2693_v27 = vshrl.u32 %v8060_v45, %v2681_v18 }
 0x35b   :  { %v2535_v47 = vadd.s32 127, %v2534_v32  ;;  %v2695_v6 = vshll.u32 %v8060_v45, %v2680_v28  ;;  %v2685_v4 = vor.u32 %v2684_v49, %v2683_v22  ;;  %v2688_v25 = vor.u32 %v2687_v51, %v2686_v40 }
 0x35c   :  { %v2417_v56 = vshll.u32 %v6578_v23, 30  ;;  %v2691_v24 = vor.u32 %v2690_v21, %v2689_v52  ;;  %v2533_v44 = vor.u32 %v2532_v1, %v2531_v31  ;;  %v2694_v3 = vor.u32 %v2693_v27, %v2692_v48 }
 0x35d   :  { %v2536_v36 = vshll.u32 %v2535_v47, 23  ;;  %v2696_v35 = vshrl.u32 %v8035_v59, %v2681_v18  ;;  %v2682_v10 = vshrl.u32 %v8048_v2, %v2681_v18  ;;  %vm2698_vm12 = vcmp.lt.s32.totalorder %v2679_v14, 1 }
 0x35e   :  { %v6587_v37 = vsub.s32 %v2414_v13, %v2417_v56  ;;  %vm2700_vm4 = vcmp.lt.s32.totalorder %v2679_v14, 3  ;;  %v2540_v62 = vcvt.s32.f32 %v2533_v44  ;;  %vm2701_vm0 = vcmp.lt.s32.totalorder %v2679_v14, 4 }
 0x35f   :  { %v2537_v55 = vor.u32 4788187, %v2536_v36  ;;  %v2697_v42 = vor.u32 %v2696_v35, %v2695_v6  ;;  %v2702_v22 = vsel %vm2698_vm12, %v2682_v10, %v2685_v4  ;;  %v2703_v57 = vsel %vm2701_vm0, %v2691_v24, 2102212464 }
 0x360   :  { %v2420_v28 = vsub.s32 0, %v6587_v37  ;;  %v2706_v40 = vsel %vm2698_vm12, %v2685_v4, %v2688_v25  ;;  %v6591_v52 = vpop.eup %4600  ;;  %v2704_v31 = vsel %vm2700_vm4, %v2688_v25, %v2703_v57  ;;  %v2707_v13 = vsel %vm2701_vm0, %v2694_v3, 920167782 }
 0x361   :  { %v2538_v26 = vand.u32 2147483647, %v2537_v55  ;;  %v2710_v32 = vsel %vm2698_vm12, %v2688_v25, %v2691_v24  ;;  %vm2699_vm14 = vcmp.lt.s32.totalorder %v2679_v14, 2  ;;  %v2708_v48 = vsel %vm2700_vm4, %v2691_v24, %v2707_v13  ;;  %v2097_v55 = vpop.f32.mrf.mxu1 }
 0x362   :  { %v4148_v18 = vmin.u32 %v2420_v28, %v6587_v37  ;;  %v2711_v49 = vsel %vm2701_vm0, %v2697_v42, 1326507024  ;;  %v2705_v21 = vsel %vm2699_vm14, %v2702_v22, %v2704_v31  ;;  %v2709_v1 = vsel %vm2699_vm14, %v2706_v40, %v2708_v48 }
 0x363   :  { %v2541_v51 = vmul.f32 %v2540_v62, %v2538_v26  ;;  %v2712_v47 = vsel %vm2700_vm4, %v2694_v3, %v2711_v49  ;;  %v6598_v56 = vmul.u32.u64.low %v6570_v60, %v2709_v1  ;;  %v6599_v4 = vmul.u32.u64.high %v6570_v60, %v2709_v1, %v6598_v56 }
 0x364   :  { %v2422_v27 = vclz %v4148_v18  ;;  %v2713_v6 = vsel %vm2699_vm14, %v2710_v32, %v2712_v47  ;;  %v2572_v35 = vadd.s32 1, %v4155_v20  ;;  %4602 = vsinq.f32 %v6539_v30 }
 0x365   :  { %v2542_v44 = vxor.u32 2147483648, %v2541_v51  ;;  %v6603_v25 = vmul.u32.u64.low %v6570_v60, %v2713_v6  ;;  %v6604_v36 = vmul.u32.u64.high %v6570_v60, %v2713_v6, %v6603_v25  ;;  %vm7989_vm8 = vcmp.lt.s32.totalorder %v6346_v8, 0 }
 0x366   :  { %v4149_v24 = vadd.s32 4294967294, %v2422_v27  ;;  %v7938_v14 = vand.u32 2147483647, %v6489_v29  ;;  %4604 = vcosq.f32 %v6567_v61  ;;  %v2410_v3 = vadd.s32 %v6532_v34, %v6544_v50 }
 0x367   :  { %v2721_v10 = vmul.u32 %v6570_v60, %v2705_v21  ;;  %vm2573_vm6 = vcmp.gt.s32.totalorder %v2572_v35, 0  ;;  %v2724_v62 = vadd.s32 1, %v6599_v4  ;;  %v2877_v30 = vand.u32 2139095040, %v6489_v29 }
 0x368   :  { %vm4150_vm3 = vcmp.lt.s32.totalorder %v4149_v24, 0  ;;  %v2574_v20 = vsel %vm2573_vm6, %v2572_v35, 0  ;;  %v2543_v42 = vsel %vm7989_vm8, %v2542_v44, %v2541_v51  ;;  %vm2723_vm11 = vc.u32 %v6604_v36, %v6598_v56 }
 0x369   :  { %v2425_v28 = vsel %vm4150_vm3, 0, %v4149_v24  ;;  %v6621_v34 = vshll.u32 %v2570_v53, 8  ;;  %v6625_v22 = vand.u32 8388607, %v7938_v14  ;;  %v6628_v57 = vadd.f32 %v6329_v39, %v2097_v55 }
 0x36a   :  { %v2426_v50 = vsub.s32 32, %v2425_v28  ;;  %v2430_v60 = vsub.s32 4294967266, %v2425_v28  ;;  %v2427_v40 = vshll.u32 %v6587_v37, %v2425_v28  ;;  %v2725_v26 = vsel %vm2723_vm11, %v2724_v62, %v6599_v4 }
 0x36b   :  { %v2575_v31 = vshrl.u32 %v2574_v20, 5  ;;  %v2576_v13 = vand.u32 31, %v2574_v20  ;;  %v2726_v9 = vadd.s32 %v2725_v26, %v2721_v10  ;;  %v2878_v53 = vshrl.u32 %v2877_v30, 23 }
 0x36c   :  { %v2428_v32 = vshrl.u32 %v2410_v3, %v2426_v50  ;;  %v2431_v18 = vadd.s32 127, %v2430_v60  ;;  %vm6637_vm9 = vcmp.le.f32.partialorder %v2458_v43, 0.7853982  ;;  %v8184_v39 = vmov 0 }
 0x36d   :  { %v2577_v48 = vsub.s32 32, %v2576_v13  ;;  %v2579_v49 = vshll.u32 %v8048_v2, %v2576_v13  ;;  %v2582_v51 = vshll.u32 %v8032_v46, %v2576_v13  ;;  %v2585_v21 = vshll.u32 %v8175_v58, %v2576_v13 }
 0x36e   :  { %v8185_v39 = vsel %vm6637_vm9, 4294967295, %v8184_v39  ;;  %v2429_v37 = vor.u32 %v2428_v32, %v2427_v40  ;;  %v2432_v1 = vshll.u32 %v2431_v18, 23  ;;  %v2727_v47 = vadd.s32 536870912, %v2726_v9 }
 0x36f   :  { %8186 = vst [vmem:[#allocation34_spill] sm:$0xff] %v8185_v39  ;;  %v2588_v27 = vshll.u32 %v8176_v0, %v2576_v13  ;;  %v2578_v6 = vshrl.u32 %v8048_v2, %v2577_v48  ;;  %v2580_v4 = vshrl.u32 %v8032_v46, %v2577_v48  ;;  %v2583_v44 = vshrl.u32 %v8175_v58, %v2577_v48 }
 0x370   :  { %v2586_v25 = vshrl.u32 %v8176_v0, %v2577_v48  ;;  %vm7990_vm2 = vcmp.lt.s32.totalorder %v6417_v15, 0  ;;  %v2433_v35 = vor.u32 4788187, %v2432_v1  ;;  %v2436_v43 = vcvt.s32.f32 %v2429_v37 }
 0x371   :  { %v6647_v24 = vshrl.u32 %v2727_v47, 30  ;;  %v2589_v3 = vshrl.u32 %v8060_v45, %v2577_v48  ;;  %v2581_v10 = vor.u32 %v2580_v4, %v2579_v49  ;;  %v2584_v55 = vor.u32 %v2583_v44, %v2582_v51  ;;  %v6653_v40 = vpop.eup %4602 }
 0x372   :  { %v2587_v62 = vor.u32 %v2586_v25, %v2585_v21  ;;  %v2591_v20 = vshll.u32 %v8060_v45, %v2576_v13  ;;  %v2434_v30 = vand.u32 2147483647, %v2433_v35  ;;  %v2592_v60 = vshrl.u32 %v8035_v59, %v2577_v48 }
 0x373   :  { %8187 = vst [vmem:[#allocation26_spill] sm:$0xff] %v6647_v24  ;;  %v2729_v28 = vshll.u32 %v6647_v24, 30  ;;  %v2590_v50 = vor.u32 %v2589_v3, %v2588_v27  ;;  %vm2594_vm7 = vcmp.lt.s32.totalorder %v2575_v31, 1  ;;  %vm2595_vm5 = vcmp.lt.s32.totalorder %v2575_v31, 2  ;;  %v6655_v26 = vpop.eup %4604 }
 0x374   :  { %vm2596_vm12 = vcmp.lt.s32.totalorder %v2575_v31, 3  ;;  %vm2597_vm4 = vcmp.lt.s32.totalorder %v2575_v31, 4  ;;  %v2437_v32 = vmul.f32 %v2436_v43, %v2434_v30  ;;  %v2593_v49 = vor.u32 %v2592_v60, %v2591_v20 }
 0x375   :  { %v6657_v18 = vsub.s32 %v2726_v9, %v2729_v28  ;;  %v2598_v51 = vsel %vm2594_vm7, %v2578_v6, %v2581_v10  ;;  %v2599_v13 = vsel %vm2597_vm4, %v2587_v62, 2102212464  ;;  %v2602_v21 = vsel %vm2594_vm7, %v2581_v10, %v2584_v55 }
 0x376   :  { %v2603_v37 = vsel %vm2597_vm4, %v2590_v50, 920167782  ;;  %v2606_v1 = vsel %vm2594_vm7, %v2584_v55, %v2587_v62  ;;  %v2438_v48 = vxor.u32 2147483648, %v2437_v32  ;;  %v2600_v27 = vsel %vm2596_vm12, %v2584_v55, %v2599_v13 }
 0x377   :  { %v2732_v47 = vsub.s32 0, %v6657_v18  ;;  %v2604_v4 = vsel %vm2596_vm12, %v2587_v62, %v2603_v37  ;;  %v6667_v9 = vsel %vm6637_vm9, %v6346_v8, %v2543_v42  ;;  %v2607_v44 = vsel %vm2597_vm4, %v2593_v49, 1326507024 }
 0x378   :  { %v2605_v6 = vsel %vm2595_vm5, %v2602_v21, %v2604_v4  ;;  %v4167_v25 = vadd.s32 4294967169, %v2878_v53  ;;  %v2601_v43 = vsel %vm2595_vm5, %v2598_v51, %v2600_v27  ;;  %v2608_v3 = vsel %vm2596_vm12, %v2590_v50, %v2607_v44 }
 0x379   :  { %v4160_v35 = vmin.u32 %v2732_v47, %v6657_v18  ;;  %v2882_v10 = vor.u32 8388608, %v6625_v22  ;;  %v2439_v55 = vsel %vm7990_vm2, %v2438_v48, %v2437_v32  ;;  %v2609_v62 = vsel %vm2595_vm5, %v2606_v1, %v2608_v3 }
 0x37a   :  { %v6679_v42 = vmul.u32.u64.low %v6621_v34, %v2605_v6  ;;  %v6680_v20 = vmul.u32.u64.high %v6621_v34, %v2605_v6, %v6679_v42  ;;  %4606 = vsinq.f32 %v6567_v61  ;;  %vm6691_vm0 = vcmp.le.f32.partialorder %v2354_v11, 0.7853982 }
 0x37b   :  { %v2734_v53 = vclz %v4160_v35  ;;  %v6685_v30 = vmul.u32.u64.low %v6621_v34, %v2609_v62  ;;  %v6686_v28 = vmul.u32.u64.high %v6621_v34, %v2609_v62, %v6685_v30  ;;  %4608 = vcosq.f32 %v6667_v9 }
 0x37c   :  { %v2884_v31 = vadd.s32 1, %v4167_v25  ;;  %v6698_v50 = vsel %vm6691_vm0, %v6417_v15, %v2439_v55  ;;  %v2722_v61 = vadd.s32 %v6598_v56, %v6604_v36  ;;  %v2617_v32 = vmul.u32 %v6621_v34, %v2601_v43 }
 0x37d   :  { %v4161_v60 = vadd.s32 4294967294, %v2734_v53  ;;  %v2620_v49 = vadd.s32 1, %v6680_v20  ;;  %v6704_v51 = vshll.u32 %v2882_v10, 8  ;;  %v7941_v11 = vand.u32 2147483647, %v6628_v57 }
 0x37e   :  { %vm2885_vm14 = vcmp.gt.s32.totalorder %v2884_v31, 0  ;;  %vm2619_vm3 = vc.u32 %v6686_v28, %v6679_v42  ;;  %v2773_v21 = vand.u32 2139095040, %v6628_v57  ;;  %4610 = vsinq.f32 %v6667_v9 }
 0x37f   :  { %vm4162_vm6 = vcmp.lt.s32.totalorder %v4161_v60, 0  ;;  %v2886_v13 = vsel %vm2885_vm14, %v2884_v31, 0  ;;  %v2621_v56 = vsel %vm2619_vm3, %v2620_v49, %v6680_v20  ;;  %4612 = vcosq.f32 %v6698_v50 }
 0x380   :  { %v2737_v37 = vsel %vm4162_vm6, 0, %v4161_v60  ;;  %v2887_v36 = vshrl.u32 %v2886_v13, 5  ;;  %v2888_v1 = vand.u32 31, %v2886_v13  ;;  %v2622_v27 = vadd.s32 %v2621_v56, %v2617_v32 }
 0x381   :  { %v2738_v34 = vsub.s32 32, %v2737_v37  ;;  %v2739_v48 = vshll.u32 %v6657_v18, %v2737_v37  ;;  %v2742_v47 = vsub.s32 4294967266, %v2737_v37  ;;  %vm7950_vm4 = vcmp.lt.s32.totalorder %v6425_v63, 0 }
 0x382   :  { %v2889_v4 = vsub.s32 32, %v2888_v1  ;;  %v2891_v6 = vshll.u32 %v8048_v2, %v2888_v1  ;;  %v2894_v44 = vshll.u32 %v8032_v46, %v2888_v1  ;;  %v2897_v25 = vshll.u32 %v8175_v58, %v2888_v1 }
 0x383   :  { %v2740_v35 = vshrl.u32 %v2722_v61, %v2738_v34  ;;  %v2743_v43 = vadd.s32 127, %v2742_v47  ;;  %v2623_v3 = vadd.s32 536870912, %v2622_v27  ;;  %v2900_v10 = vshll.u32 %v8176_v0, %v2888_v1 }
 0x384   :  { %v2890_v55 = vshrl.u32 %v8048_v2, %v2889_v4  ;;  %v2892_v62 = vshrl.u32 %v8032_v46, %v2889_v4  ;;  %v2895_v18 = vshrl.u32 %v8175_v58, %v2889_v4  ;;  %v2898_v20 = vshrl.u32 %v8176_v0, %v2889_v4 }
 0x385   :  { %v2741_v53 = vor.u32 %v2740_v35, %v2739_v48  ;;  %v2744_v30 = vshll.u32 %v2743_v43, 23  ;;  %v6720_v31 = vshrl.u32 %v2623_v3, 30  ;;  %v2901_v60 = vshrl.u32 %v8060_v45, %v2889_v4 }
 0x386   :  { %v2893_v32 = vor.u32 %v2892_v62, %v2891_v6  ;;  %v2896_v61 = vor.u32 %v2895_v18, %v2894_v44  ;;  %v2899_v49 = vor.u32 %v2898_v20, %v2897_v25  ;;  %v2903_v13 = vshll.u32 %v8060_v45, %v2888_v1  ;;  %v4344_v44 = vpop.f32.mrf.mxu1 }
 0x387   :  { %v2745_v37 = vor.u32 4788187, %v2744_v30  ;;  %v2748_v56 = vcvt.s32.f32 %v2741_v53  ;;  %v2625_v34 = vshll.u32 %v6720_v31, 30  ;;  %v2902_v47 = vor.u32 %v2901_v60, %v2900_v10  ;;  %v6725_v14 = vpop.eup %4606 }
 0x388   :  { %v2904_v17 = vshrl.u32 %v8035_v59, %v2889_v4  ;;  %vm2906_vm11 = vcmp.lt.s32.totalorder %v2887_v36, 1  ;;  %vm2907_vm7 = vcmp.lt.s32.totalorder %v2887_v36, 2  ;;  %vm2908_vm5 = vcmp.lt.s32.totalorder %v2887_v36, 3  ;;  %v6728_v48 = vpop.eup %4608 }
 0x389   :  { %8190 = vst [vmem:[#allocation19_spill] sm:$0xff] %v6728_v48  ;;  %v2746_v35 = vand.u32 2147483647, %v2745_v37  ;;  %v6730_v6 = vsub.s32 %v2622_v27, %v2625_v34  ;;  %vm2909_vm12 = vcmp.lt.s32.totalorder %v2887_v36, 4  ;;  %v2910_v1 = vsel %vm2906_vm11, %v2890_v55, %v2893_v32 }
 0x38a   :  { %v2905_v25 = vor.u32 %v2904_v17, %v2903_v13  ;;  %v2911_v43 = vsel %vm2909_vm12, %v2899_v49, 2102212464  ;;  %v2914_v3 = vsel %vm2906_vm11, %v2893_v32, %v2896_v61  ;;  %v2915_v10 = vsel %vm2909_vm12, %v2902_v47, 920167782  ;;  %v6742_v17 = vld [vmem:[%s7850_s4] ss:$0 sm:$0xff] }
 0x38b   :  { %v2749_v62 = vmul.f32 %v2748_v56, %v2746_v35  ;;  %v2628_v4 = vsub.s32 0, %v6730_v6  ;;  %v2912_v18 = vsel %vm2908_vm5, %v2896_v61, %v2911_v43  ;;  %v2916_v20 = vsel %vm2908_vm5, %v2899_v49, %v2915_v10 }
 0x38c   :  { %v2917_v53 = vsel %vm2907_vm7, %v2914_v3, %v2916_v20  ;;  %v2918_v27 = vsel %vm2906_vm11, %v2896_v61, %v2899_v49  ;;  %v2919_v30 = vsel %vm2909_vm12, %v2905_v25, 1326507024  ;;  %v6745_v55 = vadd.f32 %v6742_v17, %v4344_v44 }
 0x38d   :  { %v4156_v60 = vmin.u32 %v2628_v4, %v6730_v6  ;;  %v2913_v32 = vsel %vm2907_vm7, %v2910_v1, %v2912_v18  ;;  %v2920_v13 = vsel %vm2908_vm5, %v2902_v47, %v2919_v30  ;;  %v2777_v37 = vand.u32 8388607, %v7941_v11 }
 0x38e   :  { %8191 = vst [vmem:[#allocation33_spill] sm:$0xff] %v6745_v55  ;;  %v2921_v61 = vsel %vm2907_vm7, %v2918_v27, %v2920_v13  ;;  %v6754_v49 = vmul.u32.u64.low %v6704_v51, %v2917_v53  ;;  %v6755_v56 = vmul.u32.u64.high %v6704_v51, %v2917_v53, %v6754_v49  ;;  %v2774_v34 = vshrl.u32 %v2773_v21, 23 }
 0x38f   :  { %v2750_v35 = vxor.u32 2147483648, %v2749_v62  ;;  %v2630_v44 = vclz %v4156_v60  ;;  %v6761_v25 = vmul.u32.u64.low %v6704_v51, %v2921_v61  ;;  %v6762_v1 = vmul.u32.u64.high %v6704_v51, %v2921_v61, %v6761_v25 }
 0x390   :  { %v4163_v47 = vadd.s32 4294967169, %v2774_v34  ;;  %v3085_v43 = vand.u32 2139095040, %v6745_v55  ;;  %v2618_v3 = vadd.s32 %v6679_v42, %v6686_v28  ;;  %v2929_v21 = vmul.u32 %v6704_v51, %v2913_v32 }
 0x391   :  { %v4157_v36 = vadd.s32 4294967294, %v2630_v44  ;;  %v2932_v10 = vadd.s32 1, %v6755_v56  ;;  %v2751_v18 = vsel %vm7950_vm4, %v2750_v35, %v2749_v62  ;;  %vm2931_vm6 = vc.u32 %v6762_v1, %v6754_v49 }
 0x392   :  { %v2780_v4 = vadd.s32 1, %v4163_v47  ;;  %v2778_v9 = vor.u32 8388608, %v2777_v37  ;;  %v3086_v27 = vshrl.u32 %v3085_v43, 23  ;;  %v7940_v51 = vand.u32 2147483647, %v6745_v55 }
 0x393   :  { %vm4158_vm14 = vcmp.lt.s32.totalorder %v4157_v36, 0  ;;  %v2933_v53 = vsel %vm2931_vm6, %v2932_v10, %v6755_v56  ;;  %4614 = vsinq.f32 %v6698_v50  ;;  %vm6782_vm11 = vcmp.le.f32.partialorder %v2666_v5, 0.7853982 }
 0x394   :  { %v2633_v20 = vsel %vm4158_vm14, 0, %v4157_v36  ;;  %vm2781_vm3 = vcmp.gt.s32.totalorder %v2780_v4, 0  ;;  %v2934_v28 = vadd.s32 %v2933_v53, %v2929_v21  ;;  %v8192_v62 = vmov 0 }
 0x395   :  { %v2634_v30 = vsub.s32 32, %v2633_v20  ;;  %v2638_v42 = vsub.s32 4294967266, %v2633_v20  ;;  %v8193_v62 = vsel %vm6782_vm11, 4294967295, %v8192_v62  ;;  %v2782_v32 = vsel %vm2781_vm3, %v2780_v4, 0 }
 0x396   :  { %8194 = vst [vmem:[#allocation12_spill] sm:$0xff] %v8193_v62  ;;  %v2635_v13 = vshll.u32 %v6730_v6, %v2633_v20  ;;  %v2935_v56 = vadd.s32 536870912, %v2934_v28  ;;  %v6790_v34 = vsel %vm6782_vm11, %v6425_v63, %v2751_v18  ;;  %v2784_v35 = vand.u32 31, %v2782_v32 }
 0x397   :  { %v2636_v37 = vshrl.u32 %v2618_v3, %v2634_v30  ;;  %v2639_v61 = vadd.s32 127, %v2638_v42  ;;  %v6792_v44 = vshll.u32 %v2778_v9, 8  ;;  %v4175_v50 = vadd.s32 4294967169, %v3086_v27  ;;  %v6808_v42 = vpop.eup %4610 }
 0x398   :  { %v6794_v47 = vshrl.u32 %v2935_v56, 30  ;;  %v6798_v36 = vand.u32 8388607, %v7940_v51  ;;  %v2783_v6 = vshrl.u32 %v2782_v32, 5  ;;  %v2785_v43 = vsub.s32 32, %v2784_v35  ;;  %8196 = vst [vmem:[#allocation17_spill] sm:$0xff] %v6808_v42  ;;  %v6814_v56 = vpop.eup %4612 }
 0x399   :  { %v2637_v25 = vor.u32 %v2636_v37, %v2635_v13  ;;  %v2640_v5 = vshll.u32 %v2639_v61, 23  ;;  %v2787_v3 = vshll.u32 %v8048_v2, %v2784_v35  ;;  %v2790_v21 = vshll.u32 %v8032_v46, %v2784_v35 }
 0x39a   :  { %8195 = vst [vmem:[#allocation9_spill] sm:$0xff] %v6794_v47  ;;  %v2937_v18 = vshll.u32 %v6794_v47, 30  ;;  %v2793_v9 = vshll.u32 %v8175_v58, %v2784_v35  ;;  %v2788_v20 = vshrl.u32 %v8032_v46, %v2785_v43  ;;  %v2791_v53 = vshrl.u32 %v8175_v58, %v2785_v43 }
 0x39b   :  { %v2641_v10 = vor.u32 4788187, %v2640_v5  ;;  %v2644_v4 = vcvt.s32.f32 %v2637_v25  ;;  %v2794_v27 = vshrl.u32 %v8176_v0, %v2785_v43  ;;  %v2796_v30 = vshll.u32 %v8176_v0, %v2784_v35 }
 0x39c   :  { %v6810_v13 = vsub.s32 %v2934_v28, %v2937_v18  ;;  %v2797_v37 = vshrl.u32 %v8060_v45, %v2785_v43  ;;  %v2799_v61 = vshll.u32 %v8060_v45, %v2784_v35  ;;  %v2789_v25 = vor.u32 %v2788_v20, %v2787_v3 }
 0x39d   :  { %v2642_v32 = vand.u32 2147483647, %v2641_v10  ;;  %v2792_v5 = vor.u32 %v2791_v53, %v2790_v21  ;;  %v2795_v51 = vor.u32 %v2794_v27, %v2793_v9  ;;  %v2800_v11 = vshrl.u32 %v8035_v59, %v2785_v43  ;;  %v2107_v9 = vpop.f32.mrf.mxu1 }
 0x39e   :  { %vm7964_vm7 = vcmp.lt.s32.totalorder %v6486_v41, 0  ;;  %v2940_v60 = vsub.s32 0, %v6810_v13  ;;  %v2798_v47 = vor.u32 %v2797_v37, %v2796_v30  ;;  %vm2802_vm5 = vcmp.lt.s32.totalorder %v2783_v6, 1 }
 0x39f   :  { %v3092_v10 = vadd.s32 1, %v4175_v50  ;;  %v2645_v28 = vmul.f32 %v2644_v4, %v2642_v32  ;;  %v2786_v18 = vshrl.u32 %v8048_v2, %v2785_v43  ;;  %v2801_v62 = vor.u32 %v2800_v11, %v2799_v61 }
 0x3a0   :  { %vm2805_vm12 = vcmp.lt.s32.totalorder %v2783_v6, 4  ;;  %v4168_v35 = vmin.u32 %v2940_v60, %v6810_v13  ;;  %vm2803_vm14 = vcmp.lt.s32.totalorder %v2783_v6, 2  ;;  %v2810_v21 = vsel %vm2802_vm5, %v2789_v25, %v2792_v5  ;;  %v6823_v30 = vpop.eup %4614 }
 0x3a1   :  { %v2807_v3 = vsel %vm2805_vm12, %v2795_v51, 2102212464  ;;  %vm2804_vm6 = vcmp.lt.s32.totalorder %v2783_v6, 3  ;;  %v2811_v20 = vsel %vm2805_vm12, %v2798_v47, 920167782  ;;  %v2814_v53 = vsel %vm2802_vm5, %v2792_v5, %v2795_v51 }
 0x3a2   :  { %v2815_v27 = vsel %vm2805_vm12, %v2801_v62, 1326507024  ;;  %v2942_v50 = vclz %v4168_v35  ;;  %v2806_v4 = vsel %vm2802_vm5, %v2786_v18, %v2789_v25  ;;  %v2808_v43 = vsel %vm2804_vm6, %v2792_v5, %v2807_v3 }
 0x3a3   :  { %v2812_v11 = vsel %vm2804_vm6, %v2795_v51, %v2811_v20  ;;  %v2646_v32 = vxor.u32 2147483648, %v2645_v28  ;;  %v2816_v37 = vsel %vm2804_vm6, %v2798_v47, %v2815_v27  ;;  %v6828_v61 = vadd.f32 %v6742_v17, %v2107_v9 }
 0x3a4   :  { %v2813_v60 = vsel %vm2803_vm14, %v2810_v21, %v2812_v11  ;;  %v4169_v63 = vadd.s32 4294967294, %v2942_v50  ;;  %v2817_v24 = vsel %vm2803_vm14, %v2814_v53, %v2816_v37  ;;  %v3090_v48 = vor.u32 8388608, %v6798_v36  ;;  %v4347_v21 = vpop.f32.mrf.mxu1 }
 0x3a5   :  { %8197 = vst [vmem:[#allocation10_spill] sm:$0xff] %v6828_v61  ;;  %vm3093_vm3 = vcmp.gt.s32.totalorder %v3092_v10, 0  ;;  %v2809_v62 = vsel %vm2803_vm14, %v2806_v4, %v2808_v43  ;;  %v6834_v35 = vmul.u32.u64.low %v6792_v44, %v2817_v24  ;;  %v6835_v25 = vmul.u32.u64.high %v6792_v44, %v2817_v24, %v6834_v35 }
 0x3a6   :  { %v3094_v51 = vsel %vm3093_vm3, %v3092_v10, 0  ;;  %v2930_v5 = vadd.s32 %v6754_v49, %v6762_v1  ;;  %vm4170_vm5 = vcmp.lt.s32.totalorder %v4169_v63, 0  ;;  %v6846_v36 = vsel %vm7964_vm7, %v2646_v32, %v2645_v28 }
 0x3a7   :  { %v6840_v47 = vmul.u32.u64.low %v6792_v44, %v2813_v60  ;;  %v6841_v18 = vmul.u32.u64.high %v6792_v44, %v2813_v60, %v6840_v47  ;;  %v2945_v6 = vsel %vm4170_vm5, 0, %v4169_v63  ;;  %v3096_v3 = vand.u32 31, %v3094_v51 }
 0x3a8   :  { %v2946_v24 = vsub.s32 32, %v2945_v6  ;;  %v2950_v9 = vsub.s32 4294967266, %v2945_v6  ;;  %v2825_v10 = vmul.u32 %v6792_v44, %v2809_v62  ;;  %v3095_v20 = vshrl.u32 %v3094_v51, 5 }
 0x3a9   :  { %v2947_v49 = vshll.u32 %v6810_v13, %v2945_v6  ;;  %vm2827_vm12 = vc.u32 %v6835_v25, %v6840_v47  ;;  %v3097_v1 = vsub.s32 32, %v3096_v3  ;;  %v6853_v53 = vshll.u32 %v3090_v48, 8 }
 0x3aa   :  { %v2948_v27 = vshrl.u32 %v2930_v5, %v2946_v24  ;;  %v2951_v28 = vadd.s32 127, %v2950_v9  ;;  %v2828_v63 = vadd.s32 1, %v6841_v18  ;;  %v3099_v50 = vshll.u32 %v8048_v2, %v3096_v3 }
 0x3ab   :  { %v3100_v4 = vshrl.u32 %v8032_v46, %v3097_v1  ;;  %v3102_v43 = vshll.u32 %v8032_v46, %v3096_v3  ;;  %v3103_v44 = vshrl.u32 %v8175_v58, %v3097_v1  ;;  %v3105_v13 = vshll.u32 %v8175_v58, %v3096_v3 }
 0x3ac   :  { %v2949_v11 = vor.u32 %v2948_v27, %v2947_v49  ;;  %v2952_v32 = vshll.u32 %v2951_v28, 23  ;;  %v2829_v60 = vsel %vm2827_vm12, %v2828_v63, %v6841_v18  ;;  %v3106_v48 = vshrl.u32 %v8176_v0, %v3097_v1 }
 0x3ad   :  { %v8198_v37 = vand.u32 2147483647, %v6486_v41  ;;  %v8199_v62 = vmov 0  ;;  %v2830_v35 = vadd.s32 %v2829_v60, %v2825_v10  ;;  %v3101_v51 = vor.u32 %v3100_v4, %v3099_v50 }
 0x3ae   :  { %v3104_v5 = vor.u32 %v3103_v44, %v3102_v43  ;;  %vm3114_vm6 = vcmp.lt.s32.totalorder %v3095_v20, 1  ;;  %v2953_v6 = vor.u32 4788187, %v2952_v32  ;;  %v3107_v24 = vor.u32 %v3106_v48, %v3105_v13 }
 0x3af   :  { %vm6865_vm14 = vcmp.le.f32.partialorder %v8198_v37, 0.7853982  ;;  %v3108_v9 = vshll.u32 %v8176_v0, %v3096_v3  ;;  %v3109_v49 = vshrl.u32 %v8060_v45, %v3097_v1  ;;  %vm7963_vm3 = vcmp.lt.s32.totalorder %v6489_v29, 0 }
 0x3b0   :  { %v8200_v62 = vsel %vm6865_vm14, 4294967295, %v8199_v62  ;;  %v2831_v18 = vadd.s32 536870912, %v2830_v35  ;;  %v3098_v27 = vshrl.u32 %v8048_v2, %v3097_v1  ;;  %v3111_v28 = vshll.u32 %v8060_v45, %v3096_v3 }
 0x3b1   :  { %8201 = vst [vmem:[#allocation23_spill] sm:$0xff] %v8200_v62  ;;  %v3112_v63 = vshrl.u32 %v8035_v59, %v3097_v1  ;;  %v2954_v37 = vand.u32 2147483647, %v2953_v6  ;;  %v2956_v10 = vcvt.s32.f32 %v2949_v11  ;;  %v3110_v50 = vor.u32 %v3109_v49, %v3108_v9 }
 0x3b2   :  { %vm3117_vm5 = vcmp.lt.s32.totalorder %v3095_v20, 4  ;;  %v6875_v4 = vshrl.u32 %v2831_v18, 30  ;;  %vm3115_vm12 = vcmp.lt.s32.totalorder %v3095_v20, 2  ;;  %vm3116_vm4 = vcmp.lt.s32.totalorder %v3095_v20, 3 }
 0x3b3   :  { %v3113_v43 = vor.u32 %v3112_v63, %v3111_v28  ;;  %v3119_v44 = vsel %vm3117_vm5, %v3107_v24, 2102212464  ;;  %v2957_v13 = vmul.f32 %v2956_v10, %v2954_v37  ;;  %v3122_v32 = vsel %vm3114_vm6, %v3101_v51, %v3104_v5 }
 0x3b4   :  { %8202 = vst [vmem:[#allocation22_spill] sm:$0xff] %v6875_v4  ;;  %v3123_v60 = vsel %vm3117_vm5, %v3110_v50, 920167782  ;;  %v2833_v3 = vshll.u32 %v6875_v4, 30  ;;  %v3118_v1 = vsel %vm3114_vm6, %v3098_v27, %v3101_v51  ;;  %v3126_v11 = vsel %vm3114_vm6, %v3104_v5, %v3107_v24 }
 0x3b5   :  { %v3124_v48 = vsel %vm3116_vm4, %v3107_v24, %v3123_v60  ;;  %v2958_v6 = vxor.u32 2147483648, %v2957_v13  ;;  %v3120_v9 = vsel %vm3116_vm4, %v3104_v5, %v3119_v44  ;;  %v3127_v18 = vsel %vm3117_vm5, %v3113_v43, 1326507024 }
 0x3b6   :  { %v3125_v49 = vsel %vm3115_vm12, %v3122_v32, %v3124_v48  ;;  %v6885_v28 = vsub.s32 %v2830_v35, %v2833_v3  ;;  %v3128_v63 = vsel %vm3116_vm4, %v3110_v50, %v3127_v18  ;;  %4616 = vcosq.f32 %v6790_v34 }
 0x3b7   :  { %v6888_v37 = vmul.u32.u64.low %v6853_v53, %v3125_v49  ;;  %v6889_v10 = vmul.u32.u64.high %v6853_v53, %v3125_v49, %v6888_v37  ;;  %v2650_v51 = vsel %vm6865_vm14, %v6486_v41, %v6846_v36  ;;  %v3129_v5 = vsel %vm3115_vm12, %v3126_v11, %v3128_v63 }
 0x3b8   :  { %v2981_v24 = vand.u32 2139095040, %v6828_v61  ;;  %v2836_v35 = vsub.s32 0, %v6885_v28  ;;  %v3121_v27 = vsel %vm3115_vm12, %v3118_v1, %v3120_v9  ;;  %v2959_v44 = vsel %vm7963_vm3, %v2958_v6, %v2957_v13 }
 0x3b9   :  { %v6902_v50 = vmul.u32.u64.low %v6853_v53, %v3129_v5  ;;  %v6903_v43 = vmul.u32.u64.high %v6853_v53, %v3129_v5, %v6902_v50  ;;  %v8203_v60 = vand.u32 2147483647, %v6828_v61  ;;  %v6910_v36 = vadd.f32 %v6742_v17, %v4347_v21 }
 0x3ba   :  { %v2982_v32 = vshrl.u32 %v2981_v24, 23  ;;  %4618 = vsinq.f32 %v6790_v34  ;;  %v4164_v48 = vmin.u32 %v2836_v35, %v6885_v28  ;;  %v3140_v20 = vadd.s32 1, %v6889_v10 }
 0x3bb   :  { %v2985_v3 = vand.u32 8388607, %v8203_v60  ;;  %8204 = vst [vmem:[#allocation8_spill] sm:$0xff] %v6910_v36  ;;  %v8205_v1 = vsub.s32 4, %v6401_v16  ;;  %4620 = vcosq.f32 %v2650_v51  ;;  %v8206_v13 = vand.u32 2147483647, %v6489_v29 }
 0x3bc   :  { %v8207_v6 = vmov 0  ;;  %v4171_v21 = vadd.s32 4294967169, %v2982_v32  ;;  %v2838_v9 = vclz %v4164_v48  ;;  %v3137_v49 = vmul.u32 %v6853_v53, %v3121_v27 }
 0x3bd   :  { %v6920_v11 = vsel %vm2252_vm15, %v8205_v1, %v6401_v16  ;;  %vm6924_vm4 = vcmp.le.f32.partialorder %v8206_v13, 0.7853982  ;;  %vm3139_vm15 = vc.u32 %v6903_v43, %v6888_v37  ;;  %v2986_v18 = vor.u32 8388608, %v2985_v3 }
 0x3be   :  { %v8208_v6 = vsel %vm6924_vm4, 4294967295, %v8207_v6  ;;  %v6931_v34 = vsel %vm6924_vm4, %v6489_v29, %v2959_v44  ;;  %v3141_v16 = vsel %vm3139_vm15, %v3140_v20, %v6889_v10  ;;  %v2988_v63 = vadd.s32 1, %v4171_v21 }
 0x3bf   :  { %8209 = vst [vmem:[#allocation21_spill] sm:$0xff] %v8208_v6  ;;  %v3293_v5 = vand.u32 2139095040, %v6910_v36  ;;  %4622 = vsinq.f32 %v2650_v51  ;;  %v4165_v24 = vadd.s32 4294967294, %v2838_v9  ;;  %v3142_v35 = vadd.s32 %v3141_v16, %v3137_v49 }
 0x3c0   :  { %4624 = vcosq.f32 %v6931_v34  ;;  %v2826_v53 = vadd.s32 %v6840_v47, %v6835_v25  ;;  %vm2989_vm6 = vcmp.gt.s32.totalorder %v2988_v63, 0  ;;  %v6945_v51 = vshll.u32 %v2986_v18, 8 }
 0x3c1   :  { %vm4166_vm5 = vcmp.lt.s32.totalorder %v4165_v24, 0  ;;  %v3143_v27 = vadd.s32 536870912, %v3142_v35  ;;  %v2990_v10 = vsel %vm2989_vm6, %v2988_v63, 0  ;;  %v3294_v3 = vshrl.u32 %v3293_v5, 23 }
 0x3c2   :  { %v2841_v32 = vsel %vm4166_vm5, 0, %v4165_v24  ;;  %v2992_v60 = vand.u32 31, %v2990_v10  ;;  %v2991_v13 = vshrl.u32 %v2990_v10, 5  ;;  %vm7970_vm3 = vcmp.lt.s32.totalorder %v6628_v57, 0 }
 0x3c3   :  { %v2842_v48 = vsub.s32 32, %v2841_v32  ;;  %v2846_v20 = vsub.s32 4294967266, %v2841_v32  ;;  %v6947_v1 = vshrl.u32 %v3143_v27, 30  ;;  %v2843_v21 = vshll.u32 %v6885_v28, %v2841_v32  ;;  %v6952_v49 = vpop.eup %4616 }
 0x3c4   :  { %v2993_v9 = vsub.s32 32, %v2992_v60  ;;  %v2995_v25 = vshll.u32 %v8048_v2, %v2992_v60  ;;  %v2998_v47 = vshll.u32 %v8032_v46, %v2992_v60  ;;  %8211 = vst [vmem:[#allocation13_spill] sm:$0xff] %v6952_v49  ;;  %v3001_v5 = vshll.u32 %v8175_v58, %v2992_v60 }
 0x3c5   :  { %8210 = vst [vmem:[#allocation24_spill] sm:$0xff] %v6947_v1  ;;  %v2844_v16 = vshrl.u32 %v2826_v53, %v2842_v48  ;;  %v2847_v63 = vadd.s32 127, %v2846_v20  ;;  %v3145_v18 = vshll.u32 %v6947_v1, 30  ;;  %v3004_v28 = vshll.u32 %v8176_v0, %v2992_v60 }
 0x3c6   :  { %v2996_v24 = vshrl.u32 %v8032_v46, %v2993_v9  ;;  %v2999_v27 = vshrl.u32 %v8175_v58, %v2993_v9  ;;  %v3002_v10 = vshrl.u32 %v8176_v0, %v2993_v9  ;;  %v3005_v6 = vshrl.u32 %v8060_v45, %v2993_v9 }
 0x3c7   :  { %v2845_v32 = vor.u32 %v2844_v16, %v2843_v21  ;;  %v2848_v50 = vshll.u32 %v2847_v63, 23  ;;  %v6960_v44 = vsub.s32 %v3142_v35, %v3145_v18  ;;  %v6963_v53 = vpop.eup %4618  ;;  %v4183_v29 = vadd.s32 4294967169, %v3294_v3 }
 0x3c8   :  { %8212 = vst [vmem:[#allocation14_spill] sm:$0xff] %v6963_v53  ;;  %v2997_v48 = vor.u32 %v2996_v24, %v2995_v25  ;;  %v3000_v20 = vor.u32 %v2999_v27, %v2998_v47  ;;  %v3003_v1 = vor.u32 %v3002_v10, %v3001_v5  ;;  %v6965_v4 = vpop.eup %4620  ;;  %v2994_v41 = vshrl.u32 %v8048_v2, %v2993_v9  ;;  %v2117_v5 = vpop.f32.mrf.mxu1 }
 0x3c9   :  { %8213 = vst [vmem:[#allocation38_spill] sm:$0xff] %v6965_v4  ;;  %v2849_v49 = vor.u32 4788187, %v2848_v50  ;;  %v3148_v62 = vsub.s32 0, %v6960_v44  ;;  %v3006_v42 = vor.u32 %v3005_v6, %v3004_v28  ;;  %v2852_v21 = vcvt.s32.f32 %v2845_v32 }
 0x3ca   :  { %v3007_v35 = vshll.u32 %v8060_v45, %v2992_v60  ;;  %v3008_v16 = vshrl.u32 %v8035_v59, %v2993_v9  ;;  %vm3010_vm12 = vcmp.lt.s32.totalorder %v2991_v13, 1  ;;  %vm3012_vm15 = vcmp.lt.s32.totalorder %v2991_v13, 3 }
 0x3cb   :  { %v2850_v63 = vand.u32 2147483647, %v2849_v49  ;;  %v4176_v25 = vmin.u32 %v3148_v62, %v6960_v44  ;;  %vm3013_vm6 = vcmp.lt.s32.totalorder %v2991_v13, 4  ;;  %v3018_v18 = vsel %vm3010_vm12, %v2997_v48, %v3000_v20 }
 0x3cc   :  { %v6972_v3 = vpop.eup %4622  ;;  %v3009_v47 = vor.u32 %v3008_v16, %v3007_v35  ;;  %v3015_v50 = vsel %vm3013_vm6, %v3003_v1, 2102212464  ;;  %v3019_v6 = vsel %vm3013_vm6, %v3006_v42, 920167782  ;;  %vm3011_vm5 = vcmp.lt.s32.totalorder %v2991_v13, 2 }
 0x3cd   :  { %8214 = vst [vmem:[#allocation15_spill] sm:$0xff] %v6972_v3  ;;  %v6977_v24 = vpop.eup %4624  ;;  %v3150_v60 = vclz %v4176_v25  ;;  %v3014_v9 = vsel %vm3010_vm12, %v2994_v41, %v2997_v48  ;;  %v3020_v62 = vsel %vm3012_vm15, %v3003_v1, %v3019_v6  ;;  %v3016_v49 = vsel %vm3012_vm15, %v3000_v20, %v3015_v50 }
 0x3ce   :  { %8215 = vst [vmem:[#allocation31_spill] sm:$0xff] %v6977_v24  ;;  %v3021_v27 = vsel %vm3011_vm5, %v3018_v18, %v3020_v62  ;;  %v3022_v10 = vsel %vm3010_vm12, %v3000_v20, %v3003_v1  ;;  %v3023_v28 = vsel %vm3013_vm6, %v3009_v47, 1326507024  ;;  %v2853_v32 = vmul.f32 %v2852_v21, %v2850_v63 }
 0x3cf   :  { %v4177_v35 = vadd.s32 4294967294, %v3150_v60  ;;  %v3024_v16 = vsel %vm3012_vm15, %v3006_v42, %v3023_v28  ;;  %v6988_v25 = vadd.f32 %v6742_v17, %v2117_v5  ;;  %v3300_v50 = vadd.s32 1, %v4183_v29 }
 0x3d0   :  { %v3025_v41 = vsel %vm3011_vm5, %v3022_v10, %v3024_v16  ;;  %v6992_v48 = vmul.u32.u64.low %v6945_v51, %v3021_v27  ;;  %v6993_v6 = vmul.u32.u64.high %v6945_v51, %v3021_v27, %v6992_v48  ;;  %v3017_v1 = vsel %vm3011_vm5, %v3014_v9, %v3016_v49 }
 0x3d1   :  { %vm4178_vm7 = vcmp.lt.s32.totalorder %v4177_v35, 0  ;;  %v6998_v20 = vmul.u32.u64.low %v6945_v51, %v3025_v41  ;;  %v6999_v21 = vmul.u32.u64.high %v6945_v51, %v3025_v41, %v6998_v20  ;;  %4626 = vsinq.f32 %v6931_v34 }
 0x3d2   :  { %v3153_v42 = vsel %vm4178_vm7, 0, %v4177_v35  ;;  %v8216_v63 = vand.u32 2147483647, %v6910_v36  ;;  %vm3301_vm12 = vcmp.gt.s32.totalorder %v3300_v50, 0  ;;  %v2854_v18 = vxor.u32 2147483648, %v2853_v32 }
 0x3d3   :  { %v3138_v5 = vadd.s32 %v6888_v37, %v6903_v43  ;;  %v3154_v60 = vsub.s32 32, %v3153_v42  ;;  %v3158_v29 = vsub.s32 4294967266, %v3153_v42  ;;  %v8217_v13 = vand.u32 2147483647, %v6628_v57 }
 0x3d4   :  { %v3297_v47 = vand.u32 8388607, %v8216_v63  ;;  %v3033_v62 = vmul.u32 %v6945_v51, %v3017_v1  ;;  %v3036_v34 = vadd.s32 1, %v6993_v6  ;;  %v3302_v49 = vsel %vm3301_vm12, %v3300_v50, 0 }
 0x3d5   :  { %vm7008_vm15 = vcmp.le.f32.partialorder %v8217_v13, 0.7853982  ;;  %v3155_v10 = vshll.u32 %v6960_v44, %v3153_v42  ;;  %v3156_v28 = vshrl.u32 %v3138_v5, %v3154_v60  ;;  %v3159_v35 = vadd.s32 127, %v3158_v29 }
 0x3d6   :  { %vm3035_vm7 = vc.u32 %v6999_v21, %v6992_v48  ;;  %v3298_v43 = vor.u32 8388608, %v3297_v47  ;;  %v3304_v16 = vand.u32 31, %v3302_v49  ;;  %v3189_v41 = vand.u32 2139095040, %v6988_v25 }
 0x3d7   :  { %v3037_v37 = vsel %vm3035_vm7, %v3036_v34, %v6993_v6  ;;  %v2855_v51 = vsel %vm7970_vm3, %v2854_v18, %v2853_v32  ;;  %v3157_v1 = vor.u32 %v3156_v28, %v3155_v10  ;;  %v3160_v50 = vshll.u32 %v3159_v35, 23 }
 0x3d8   :  { %v3038_v20 = vadd.s32 %v3037_v37, %v3033_v62  ;;  %v3303_v63 = vshrl.u32 %v3302_v49, 5  ;;  %v3305_v13 = vsub.s32 32, %v3304_v16  ;;  %v3307_v44 = vshll.u32 %v8048_v2, %v3304_v16 }
 0x3d9   :  { %v3310_v42 = vshll.u32 %v8032_v46, %v3304_v16  ;;  %v3161_v5 = vor.u32 4788187, %v3160_v50  ;;  %v3164_v60 = vcvt.s32.f32 %v3157_v1  ;;  %v3313_v6 = vshll.u32 %v8175_v58, %v3304_v16 }
 0x3da   :  { %v3039_v29 = vadd.s32 536870912, %v3038_v20  ;;  %v3308_v47 = vshrl.u32 %v8032_v46, %v3305_v13  ;;  %v3311_v34 = vshrl.u32 %v8175_v58, %v3305_v13  ;;  %v3314_v32 = vshrl.u32 %v8176_v0, %v3305_v13 }
 0x3db   :  { %v3316_v18 = vshll.u32 %v8176_v0, %v3304_v16  ;;  %vm7987_vm6 = vcmp.lt.s32.totalorder %v6745_v55, 0  ;;  %v3162_v62 = vand.u32 2147483647, %v3161_v5  ;;  %v3317_v10 = vshrl.u32 %v8060_v45, %v3305_v13 }
 0x3dc   :  { %v7030_v49 = vshrl.u32 %v3039_v29, 30  ;;  %v3319_v28 = vshll.u32 %v8060_v45, %v3304_v16  ;;  %v3309_v35 = vor.u32 %v3308_v47, %v3307_v44  ;;  %v3312_v37 = vor.u32 %v3311_v34, %v3310_v42 }
 0x3dd   :  { %v3315_v1 = vor.u32 %v3314_v32, %v3313_v6  ;;  %v3320_v50 = vshrl.u32 %v8035_v59, %v3305_v13  ;;  %v2858_v27 = vsel %vm7008_vm15, %v6628_v57, %v2855_v51  ;;  %v3165_v24 = vmul.f32 %v3164_v60, %v3162_v62 }
 0x3de   :  { %8220 = vst [vmem:[#allocation35_spill] sm:$0xff] %v7030_v49  ;;  %v3041_v53 = vshll.u32 %v7030_v49, 30  ;;  %v3318_v4 = vor.u32 %v3317_v10, %v3316_v18  ;;  %vm3325_vm5 = vcmp.lt.s32.totalorder %v3303_v63, 4  ;;  %v7039_v29 = vshll.u32 %v3298_v43, 8  ;;  %v7041_v39 = vpop.eup %4626 }
 0x3df   :  { %v3321_v5 = vor.u32 %v3320_v50, %v3319_v28  ;;  %v3190_v3 = vshrl.u32 %v3189_v41, 23  ;;  %8221 = vst [vmem:[#allocation16_spill] sm:$0xff] %v7041_v39  ;;  %v3306_v44 = vshrl.u32 %v8048_v2, %v3305_v13  ;;  %vm3322_vm12 = vcmp.lt.s32.totalorder %v3303_v63, 1 }
 0x3e0   :  { %v7043_v16 = vsub.s32 %v3038_v20, %v3041_v53  ;;  %v3327_v42 = vsel %vm3325_vm5, %v3315_v1, 2102212464  ;;  %v3166_v6 = vxor.u32 2147483648, %v3165_v24  ;;  %vm3324_vm7 = vcmp.lt.s32.totalorder %v3303_v63, 3  ;;  %v3817_v53 = vld [vmem:[%s7851_s5 + $0x38] sm:$0xff] }
 0x3e1   :  { %v3330_v51 = vsel %vm3322_vm12, %v3309_v35, %v3312_v37  ;;  %v3331_v60 = vsel %vm3325_vm5, %v3318_v4, 920167782  ;;  %vm3323_vm3 = vcmp.lt.s32.totalorder %v3303_v63, 2  ;;  %v3334_v34 = vsel %vm3322_vm12, %v3312_v37, %v3315_v1  ;;  %4354 = vmatprep.subr.mxu0 %v3817_v53 }
 0x3e2   :  { %v3044_v47 = vsub.s32 0, %v7043_v16  ;;  %v3332_v43 = vsel %vm3324_vm7, %v3315_v1, %v3331_v60  ;;  %v3326_v41 = vsel %vm3322_vm12, %v3306_v44, %v3309_v35  ;;  %v3328_v20 = vsel %vm3324_vm7, %v3312_v37, %v3327_v42  ;;  %4355 = vmatpush3.msra.mxu0 %v3817_v53  ;;  %v3816_v1 = vld [vmem:[%s7851_s5 + $0x30] sm:$0xff] }
 0x3e3   :  { %v3333_v13 = vsel %vm3323_vm3, %v3330_v51, %v3332_v43  ;;  %v3335_v32 = vsel %vm3325_vm5, %v3321_v5, 1326507024  ;;  %v4179_v10 = vadd.s32 4294967169, %v3190_v3  ;;  %v8222_v28 = vand.u32 2147483647, %v6988_v25  ;;  %4356 = vmatprep.subr.mxu0 %v3816_v1 }
 0x3e4   :  { %v4172_v18 = vmin.u32 %v3044_v47, %v7043_v16  ;;  %v3336_v62 = vsel %vm3324_vm7, %v3318_v4, %v3335_v32  ;;  %v3167_v35 = vsel %vm7987_vm6, %v3166_v6, %v3165_v24  ;;  %v3329_v3 = vsel %vm3323_vm3, %v3326_v41, %v3328_v20  ;;  %4357 = vmatpush3.msra.mxu0 %v3816_v1  ;;  %v3815_v24 = vld [vmem:[%s7851_s5 + $0x28] sm:$0xff]  ;;  %v4350_v41 = vpop.f32.mrf.mxu1 }
 0x3e5   :  { %v7057_v50 = vand.u32 8388607, %v8222_v28  ;;  %v3337_v37 = vsel %vm3323_vm3, %v3334_v34, %v3336_v62  ;;  %v7066_v5 = vmul.u32.u64.low %v7039_v29, %v3333_v13  ;;  %v7067_v44 = vmul.u32.u64.high %v7039_v29, %v3333_v13, %v7066_v5  ;;  %4358 = vmatprep.subr.mxu0 %v3815_v24  ;;  %v3813_v13 = vld [vmem:[%s7851_s5 + $0x18] sm:$0xff] }
 0x3e6   :  { %v3046_v4 = vclz %v4172_v18  ;;  %v7072_v42 = vmul.u32.u64.low %v7039_v29, %v3337_v37  ;;  %v7073_v51 = vmul.u32.u64.high %v7039_v29, %v3337_v37, %v7072_v42  ;;  %v8223_v6 = vsel %vm6504_vm10, 0, %v6920_v11  ;;  %4359 = vmatpush3.msra.mxu0 %v3815_v24 }
 0x3e7   :  { %v7082_v60 = vadd.s32 3, %v8223_v6  ;;  %4628 = vcosq.f32 %v2858_v27  ;;  %v3196_v47 = vadd.s32 1, %v4179_v10  ;;  %v8224_v63 = vand.u32 2147483647, %v6745_v55  ;;  %4360 = vmatprep.subr.mxu0 %v3814_v19 }
 0x3e8   :  { %4630 = vsinq.f32 %v2858_v27  ;;  %v8225_v43 = vmov 0  ;;  %v3034_v34 = vadd.s32 %v6992_v48, %v6999_v21  ;;  %v4173_v53 = vadd.s32 4294967294, %v3046_v4  ;;  %4361 = vmatpush3.msra.mxu0 %v3814_v19 }
 0x3e9   :  { %vm7086_vm3 = vcmp.le.f32.partialorder %v8224_v63, 0.7853982  ;;  %v3345_v27 = vmul.u32 %v7039_v29, %v3329_v3  ;;  %v3348_v20 = vadd.s32 1, %v7067_v44  ;;  %vm3197_vm10 = vcmp.gt.s32.totalorder %v3196_v47, 0  ;;  %4362 = vmatprep.subr.mxu0 %v3813_v13  ;;  %v3811_v63 = vld [vmem:[%s7851_s5 + $0x8] sm:$0xff] }
 0x3ea   :  { %v8226_v43 = vsel %vm7086_vm3, 4294967295, %v8225_v43  ;;  %v7098_v11 = vsel %vm7086_vm3, %v6745_v55, %v3167_v35  ;;  %vm4174_vm5 = vcmp.lt.s32.totalorder %v4173_v53, 0  ;;  %vm3347_vm12 = vc.u32 %v7073_v51, %v7066_v5  ;;  %4363 = vmatpush3.msra.mxu0 %v3813_v13  ;;  %v3810_v13 = vld [vmem:[%s7851_s5] sm:$0xff] }
 0x3eb   :  { %8227 = vst [vmem:[#allocation11_spill] sm:$0xff] %v8226_v43  ;;  %v3194_v48 = vor.u32 8388608, %v7057_v50  ;;  %v3198_v21 = vsel %vm3197_vm10, %v3196_v47, 0  ;;  %v3049_v32 = vsel %vm4174_vm5, 0, %v4173_v53  ;;  %v3349_v18 = vsel %vm3347_vm12, %v3348_v20, %v7067_v44  ;;  %v3812_v50 = vld [vmem:[%s7851_s5 + $0x10] sm:$0xff] }
 0x3ec   :  { %v3200_v29 = vand.u32 31, %v3198_v21  ;;  %v7110_v62 = vadd.f32 %v6742_v17, %v4350_v41  ;;  %v3050_v10 = vsub.s32 32, %v3049_v32  ;;  %v3054_v28 = vsub.s32 4294967266, %v3049_v32  ;;  %4364 = vmatprep.subr.mxu0 %v3812_v50 }
 0x3ed   :  { %v3350_v1 = vadd.s32 %v3349_v18, %v3345_v27  ;;  %v7112_v35 = vshrl.u32 %v3198_v21, 5  ;;  %v3051_v37 = vshll.u32 %v7043_v16, %v3049_v32  ;;  %4365 = vmatpush3.msra.mxu0 %v3812_v50  ;;  %4632 = vcosq.f32 %v7098_v11 }
 0x3ee   :  { %v3201_v4 = vsub.s32 32, %v3200_v29  ;;  %v3203_v44 = vshll.u32 %v8048_v2, %v3200_v29  ;;  %v3206_v3 = vshll.u32 %v8032_v46, %v3200_v29  ;;  %v3052_v42 = vshrl.u32 %v3034_v34, %v3050_v10  ;;  %4366 = vmatprep.subr.mxu0 %v3811_v63 }
 0x3ef   :  { %v3055_v24 = vadd.s32 127, %v3054_v28  ;;  %v3351_v6 = vadd.s32 536870912, %v3350_v1  ;;  %v3209_v47 = vshll.u32 %v8175_v58, %v3200_v29  ;;  %v3212_v19 = vshll.u32 %v8176_v0, %v3200_v29  ;;  %4367 = vmatpush3.msra.mxu0 %v3811_v63 }
 0x3f0   :  { %v3204_v53 = vshrl.u32 %v8032_v46, %v3201_v4  ;;  %v3207_v16 = vshrl.u32 %v8175_v58, %v3201_v4  ;;  %v3210_v41 = vshrl.u32 %v8176_v0, %v3201_v4  ;;  %v3053_v27 = vor.u32 %v3052_v42, %v3051_v37  ;;  %4368 = vmatprep.subr.mxu0 %v3810_v13 }
 0x3f1   :  { %v3056_v34 = vshll.u32 %v3055_v24, 23  ;;  %v7128_v20 = vshrl.u32 %v3351_v6, 30  ;;  %v3213_v21 = vshrl.u32 %v8060_v45, %v3201_v4  ;;  %v7134_v28 = vshll.u32 %v3194_v48, 8  ;;  %4369 = vmatpush3.msra.mxu0 %v3810_v13 }
 0x3f2   :  { %v3205_v32 = vor.u32 %v3204_v53, %v3203_v44  ;;  %v3208_v18 = vor.u32 %v3207_v16, %v3206_v3  ;;  %v3211_v10 = vor.u32 %v3210_v41, %v3209_v47  ;;  %v3202_v37 = vshrl.u32 %v8048_v2, %v3201_v4 }
 0x3f3   :  { %8228 = vst [vmem:[#allocation37_spill] sm:$0xff] %v7128_v20  ;;  %v3057_v50 = vor.u32 4788187, %v3056_v34  ;;  %v3353_v43 = vshll.u32 %v7128_v20, 30  ;;  %v3214_v42 = vor.u32 %v3213_v21, %v3212_v19  ;;  %v3060_v24 = vcvt.s32.f32 %v3053_v27 }
 0x3f4   :  { %v3215_v6 = vshll.u32 %v8060_v45, %v3200_v29  ;;  %v3216_v63 = vshrl.u32 %v8035_v59, %v3201_v4  ;;  %vm3218_vm7 = vcmp.lt.s32.totalorder %v7112_v35, 1  ;;  %v7141_v44 = vpop.eup %4628  ;;  %vm3220_vm10 = vcmp.lt.s32.totalorder %v7112_v35, 3  ;;  %v2127_v4 = vpop.f32.mrf.mxu1 }
 0x3f5   :  { %8229 = vst [vmem:[#allocation25_spill] sm:$0xff] %v7141_v44  ;;  %v3058_v3 = vand.u32 2147483647, %v3057_v50  ;;  %v7143_v48 = vsub.s32 %v3350_v1, %v3353_v43  ;;  %vm3221_vm5 = vcmp.lt.s32.totalorder %v7112_v35, 4  ;;  %v7147_v47 = vpop.eup %4630  ;;  %v3226_v29 = vsel %vm3218_vm7, %v3205_v32, %v3208_v18 }
 0x3f6   :  { %8230 = vst [vmem:[#allocation30_spill] sm:$0xff] %v7147_v47  ;;  %v3217_v53 = vor.u32 %v3216_v63, %v3215_v6  ;;  %v3223_v16 = vsel %vm3221_vm5, %v3211_v10, 2102212464  ;;  %v3227_v41 = vsel %vm3221_vm5, %v3214_v42, 920167782  ;;  %vm3219_vm12 = vcmp.lt.s32.totalorder %v7112_v35, 2 }
 0x3f7   :  { %v3061_v19 = vmul.f32 %v3060_v24, %v3058_v3  ;;  %v3356_v27 = vsub.s32 0, %v7143_v48  ;;  %v3228_v43 = vsel %vm3220_vm10, %v3211_v10, %v3227_v41  ;;  %v3230_v34 = vsel %vm3218_vm7, %v3208_v18, %v3211_v10  ;;  %v4353_v41 = vpop.f32.mrf.mxu1 }
 0x3f8   :  { %v3229_v1 = vsel %vm3219_vm12, %v3226_v29, %v3228_v43  ;;  %v3231_v21 = vsel %vm3221_vm5, %v3217_v53, 1326507024  ;;  %v3222_v24 = vsel %vm3218_vm7, %v3202_v37, %v3205_v32  ;;  %v3224_v6 = vsel %vm3220_vm10, %v3208_v18, %v3223_v16 }
 0x3f9   :  { %v4184_v50 = vmin.u32 %v3356_v27, %v7143_v48  ;;  %v3232_v63 = vsel %vm3220_vm10, %v3214_v42, %v3231_v21  ;;  %v3062_v3 = vxor.u32 2147483648, %v3061_v19  ;;  %v7178_v32 = vadd.f32 %v6742_v17, %v2127_v4 }
 0x3fa   :  { %v3233_v29 = vsel %vm3219_vm12, %v3230_v34, %v3232_v63  ;;  %v7170_v10 = vmul.u32.u64.low %v7134_v28, %v3229_v1  ;;  %v7171_v53 = vmul.u32.u64.high %v7134_v28, %v3229_v1, %v7170_v10  ;;  %v8231_v18 = vand.u32 2147483647, %v6828_v61 }
 0x3fb   :  { %v3358_v43 = vclz %v4184_v50  ;;  %v7174_v27 = vmul.u32.u64.low %v7134_v28, %v3233_v29  ;;  %v7175_v13 = vmul.u32.u64.high %v7134_v28, %v3233_v29, %v7174_v27  ;;  %v8232_v37 = vmov 0 }
 0x3fc   :  { %vm7183_vm7 = vcmp.le.f32.partialorder %v8231_v18, 0.7853982  ;;  %v3225_v42 = vsel %vm3219_vm12, %v3222_v24, %v3224_v6  ;;  %v3501_v16 = vand.u32 2139095040, %v7110_v62  ;;  %4634 = vsinq.f32 %v7098_v11 }
 0x3fd   :  { %v8233_v37 = vsel %vm7183_vm7, 4294967295, %v8232_v37  ;;  %vm7988_vm10 = vcmp.lt.s32.totalorder %v6828_v61, 0  ;;  %v4185_v1 = vadd.s32 4294967294, %v3358_v43  ;;  %v7193_v4 = vadd.f32 %v6742_v17, %v4353_v41 }
 0x3fe   :  { %8234 = vst [vmem:[#allocation29_spill] sm:$0xff] %v8233_v37  ;;  %v3063_v34 = vsel %vm7988_vm10, %v3062_v3, %v3061_v19  ;;  %v3244_v21 = vadd.s32 1, %v7171_v53  ;;  %v3502_v50 = vshrl.u32 %v3501_v16, 23  ;;  %v8235_v63 = vand.u32 2147483647, %v7110_v62  ;;  %v2137_v16 = vpop.f32.mrf.mxu1 }
 0x3ff   :  { %vm4186_vm5 = vcmp.lt.s32.totalorder %v4185_v1, 0  ;;  %v3241_v24 = vmul.u32 %v7134_v28, %v3225_v42  ;;  %vm3243_vm12 = vc.u32 %v7175_v13, %v7170_v10  ;;  %v3397_v11 = vand.u32 2139095040, %v7178_v32 }
 0x400   :  { %v3505_v35 = vand.u32 8388607, %v8235_v63  ;;  %v3346_v6 = vadd.s32 %v7066_v5, %v7073_v51  ;;  %v3361_v29 = vsel %vm4186_vm5, 0, %v4185_v1  ;;  %v3245_v41 = vsel %vm3243_vm12, %v3244_v21, %v7171_v53 }
 0x401   :  { %v4191_v19 = vadd.s32 4294967169, %v3502_v50  ;;  %v3066_v3 = vsel %vm7183_vm7, %v6828_v61, %v3063_v34  ;;  %v3362_v43 = vsub.s32 32, %v3361_v29  ;;  %v3366_v27 = vsub.s32 4294967266, %v3361_v29 }
 0x402   :  { %v3246_v18 = vadd.s32 %v3245_v41, %v3241_v24  ;;  %v3363_v28 = vshll.u32 %v7143_v48, %v3361_v29  ;;  %v3506_v42 = vor.u32 8388608, %v3505_v35  ;;  %v7976_v20 = vand.u32 2147483647, %v7178_v32 }
 0x403   :  { %v3508_v63 = vadd.s32 1, %v4191_v19  ;;  %v3364_v55 = vshrl.u32 %v3346_v6, %v3362_v43  ;;  %v3367_v5 = vadd.s32 127, %v3366_v27  ;;  %v3398_v1 = vshrl.u32 %v3397_v11, 23 }
 0x404   :  { %v3247_v51 = vadd.s32 536870912, %v3246_v18  ;;  %4636 = vcosq.f32 %v3066_v3  ;;  %v7212_v53 = vadd.f32 %v6742_v17, %v2137_v16  ;;  %v7218_v35 = vadd.s32 %v7170_v10, %v7175_v13 }
 0x405   :  { %vm3509_vm5 = vcmp.gt.s32.totalorder %v3508_v63, 0  ;;  %v3365_v21 = vor.u32 %v3364_v55, %v3363_v28  ;;  %v3368_v50 = vshll.u32 %v3367_v5, 23  ;;  %4638 = vsinq.f32 %v3066_v3  ;;  %v7228_v3 = vpop.eup %4632 }
 0x406   :  { %v7215_v24 = vshrl.u32 %v3247_v51, 30  ;;  %v3510_v48 = vsel %vm3509_vm5, %v3508_v63, 0  ;;  %v7220_v29 = vshll.u32 %v3506_v42, 8  ;;  %v4187_v19 = vadd.s32 4294967169, %v3398_v1  ;;  %8237 = vst [vmem:[#allocation32_spill] sm:$0xff] %v7228_v3 }
 0x407   :  { %v3512_v6 = vand.u32 31, %v3510_v48  ;;  %v3369_v11 = vor.u32 4788187, %v3368_v50  ;;  %v7225_v17 = vand.u32 8388607, %v7976_v20  ;;  %v3372_v55 = vcvt.s32.f32 %v3365_v21 }
 0x408   :  { %8236 = vst [vmem:[#allocation40_spill] sm:$0xff] %v7215_v24  ;;  %v3249_v41 = vshll.u32 %v7215_v24, 30  ;;  %v3511_v43 = vshrl.u32 %v3510_v48, 5  ;;  %vm8001_vm12 = vcmp.lt.s32.totalorder %v6910_v36, 0  ;;  %v8239_v49 = vand.u32 2147483647, %v6910_v36 }
 0x409   :  { %v3513_v27 = vsub.s32 32, %v3512_v6  ;;  %v3515_v16 = vshll.u32 %v8048_v2, %v3512_v6  ;;  %v3370_v13 = vand.u32 2147483647, %v3369_v11  ;;  %v3518_v28 = vshll.u32 %v8032_v46, %v3512_v6  ;;  %v7234_v63 = vpop.eup %4634 }
 0x40a   :  { %v7230_v10 = vsub.s32 %v3246_v18, %v3249_v41  ;;  %v3521_v42 = vshll.u32 %v8175_v58, %v3512_v6  ;;  %8238 = vst [vmem:[#allocation20_spill] sm:$0xff] %v7234_v63  ;;  %v3524_v21 = vshll.u32 %v8176_v0, %v3512_v6  ;;  %v3527_v48 = vshll.u32 %v8060_v45, %v3512_v6 }
 0x40b   :  { %v3516_v5 = vshrl.u32 %v8032_v46, %v3513_v27  ;;  %v3519_v51 = vshrl.u32 %v8175_v58, %v3513_v27  ;;  %v3522_v1 = vshrl.u32 %v8176_v0, %v3513_v27  ;;  %v3525_v18 = vshrl.u32 %v8060_v45, %v3513_v27 }
 0x40c   :  { %v3252_v50 = vsub.s32 0, %v7230_v10  ;;  %v3528_v11 = vshrl.u32 %v8035_v59, %v3513_v27  ;;  %v3373_v41 = vmul.f32 %v3372_v55, %v3370_v13  ;;  %v3402_v37 = vor.u32 8388608, %v7225_v17 }
 0x40d   :  { %v3517_v20 = vor.u32 %v3516_v5, %v3515_v16  ;;  %v3520_v34 = vor.u32 %v3519_v51, %v3518_v28  ;;  %v3523_v3 = vor.u32 %v3522_v1, %v3521_v42  ;;  %v3526_v63 = vor.u32 %v3525_v18, %v3524_v21 }
 0x40e   :  { %v4180_v24 = vmin.u32 %v3252_v50, %v7230_v10  ;;  %vm7250_vm5 = vcmp.le.f32.partialorder %v8239_v49, 0.7853982  ;;  %v8240_v39 = vmov 0  ;;  %v3529_v6 = vor.u32 %v3528_v11, %v3527_v48 }
 0x40f   :  { %v8241_v39 = vsel %vm7250_vm5, 4294967295, %v8240_v39  ;;  %vm3530_vm6 = vcmp.lt.s32.totalorder %v3511_v43, 1  ;;  %vm3533_vm10 = vcmp.lt.s32.totalorder %v3511_v43, 4  ;;  %v3404_v55 = vadd.s32 1, %v4187_v19 }
 0x410   :  { %8242 = vst [vmem:[#allocation36_spill] sm:$0xff] %v8241_v39  ;;  %v3254_v16 = vclz %v4180_v24  ;;  %v3535_v13 = vsel %vm3533_vm10, %v3523_v3, 2102212464  ;;  %v3538_v28 = vsel %vm3530_vm6, %v3517_v20, %v3520_v34  ;;  %v3709_v42 = vand.u32 2139095040, %v7193_v4 }
 0x411   :  { %v3374_v17 = vxor.u32 2147483648, %v3373_v41  ;;  %v3514_v5 = vshrl.u32 %v8048_v2, %v3513_v27  ;;  %vm3532_vm8 = vcmp.lt.s32.totalorder %v3511_v43, 3  ;;  %v3539_v49 = vsel %vm3533_vm10, %v3526_v63, 920167782  ;;  %v7259_v51 = vpop.eup %4636 }
 0x412   :  { %8243 = vst [vmem:[#allocation41_spill] sm:$0xff] %v7259_v51  ;;  %v4181_v1 = vadd.s32 4294967294, %v3254_v16  ;;  %vm3531_vm2 = vcmp.lt.s32.totalorder %v3511_v43, 2  ;;  %v3540_v21 = vsel %vm3532_vm8, %v3523_v3, %v3539_v49  ;;  %v3542_v19 = vsel %vm3530_vm6, %v3520_v34, %v3523_v3  ;;  %v7265_v11 = vpop.eup %4638 }
 0x413   :  { %v3534_v24 = vsel %vm3530_vm6, %v3514_v5, %v3517_v20  ;;  %v3536_v50 = vsel %vm3532_vm8, %v3520_v34, %v3535_v13  ;;  %v3541_v18 = vsel %vm3531_vm2, %v3538_v28, %v3540_v21  ;;  %v3543_v48 = vsel %vm3533_vm10, %v3529_v6, 1326507024  ;;  %8244 = vst [vmem:[#allocation39_spill] sm:$0xff] %v7265_v11 }
 0x414   :  { %vm4182_vm13 = vcmp.lt.s32.totalorder %v4181_v1, 0  ;;  %v3544_v27 = vsel %vm3532_vm8, %v3526_v63, %v3543_v48  ;;  %v7268_v61 = vmul.u32.u64.low %v7220_v29, %v3541_v18  ;;  %v7269_v44 = vmul.u32.u64.high %v7220_v29, %v3541_v18, %v7268_v61 }
 0x415   :  { %v3375_v16 = vsel %vm8001_vm12, %v3374_v17, %v3373_v41  ;;  %v3257_v3 = vsel %vm4182_vm13, 0, %v4181_v1  ;;  %v3545_v20 = vsel %vm3531_vm2, %v3542_v19, %v3544_v27  ;;  %vm3405_vm6 = vcmp.gt.s32.totalorder %v3404_v55, 0 }
 0x416   :  { %v3258_v34 = vsub.s32 32, %v3257_v3  ;;  %v3262_v13 = vsub.s32 4294967266, %v3257_v3  ;;  %v3537_v6 = vsel %vm3531_vm2, %v3534_v24, %v3536_v50  ;;  %v3406_v28 = vsel %vm3405_vm6, %v3404_v55, 0 }
 0x417   :  { %v7277_v5 = vmul.u32.u64.low %v7220_v29, %v3545_v20  ;;  %v7278_v63 = vmul.u32.u64.high %v7220_v29, %v3545_v20, %v7277_v5  ;;  %v3408_v49 = vand.u32 31, %v3406_v28  ;;  %v7280_v21 = vshll.u32 %v3402_v37, 8 }
 0x418   :  { %v7285_v41 = vsel %vm7250_vm5, %v6910_v36, %v3375_v16  ;;  %v3260_v17 = vshrl.u32 %v7218_v35, %v3258_v34  ;;  %v3263_v1 = vadd.s32 127, %v3262_v13  ;;  %v3556_v19 = vadd.s32 1, %v7269_v44 }
 0x419   :  { %v3259_v43 = vshll.u32 %v7230_v10, %v3257_v3  ;;  %v3553_v55 = vmul.u32 %v7220_v29, %v3537_v6  ;;  %v3409_v24 = vsub.s32 32, %v3408_v49  ;;  %v3710_v50 = vshrl.u32 %v3709_v42, 23 }
 0x41a   :  { %v3264_v18 = vshll.u32 %v3263_v1, 23  ;;  %v3407_v48 = vshrl.u32 %v3406_v28, 5  ;;  %v3411_v37 = vshll.u32 %v8048_v2, %v3408_v49  ;;  %v3414_v27 = vshll.u32 %v8032_v46, %v3408_v49 }
 0x41b   :  { %v3261_v20 = vor.u32 %v3260_v17, %v3259_v43  ;;  %vm3555_vm13 = vc.u32 %v7278_v63, %v7268_v61  ;;  %v3412_v35 = vshrl.u32 %v8032_v46, %v3409_v24  ;;  %v3417_v16 = vshll.u32 %v8175_v58, %v3408_v49 }
 0x41c   :  { %v3265_v34 = vor.u32 4788187, %v3264_v18  ;;  %v3557_v10 = vsel %vm3555_vm13, %v3556_v19, %v7269_v44  ;;  %v3415_v29 = vshrl.u32 %v8175_v58, %v3409_v24  ;;  %v3420_v42 = vshll.u32 %v8176_v0, %v3408_v49 }
 0x41d   :  { %v3558_v3 = vadd.s32 %v3557_v10, %v3553_v55  ;;  %v3413_v13 = vor.u32 %v3412_v35, %v3411_v37  ;;  %v3418_v6 = vshrl.u32 %v8176_v0, %v3409_v24  ;;  %v3421_v28 = vshrl.u32 %v8060_v45, %v3409_v24 }
 0x41e   :  { %v3266_v5 = vand.u32 2147483647, %v3265_v34  ;;  %v3416_v17 = vor.u32 %v3415_v29, %v3414_v27  ;;  %v3423_v1 = vshll.u32 %v8060_v45, %v3408_v49  ;;  %v3424_v43 = vshrl.u32 %v8035_v59, %v3409_v24 }
 0x41f   :  { %v3268_v39 = vcvt.s32.f32 %v3261_v20  ;;  %v3559_v18 = vadd.s32 536870912, %v3558_v3  ;;  %v3419_v36 = vor.u32 %v3418_v6, %v3417_v16  ;;  %v3422_v44 = vor.u32 %v3421_v28, %v3420_v42 }
 0x420   :  { %v3425_v19 = vor.u32 %v3424_v43, %v3423_v1  ;;  %vm3426_vm8 = vcmp.lt.s32.totalorder %v3407_v48, 1  ;;  %vm3429_vm2 = vcmp.lt.s32.totalorder %v3407_v48, 4  ;;  %v4199_v51 = vadd.s32 4294967169, %v3710_v50 }
 0x421   :  { %v3269_v55 = vmul.f32 %v3268_v39, %v3266_v5  ;;  %v7304_v37 = vshrl.u32 %v3559_v18, 30  ;;  %v3431_v35 = vsel %vm3429_vm2, %v3419_v36, 2102212464  ;;  %v3434_v10 = vsel %vm3426_vm8, %v3413_v13, %v3416_v17 }
 0x422   :  { %v3410_v34 = vshrl.u32 %v8048_v2, %v3409_v24  ;;  %vm3428_vm10 = vcmp.lt.s32.totalorder %v3407_v48, 3  ;;  %v3435_v27 = vsel %vm3429_vm2, %v3422_v44, 920167782  ;;  %v3438_v49 = vsel %vm3426_vm8, %v3416_v17, %v3419_v36 }
 0x423   :  { %8245 = vst [vmem:[#allocation42_spill] sm:$0xff] %v7304_v37  ;;  %v3561_v29 = vshll.u32 %v7304_v37, 30  ;;  %vm3427_vm6 = vcmp.lt.s32.totalorder %v3407_v48, 2  ;;  %v3436_v20 = vsel %vm3428_vm10, %v3419_v36, %v3435_v27  ;;  %v3439_v16 = vsel %vm3429_vm2, %v3425_v19, 1326507024 }
 0x424   :  { %v3430_v42 = vsel %vm3426_vm8, %v3410_v34, %v3413_v13  ;;  %v3432_v6 = vsel %vm3428_vm10, %v3416_v17, %v3431_v35  ;;  %v3437_v28 = vsel %vm3427_vm6, %v3434_v10, %v3436_v20  ;;  %v3440_v1 = vsel %vm3428_vm10, %v3422_v44, %v3439_v16 }
 0x425   :  { %v3270_v50 = vxor.u32 2147483648, %v3269_v55  ;;  %v7308_v39 = vsub.s32 %v3558_v3, %v3561_v29  ;;  %v3441_v5 = vsel %vm3427_vm6, %v3438_v49, %v3440_v1  ;;  %v8246_v43 = vand.u32 2147483647, %v7193_v4 }
 0x426   :  { %4640 = vcosq.f32 %v7285_v41  ;;  %v7314_v24 = vmul.u32.u64.low %v7280_v21, %v3441_v5  ;;  %v7315_v11 = vmul.u32.u64.high %v7280_v21, %v3441_v5, %v7314_v24  ;;  %v3716_v48 = vadd.s32 1, %v4199_v51 }
 0x427   :  { %v3713_v18 = vand.u32 8388607, %v8246_v43  ;;  %v3564_v36 = vsub.s32 0, %v7308_v39  ;;  %v3433_v13 = vsel %vm3427_vm6, %v3430_v42, %v3432_v6  ;;  %4642 = vsinq.f32 %v7285_v41 }
 0x428   :  { %v7319_v17 = vmul.u32.u64.low %v7280_v21, %v3437_v28  ;;  %v7320_v44 = vmul.u32.u64.high %v7280_v21, %v3437_v28, %v7319_v17  ;;  %vm8002_vm13 = vcmp.lt.s32.totalorder %v6988_v25, 0  ;;  %vm3717_vm8 = vcmp.gt.s32.totalorder %v3716_v48, 0 }
 0x429   :  { %v3714_v3 = vor.u32 8388608, %v3713_v18  ;;  %v7327_v19 = vsel %vm8002_vm13, %v3270_v50, %v3269_v55  ;;  %v3554_v51 = vadd.s32 %v7268_v61, %v7278_v63  ;;  %v4192_v35 = vmin.u32 %v3564_v36, %v7308_v39 }
 0x42a   :  { %v3718_v10 = vsel %vm3717_vm8, %v3716_v48, 0  ;;  %v3449_v34 = vmul.u32 %v7280_v21, %v3433_v13  ;;  %vm3451_vm2 = vc.u32 %v7315_v11, %v7319_v17  ;;  %v3452_v29 = vadd.s32 1, %v7320_v44 }
 0x42b   :  { %v3720_v41 = vand.u32 31, %v3718_v10  ;;  %v3566_v49 = vclz %v4192_v35  ;;  %v3605_v55 = vand.u32 2139095040, %v7212_v53  ;;  %v8247_v20 = vsub.s32 4, %v6430_v12 }
 0x42c   :  { %vm8248_vm10 = vcmp.lt.s32.totalorder %v6337_v38, 0  ;;  %v7345_v63 = vshrl.u32 %v3718_v10, 5  ;;  %v7348_v42 = vshll.u32 %v3714_v3, 8  ;;  %v3453_v28 = vsel %vm3451_vm2, %v3452_v29, %v7320_v44 }
 0x42d   :  { %v7343_v61 = vsel %vm8248_vm10, %v8247_v20, %v6430_v12  ;;  %v3721_v21 = vsub.s32 32, %v3720_v41  ;;  %v3723_v16 = vshll.u32 %v8048_v2, %v3720_v41  ;;  %v4193_v6 = vadd.s32 4294967294, %v3566_v49 }
 0x42e   :  { %v3726_v1 = vshll.u32 %v8032_v46, %v3720_v41  ;;  %v3729_v50 = vshll.u32 %v8175_v58, %v3720_v41  ;;  %v3454_v5 = vadd.s32 %v3453_v28, %v3449_v34  ;;  %v3732_v18 = vshll.u32 %v8176_v0, %v3720_v41 }
 0x42f   :  { %v3724_v43 = vshrl.u32 %v8032_v46, %v3721_v21  ;;  %v3727_v12 = vshrl.u32 %v8175_v58, %v3721_v21  ;;  %vm4194_vm6 = vcmp.lt.s32.totalorder %v4193_v6, 0  ;;  %v3730_v24 = vshrl.u32 %v8176_v0, %v3721_v21 }
 0x430   :  { %v3733_v48 = vshrl.u32 %v8060_v45, %v3721_v21  ;;  %v3736_v36 = vshrl.u32 %v8035_v59, %v3721_v21  ;;  %v3569_v13 = vsel %vm4194_vm6, 0, %v4193_v6  ;;  %v3455_v44 = vadd.s32 536870912, %v3454_v5 }
 0x431   :  { %v3725_v3 = vor.u32 %v3724_v43, %v3723_v16  ;;  %v3728_v35 = vor.u32 %v3727_v12, %v3726_v1  ;;  %v8249_v10 = vand.u32 2147483647, %v6988_v25  ;;  %v3570_v49 = vsub.s32 32, %v3569_v13 }
 0x432   :  { %v3574_v29 = vsub.s32 4294967266, %v3569_v13  ;;  %v3731_v20 = vor.u32 %v3730_v24, %v3729_v50  ;;  %v3735_v28 = vshll.u32 %v8060_v45, %v3720_v41  ;;  %v3571_v27 = vshll.u32 %v7308_v39, %v3569_v13 }
 0x433   :  { %vm7361_vm8 = vcmp.le.f32.partialorder %v8249_v10, 0.7853982  ;;  %v7367_v37 = vshrl.u32 %v3455_v44, 30  ;;  %v3722_v6 = vshrl.u32 %v8048_v2, %v3721_v21  ;;  %v3734_v47 = vor.u32 %v3733_v48, %v3732_v18  ;;  %v7370_v16 = vpop.eup %4640 }
 0x434   :  { %v3572_v1 = vshrl.u32 %v3554_v51, %v3570_v49  ;;  %v3575_v43 = vadd.s32 127, %v3574_v29  ;;  %v3737_v12 = vor.u32 %v3736_v36, %v3735_v28  ;;  %vm3738_vm2 = vcmp.lt.s32.totalorder %v7345_v63, 1  ;;  %v7378_v41 = vpop.eup %4642 }
 0x435   :  { %v3457_v10 = vshll.u32 %v7367_v37, 30  ;;  %vm3740_vm10 = vcmp.lt.s32.totalorder %v7345_v63, 3  ;;  %vm3741_vm6 = vcmp.lt.s32.totalorder %v7345_v63, 4  ;;  %v3746_v39 = vsel %vm3738_vm2, %v3725_v3, %v3728_v35 }
 0x436   :  { %v3573_v21 = vor.u32 %v3572_v1, %v3571_v27  ;;  %v3576_v50 = vshll.u32 %v3575_v43, 23  ;;  %v3743_v51 = vsel %vm3741_vm6, %v3731_v20, 2102212464  ;;  %v3747_v18 = vsel %vm3741_vm6, %v3734_v47, 920167782 }
 0x437   :  { %v7384_v24 = vsub.s32 %v3454_v5, %v3457_v10  ;;  %vm3739_vm12 = vcmp.lt.s32.totalorder %v7345_v63, 2  ;;  %v3742_v48 = vsel %vm3738_vm2, %v3722_v6, %v3725_v3  ;;  %v3748_v36 = vsel %vm3740_vm10, %v3731_v20, %v3747_v18 }
 0x438   :  { %vm8003_vm13 = vcmp.lt.s32.totalorder %v7110_v62, 0  ;;  %v3577_v27 = vor.u32 4788187, %v3576_v50  ;;  %v3744_v13 = vsel %vm3740_vm10, %v3728_v35, %v3743_v51  ;;  %v3749_v44 = vsel %vm3739_vm12, %v3746_v39, %v3748_v36 }
 0x439   :  { %v3750_v5 = vsel %vm3738_vm2, %v3728_v35, %v3731_v20  ;;  %v3460_v49 = vsub.s32 0, %v7384_v24  ;;  %v3751_v3 = vsel %vm3741_vm6, %v3737_v12, 1326507024  ;;  %v3580_v1 = vcvt.s32.f32 %v3573_v21 }
 0x43a   :  { %v7402_v29 = vmul.u32.u64.low %v7348_v42, %v3749_v44  ;;  %v7403_v28 = vmul.u32.u64.high %v7348_v42, %v3749_v44, %v7402_v29  ;;  %v3578_v6 = vand.u32 2147483647, %v3577_v27  ;;  %v3752_v43 = vsel %vm3740_vm10, %v3734_v47, %v3751_v3 }
 0x43b   :  { %v3606_v10 = vshrl.u32 %v3605_v55, 23  ;;  %v3274_v35 = vsel %vm7361_vm8, %v6988_v25, %v7327_v19  ;;  %v4188_v20 = vmin.u32 %v3460_v49, %v7384_v24  ;;  %v3753_v12 = vsel %vm3739_vm12, %v3750_v5, %v3752_v43 }
 0x43c   :  { %v8252_v39 = vand.u32 2147483647, %v7212_v53  ;;  %v3581_v51 = vmul.f32 %v3580_v1, %v3578_v6  ;;  %v7418_v21 = vmul.u32.u64.low %v7348_v42, %v3753_v12  ;;  %v7419_v18 = vmul.u32.u64.high %v7348_v42, %v3753_v12, %v7418_v21 }
 0x43d   :  { %v4195_v47 = vadd.s32 4294967169, %v3606_v10  ;;  %v3462_v55 = vclz %v4188_v20  ;;  %v3745_v36 = vsel %vm3739_vm12, %v3742_v48, %v3744_v13  ;;  %v3764_v19 = vadd.s32 1, %v7403_v28 }
 0x43e   :  { %v3609_v50 = vand.u32 8388607, %v8252_v39  ;;  %v2235_v27 = vsel %vm6523_vm1, 0, %v7343_v61  ;;  %4644 = vcosq.f32 %v3274_v35  ;;  %v8253_v44 = vand.u32 2147483647, %v7110_v62 }
 0x43f   :  { %v8254_v5 = vmov 0  ;;  %v3582_v49 = vxor.u32 2147483648, %v3581_v51  ;;  %v3612_v3 = vadd.s32 1, %v4195_v47  ;;  %4646 = vsinq.f32 %v3274_v35 }
 0x440   :  { %vm7429_vm2 = vcmp.le.f32.partialorder %v8253_v44, 0.7853982  ;;  %v3450_v63 = vadd.s32 %v7319_v17, %v7315_v11  ;;  %v4189_v48 = vadd.s32 4294967294, %v3462_v55  ;;  %v3610_v13 = vor.u32 8388608, %v3609_v50 }
 0x441   :  { %v8255_v5 = vsel %vm7429_vm2, 4294967295, %v8254_v5  ;;  %v3761_v6 = vmul.u32 %v7348_v42, %v3745_v36  ;;  %vm3763_vm1 = vc.u32 %v7419_v18, %v7402_v29  ;;  %vm3613_vm12 = vcmp.gt.s32.totalorder %v3612_v3, 0 }
 0x442   :  { %v2239_v54 = vadd.s32 3, %v2235_v27  ;;  %v3583_v61 = vsel %vm8003_vm13, %v3582_v49, %v3581_v51  ;;  %vm4190_vm10 = vcmp.lt.s32.totalorder %v4189_v48, 0  ;;  %v3765_v1 = vsel %vm3763_vm1, %v3764_v19, %v7403_v28 }
 0x443   :  { %v3614_v43 = vsel %vm3613_vm12, %v3612_v3, 0  ;;  %v3465_v10 = vsel %vm4190_vm10, 0, %v4189_v48  ;;  %v3766_v35 = vadd.s32 %v3765_v1, %v3761_v6  ;;  %v2243_v11 = vxor.u32 2147483648, %v6725_v14 }
 0x444   :  { %v7441_v20 = vshrl.u32 %v3614_v43, 5  ;;  %v3466_v17 = vsub.s32 32, %v3465_v10  ;;  %v3470_v42 = vsub.s32 4294967266, %v3465_v10  ;;  %v7444_v12 = vshll.u32 %v3610_v13, 8 }
 0x445   :  { %v7450_v50 = vsel %vm7429_vm2, %v7110_v62, %v3583_v61  ;;  %v3467_v28 = vshll.u32 %v7384_v24, %v3465_v10  ;;  %v3767_v51 = vadd.s32 536870912, %v3766_v35  ;;  %v3616_v21 = vand.u32 31, %v3614_v43 }
 0x446   :  { %v3468_v47 = vshrl.u32 %v3450_v63, %v3466_v17  ;;  %v3471_v55 = vadd.s32 127, %v3470_v42  ;;  %vm3634_vm6 = vcmp.lt.s32.totalorder %v7441_v20, 1  ;;  %vm3636_vm1 = vcmp.lt.s32.totalorder %v7441_v20, 3 }
 0x447   :  { %v7455_v36 = vshrl.u32 %v3767_v51, 30  ;;  %v3617_v19 = vsub.s32 32, %v3616_v21  ;;  %v3619_v27 = vshll.u32 %v8048_v2, %v3616_v21  ;;  %v3622_v44 = vshll.u32 %v8032_v46, %v3616_v21 }
 0x448   :  { %vm3635_vm12 = vcmp.lt.s32.totalorder %v7441_v20, 2  ;;  %v3469_v49 = vor.u32 %v3468_v47, %v3467_v28  ;;  %v3472_v3 = vshll.u32 %v3471_v55, 23  ;;  %v3625_v24 = vshll.u32 %v8175_v58, %v3616_v21 }
 0x449   :  { %v3628_v63 = vshll.u32 %v8176_v0, %v3616_v21  ;;  %v3769_v48 = vshll.u32 %v7455_v36, 30  ;;  %v3618_v13 = vshrl.u32 %v8048_v2, %v3617_v19  ;;  %v3620_v6 = vshrl.u32 %v8032_v46, %v3617_v19 }
 0x44a   :  { %v3623_v61 = vshrl.u32 %v8175_v58, %v3617_v19  ;;  %v3473_v1 = vor.u32 4788187, %v3472_v3  ;;  %v3476_v43 = vcvt.s32.f32 %v3469_v49  ;;  %v3626_v10 = vshrl.u32 %v8176_v0, %v3617_v19 }
 0x44b   :  { %v3629_v17 = vshrl.u32 %v8060_v45, %v3617_v19  ;;  %v8256_v42 = vand.u32 2147483647, %v7178_v32  ;;  %v8257_v28 = vmov 0  ;;  %v7475_v51 = vsub.s32 %v3766_v35, %v3769_v48  ;;  %v7478_v55 = vpop.eup %4644 }
 0x44c   :  { %v3621_v47 = vor.u32 %v3620_v6, %v3619_v27  ;;  %v3624_v2 = vor.u32 %v3623_v61, %v3622_v44  ;;  %v3631_v46 = vshll.u32 %v8060_v45, %v3616_v21  ;;  %v3474_v58 = vand.u32 2147483647, %v3473_v1  ;;  %v7481_v39 = vpop.eup %4646 }
 0x44d   :  { %vm7471_vm13 = vcmp.le.f32.partialorder %v8256_v42, 0.7853982  ;;  %v3627_v49 = vor.u32 %v3626_v10, %v3625_v24  ;;  %v3630_v3 = vor.u32 %v3629_v17, %v3628_v63  ;;  %v3632_v0 = vshrl.u32 %v8035_v59, %v3617_v19 }
 0x44e   :  { %v8258_v28 = vsel %vm7471_vm13, 4294967295, %v8257_v28  ;;  %v3772_v42 = vsub.s32 0, %v7475_v51  ;;  %vm3637_vm10 = vcmp.lt.s32.totalorder %v7441_v20, 4  ;;  %v3638_v35 = vsel %vm3634_vm6, %v3618_v13, %v3621_v47 }
 0x44f   :  { %v3642_v27 = vsel %vm3634_vm6, %v3621_v47, %v3624_v2  ;;  %v3477_v45 = vmul.f32 %v3476_v43, %v3474_v58  ;;  %v3633_v21 = vor.u32 %v3632_v0, %v3631_v46  ;;  %v3639_v44 = vsel %vm3637_vm10, %v3627_v49, 2102212464 }
 0x450   :  { %v3643_v48 = vsel %vm3637_vm10, %v3630_v3, 920167782  ;;  %v4200_v24 = vmin.u32 %v3772_v42, %v7475_v51  ;;  %v3646_v19 = vsel %vm3634_vm6, %v3624_v2, %v3627_v49  ;;  %v2240_v63 = vand.u32 3, %v2239_v54 }
 0x451   :  { %v3644_v59 = vsel %vm3636_vm1, %v3627_v49, %v3643_v48  ;;  %v3478_v6 = vxor.u32 2147483648, %v3477_v45  ;;  %v3640_v13 = vsel %vm3636_vm1, %v3624_v2, %v3639_v44  ;;  %v3647_v1 = vsel %vm3637_vm10, %v3633_v21, 1326507024 }
 0x452   :  { %v3645_v61 = vsel %vm3635_vm12, %v3642_v27, %v3644_v59  ;;  %v3774_v43 = vclz %v4200_v24  ;;  %v3648_v10 = vsel %vm3636_vm1, %v3630_v3, %v3647_v1  ;;  %4648 = vcosq.f32 %v7450_v50 }
 0x453   :  { %v7502_v17 = vmul.u32.u64.low %v7444_v12, %v3645_v61  ;;  %v7503_v47 = vmul.u32.u64.high %v7444_v12, %v3645_v61, %v7502_v17  ;;  %vm8259_vm6 = vcmp.lt.s32.totalorder %v7178_v32, 0  ;;  %v3762_v2 = vadd.s32 %v7402_v29, %v7419_v18 }
 0x454   :  { %v3479_v54 = vsel %vm8259_vm6, %v3478_v6, %v3477_v45  ;;  %v3649_v46 = vsel %vm3635_vm12, %v3646_v19, %v3648_v10  ;;  %v4201_v58 = vadd.s32 4294967294, %v3774_v43  ;;  %v3641_v49 = vsel %vm3635_vm12, %v3638_v35, %v3640_v13 }
 0x455   :  { %v7515_v3 = vmul.u32.u64.low %v7444_v12, %v3649_v46  ;;  %v7516_v0 = vmul.u32.u64.high %v7444_v12, %v3649_v46, %v7515_v3  ;;  %4650 = vsinq.f32 %v7450_v50  ;;  %v7522_v42 = vsel %vm7471_vm13, %v7178_v32, %v3479_v54 }
 0x456   :  { %vm2242_vm1 = vcmp.eq.s32.totalorder %v2240_v63, 0  ;;  %v2344_v29 = vand.u32 3, %v7082_v60  ;;  %vm4202_vm10 = vcmp.lt.s32.totalorder %v4201_v58, 0  ;;  %v3660_v18 = vadd.s32 1, %v7503_v47 }
 0x457   :  { %v2244_v20 = vsel %vm2242_vm1, %v6655_v26, %v2243_v11  ;;  %vm2245_vm12 = vcmp.eq.s32.totalorder %v2240_v63, 2  ;;  %v3777_v35 = vsel %vm4202_vm10, 0, %v4201_v58  ;;  %v3657_v50 = vmul.u32 %v7444_v12, %v3641_v49 }
 0x458   :  { %vm2241_vm2 = vcmp.lt.s32.totalorder %v2240_v63, 2  ;;  %v8260_v27 = vxor.u32 2147483648, %v6655_v26  ;;  %4652 = vcosq.f32 %v7522_v42  ;;  %v3778_v60 = vsub.s32 32, %v3777_v35 }
 0x459   :  { %v3782_v21 = vsub.s32 4294967266, %v3777_v35  ;;  %vm2346_vm13 = vcmp.eq.s32.totalorder %v2344_v29, 0  ;;  %v3779_v44 = vshll.u32 %v7475_v51, %v3777_v35  ;;  %vm3659_vm1 = vc.u32 %v7516_v0, %v7502_v17 }
 0x45a   :  { %v2247_v45 = vsel %vm2245_vm12, %v8260_v27, %v6725_v14  ;;  %v2347_v48 = vxor.u32 2147483648, %v6653_v40  ;;  %v3780_v24 = vshrl.u32 %v3762_v2, %v3778_v60  ;;  %v3661_v12 = vsel %vm3659_vm1, %v3660_v18, %v7503_v47  ;;  %v8271_v60 = vld [vmem:[#allocation17_spill] sm:$0xff]  ;;  %v8284_v27 = vld [vmem:[#allocation14_spill] sm:$0xff] }
 0x45b   :  { %v2248_v11 = vsel %vm2241_vm2, %v2244_v20, %v2247_v45  ;;  %v3783_v59 = vadd.s32 127, %v3782_v21  ;;  %vm8261_vm10 = vweird.f32 %v6337_v38  ;;  %v3662_v14 = vadd.s32 %v3661_v12, %v3657_v50 }
 0x45c   :  { %v2249_v26 = vsel %vm8261_vm10, nan, %v2248_v11  ;;  %vm8262_vm12 = vcmask 523264   ;;  %v2348_v19 = vsel %vm2346_vm13, %v6591_v52, %v2347_v48  ;;  %v2350_v63 = vxor.u32 2147483648, %v6591_v52 }
 0x45d   :  { %4370 = vmatprep.mubr.msk.f32.mxu0 %vm8262_vm12, %v2249_v26  ;;  %v2440_v51 = vsub.s32 4, %v6578_v23  ;;  %v3781_v6 = vor.u32 %v3780_v24, %v3779_v44  ;;  %v3784_v13 = vshll.u32 %v3783_v59, 23  ;;  %vm2345_vm2 = vcmp.lt.s32.totalorder %v2344_v29, 2 }
 0x45e   :  { %vm2349_vm6 = vcmp.eq.s32.totalorder %v2344_v29, 2  ;;  %v7546_v61 = vadd.s32 %v7502_v17, %v7516_v0  ;;  %v3663_v1 = vadd.s32 536870912, %v3662_v14  ;;  %vm8263_vm1 = vcmp.lt.s32.totalorder %v6417_v15, 0 }
 0x45f   :  { %v2351_v38 = vsel %vm2349_vm6, %v2350_v63, %v6653_v40  ;;  %v2441_v43 = vsel %vm8263_vm1, %v2440_v51, %v6578_v23  ;;  %v3785_v10 = vor.u32 4788187, %v3784_v13  ;;  %vm2446_vm10 = vweird.f32 %v6417_v15  ;;  %v7561_v46 = vpop.eup %4648  ;;  %v8273_v51 = vld [vmem:[#allocation28_spill] sm:$0xff]  ;;  %v8279_v15 = vld [vmem:[#allocation15_spill] sm:$0xff] }
 0x460   :  { %v2352_v52 = vsel %vm2345_vm2, %v2348_v19, %v2351_v38  ;;  %v2443_v47 = vsel %vm6691_vm0, 0, %v2441_v43  ;;  %v7556_v54 = vshrl.u32 %v3663_v1, 30  ;;  %vm8264_vm12 = vweird.f32 %v6332_v33  ;;  %v8272_v19 = vld [vmem:[#allocation19_spill] sm:$0xff] }
 0x461   :  { %v2353_v17 = vsel %vm8264_vm12, nan, %v2352_v52  ;;  %v2447_v2 = vadd.s32 3, %v2443_v47  ;;  %v2544_v40 = vsub.s32 4, %v6516_v7  ;;  %v3786_v23 = vand.u32 2147483647, %v3785_v10  ;;  %v8278_v10 = vld [vmem:[#allocation26_spill] sm:$0xff] }
 0x462   :  { %v3788_v58 = vcvt.s32.f32 %v3781_v6  ;;  %vm8265_vm6 = vcmask 523264   ;;  %v2451_v49 = vxor.u32 2147483648, %v6823_v30  ;;  %v2454_v22 = vxor.u32 2147483648, %v6814_v56  ;;  %v7577_v35 = vpop.eup %4650  ;;  %v8280_v47 = vld [vmem:[#allocation38_spill] sm:$0xff] }
 0x463   :  { %4371 = vmatmul.mubr.msk.f32.vlgmr.msra.gmra.mxu0 %vm8265_vm6, %v2353_v17  ;;  %v8266_v3 = vand.u32 2147483647, %v7193_v4  ;;  %v3665_v33 = vshll.u32 %v7556_v54, 30  ;;  %v2448_v29 = vand.u32 3, %v2447_v2  ;;  %vm8269_vm2 = vcmp.lt.s32.totalorder %v6346_v8, 0 }
 0x464   :  { %v2545_v18 = vsel %vm8269_vm2, %v2544_v40, %v6516_v7  ;;  %v2648_v20 = vsub.s32 4, %v6720_v31  ;;  %v3789_v50 = vmul.f32 %v3788_v58, %v3786_v23  ;;  %vm2550_vm1 = vweird.f32 %v6346_v8 }
 0x465   :  { %vm7568_vm0 = vcmp.le.f32.partialorder %v8266_v3, 0.7853982  ;;  %v2547_v45 = vsel %vm6637_vm9, 0, %v2545_v18  ;;  %v2555_v21 = vxor.u32 2147483648, %v8271_v60  ;;  %v7583_v44 = vsub.s32 %v3662_v14, %v3665_v33  ;;  %v7587_v59 = vpop.eup %4652  ;;  %v8281_v3 = vld [vmem:[#allocation18_spill] sm:$0xff] }
 0x466   :  { %vm2449_vm12 = vcmp.lt.s32.totalorder %v2448_v29, 2  ;;  %vm2450_vm6 = vcmp.eq.s32.totalorder %v2448_v29, 0  ;;  %vm2453_vm13 = vcmp.eq.s32.totalorder %v2448_v29, 2  ;;  %v3790_v11 = vxor.u32 2147483648, %v3789_v50 }
 0x467   :  { %v2452_v7 = vsel %vm2450_vm6, %v6814_v56, %v2451_v49  ;;  %v2455_v48 = vsel %vm2453_vm13, %v2454_v22, %v6823_v30  ;;  %v2551_v24 = vadd.s32 3, %v2547_v45  ;;  %v3668_v12 = vsub.s32 0, %v7583_v44 }
 0x468   :  { %v2456_v26 = vsel %vm2449_vm12, %v2452_v7, %v2455_v48  ;;  %v2558_v63 = vxor.u32 2147483648, %v8272_v19  ;;  %vm8274_vm9 = vcmp.lt.s32.totalorder %v8273_v51, 0  ;;  %vm2654_vm13 = vweird.f32 %v8273_v51  ;;  %v8286_v7 = vld [vmem:[#allocation13_spill] sm:$0xff] }
 0x469   :  { %v2649_v14 = vsel %vm8274_vm9, %v2648_v20, %v6720_v31  ;;  %v2457_v6 = vsel %vm2446_vm10, nan, %v2456_v26  ;;  %v2552_v13 = vand.u32 3, %v2551_v24  ;;  %vm8276_vm2 = vcmp.lt.s32.totalorder %v7193_v4, 0  ;;  %v8287_v26 = vld [vmem:[#allocation22_spill] sm:$0xff] }
 0x46a   :  { %v2651_v56 = vsel %vm6865_vm14, 0, %v2649_v14  ;;  %v3791_v30 = vsel %vm8276_vm2, %v3790_v11, %v3789_v50  ;;  %v4196_v38 = vmin.u32 %v3668_v12, %v7583_v44  ;;  %vm8277_vm12 = vcmask 523264  }
 0x46b   :  { %4373 = vmatprep.mubr.msk.f32.mxu0 %vm8277_vm12, %v2457_v6  ;;  %v2655_v43 = vadd.s32 3, %v2651_v56  ;;  %v2752_v52 = vsub.s32 4, %v8278_v10  ;;  %vm2554_vm6 = vcmp.eq.s32.totalorder %v2552_v13, 0  ;;  %vm2557_vm9 = vcmp.eq.s32.totalorder %v2552_v13, 2  ;;  %vm8285_vm2 = vmmov %vm8277_vm12 }
 0x46c   :  { %v2659_v31 = vxor.u32 2147483648, %v8279_v15  ;;  %v2662_v17 = vxor.u32 2147483648, %v8280_v47  ;;  %v3670_v2 = vclz %v4196_v38  ;;  %vm2553_vm14 = vcmp.lt.s32.totalorder %v2552_v13, 2 }
 0x46d   :  { %v2556_v40 = vsel %vm2554_vm6, %v8272_v19, %v2555_v21  ;;  %v2559_v23 = vsel %vm2557_vm9, %v2558_v63, %v8271_v60  ;;  %v3794_v58 = vsel %vm7568_vm0, %v7193_v4, %v3791_v30  ;;  %v2656_v22 = vand.u32 3, %v2655_v43 }
 0x46e   :  { %v2560_v49 = vsel %vm2553_vm14, %v2556_v40, %v2559_v23  ;;  %vm8282_vm10 = vcmp.lt.s32.totalorder %v8281_v3, 0  ;;  %v4197_v29 = vadd.s32 4294967294, %v3670_v2  ;;  %v2763_v45 = vxor.u32 2147483648, %v8284_v27 }
 0x46f   :  { %v2753_v33 = vsel %vm8282_vm10, %v2752_v52, %v8278_v10  ;;  %v2561_v18 = vsel %vm2550_vm1, nan, %v2560_v49  ;;  %vm2657_vm12 = vcmp.lt.s32.totalorder %v2656_v22, 2  ;;  %vm2658_vm6 = vcmp.eq.s32.totalorder %v2656_v22, 0 }
 0x470   :  { %v2755_v50 = vsel %vm6782_vm11, 0, %v2753_v33  ;;  %4374 = vmatmul.mubr.msk.f32.gmra.mxu0 %vm8285_vm2, %v2561_v18  ;;  %vm2661_vm9 = vcmp.eq.s32.totalorder %v2656_v22, 2  ;;  %vm4198_vm14 = vcmp.lt.s32.totalorder %v4197_v29, 0  ;;  %v2660_v21 = vsel %vm2658_vm6, %v8280_v47, %v2659_v31  ;;  %vm8288_vm11 = vmmov %vm8285_vm2  ;;  %v8297_v33 = vld [vmem:[#allocation27_spill] sm:$0xff]  ;;  %v8299_v18 = vld [vmem:[#allocation16_spill] sm:$0xff] }
 0x471   :  { %v2759_v60 = vadd.s32 3, %v2755_v50  ;;  %v2663_v11 = vsel %vm2661_vm9, %v2662_v17, %v8279_v15  ;;  %v2766_v48 = vxor.u32 2147483648, %v8286_v7  ;;  %v3673_v8 = vsel %vm4198_vm14, 0, %v4197_v29  ;;  %vm8290_vm9 = vmmov %vm8288_vm11  ;;  %v8292_v17 = vld [vmem:[#allocation25_spill] sm:$0xff]  ;;  %v8300_v50 = vld [vmem:[#allocation35_spill] sm:$0xff] }
 0x472   :  { %v2664_v24 = vsel %vm2657_vm12, %v2660_v21, %v2663_v11  ;;  %v2856_v19 = vsub.s32 4, %v8287_v26  ;;  %v3674_v63 = vsub.s32 32, %v3673_v8  ;;  %v3675_v14 = vshll.u32 %v7583_v44, %v3673_v8 }
 0x473   :  { %v2760_v12 = vand.u32 3, %v2759_v60  ;;  %v3678_v6 = vsub.s32 4294967266, %v3673_v8  ;;  %v2665_v13 = vsel %vm2654_vm13, nan, %v2664_v24  ;;  %vm8289_vm6 = vcmp.lt.s32.totalorder %v6628_v57, 0 }
 0x474   :  { %4376 = vmatprep.mubr.msk.f32.mxu0 %vm8288_vm11, %v2665_v13  ;;  %v2857_v1 = vsel %vm8289_vm6, %v2856_v19, %v8287_v26  ;;  %v3676_v56 = vshrl.u32 %v7546_v61, %v3674_v63  ;;  %4654 = vsinq.f32 %v7522_v42  ;;  %vm2758_vm13 = vweird.f32 %v8281_v3  ;;  %v8291_v61 = vld [vmem:[#allocation30_spill] sm:$0xff]  ;;  %v8293_v42 = vld [vmem:[#allocation9_spill] sm:$0xff] }
 0x475   :  { %vm2761_vm1 = vcmp.lt.s32.totalorder %v2760_v12, 2  ;;  %vm2762_vm10 = vcmp.eq.s32.totalorder %v2760_v12, 0  ;;  %vm2765_vm2 = vcmp.eq.s32.totalorder %v2760_v12, 2  ;;  %v3679_v30 = vadd.s32 127, %v3678_v6 }
 0x476   :  { %v2764_v38 = vsel %vm2762_vm10, %v8286_v7, %v2763_v45  ;;  %v2767_v44 = vsel %vm2765_vm2, %v2766_v48, %v8284_v27  ;;  %v2859_v43 = vsel %vm7008_vm15, 0, %v2857_v1  ;;  %v3677_v10 = vor.u32 %v3676_v56, %v3675_v14  ;;  %v8302_v7 = vld [vmem:[#allocation10_spill] sm:$0xff]  ;;  %v8305_v14 = vld [vmem:[#allocation31_spill] sm:$0xff]  ;;  %v8306_v1 = vld [vmem:[#allocation24_spill] sm:$0xff] }
 0x477   :  { %v2768_v51 = vsel %vm2761_vm1, %v2764_v38, %v2767_v44  ;;  %v3680_v52 = vshll.u32 %v3679_v30, 23  ;;  %v2863_v31 = vadd.s32 3, %v2859_v43  ;;  %4656 = vcosq.f32 %v3794_v58 }
 0x478   :  { %v2769_v15 = vsel %vm2758_vm13, nan, %v2768_v51  ;;  %vm3604_vm12 = vcmp.lt.s32.totalorder %v7212_v53, 0  ;;  %v2867_v47 = vxor.u32 2147483648, %v8291_v61  ;;  %v2870_v2 = vxor.u32 2147483648, %v8292_v17  ;;  %v8308_v51 = vld [vmem:[#allocation39_spill] sm:$0xff] }
 0x479   :  { %4377 = vmatmul.mubr.msk.f32.gmra.mxu0 %vm8290_vm9, %v2769_v15  ;;  %v2960_v40 = vsub.s32 4, %v8293_v42  ;;  %4658 = vsinq.f32 %v3794_v58  ;;  %v3681_v23 = vor.u32 4788187, %v3680_v52  ;;  %vm2862_vm14 = vweird.f32 %v6628_v57  ;;  %v8310_v57 = vld [vmem:[#allocation20_spill] sm:$0xff] }
 0x47a   :  { %v2864_v9 = vand.u32 3, %v2863_v31  ;;  %v8294_v49 = vand.u32 2147483647, %v7212_v53  ;;  %v3684_v3 = vcvt.s32.f32 %v3677_v10  ;;  %vm8298_vm11 = vcmp.lt.s32.totalorder %v8297_v33, 0  ;;  %v8309_v10 = vld [vmem:[#allocation41_spill] sm:$0xff] }
 0x47b   :  { %v2961_v29 = vsel %vm8298_vm11, %v2960_v40, %v8293_v42  ;;  %v2971_v20 = vxor.u32 2147483648, %v8299_v18  ;;  %v3064_v27 = vsub.s32 4, %v8300_v50  ;;  %v3682_v58 = vand.u32 2147483647, %v3681_v23  ;;  %v8312_v42 = vld [vmem:[#allocation33_spill] sm:$0xff] }
 0x47c   :  { %vm7646_vm15 = vcmp.le.f32.partialorder %v8294_v49, 0.7853982  ;;  %vm2865_vm1 = vcmp.lt.s32.totalorder %v2864_v9, 2  ;;  %vm2866_vm10 = vcmp.eq.s32.totalorder %v2864_v9, 0  ;;  %vm2869_vm2 = vcmp.eq.s32.totalorder %v2864_v9, 2 }
 0x47d   :  { %v2868_v45 = vsel %vm2866_vm10, %v8292_v17, %v2867_v47  ;;  %v2871_v60 = vsel %vm2869_vm2, %v2870_v2, %v8291_v61  ;;  %v2963_v11 = vsel %vm6924_vm4, 0, %v2961_v29  ;;  %vm8303_vm6 = vcmp.lt.s32.totalorder %v8302_v7, 0  ;;  %vm8307_vm4 = vmmov %vm8290_vm9  ;;  %v8311_v61 = vld [vmem:[#allocation40_spill] sm:$0xff] }
 0x47e   :  { %v3065_v48 = vsel %vm8303_vm6, %v3064_v27, %v8300_v50  ;;  %v3685_v8 = vmul.f32 %v3684_v3, %v3682_v58  ;;  %v2872_v24 = vsel %vm2865_vm1, %v2868_v45, %v2871_v60  ;;  %v2967_v12 = vadd.s32 3, %v2963_v11  ;;  %v8316_v45 = vld [vmem:[#allocation32_spill] sm:$0xff] }
 0x47f   :  { %v3067_v19 = vsel %vm7183_vm7, 0, %v3065_v48  ;;  %v2873_v63 = vsel %vm2862_vm14, nan, %v2872_v24  ;;  %v2974_v6 = vxor.u32 2147483648, %v8305_v14  ;;  %v3168_v56 = vsub.s32 4, %v8306_v1 }
 0x480   :  { %v3071_v13 = vadd.s32 3, %v3067_v19  ;;  %v3686_v30 = vxor.u32 2147483648, %v3685_v8  ;;  %4379 = vmatprep.mubr.msk.f32.mxu0 %vm8307_vm4, %v2873_v63  ;;  %vm2966_vm13 = vweird.f32 %v8297_v33  ;;  %v2968_v38 = vand.u32 3, %v2967_v12  ;;  %v8319_v12 = vld [vmem:[#allocation37_spill] sm:$0xff] }
 0x481   :  { %vm3070_vm9 = vweird.f32 %v8302_v7  ;;  %v3075_v43 = vxor.u32 2147483648, %v8308_v51  ;;  %v3078_v52 = vxor.u32 2147483648, %v8309_v10  ;;  %v3179_v15 = vxor.u32 2147483648, %v8310_v57  ;;  %v7682_v23 = vpop.eup %4654 }
 0x482   :  { %v3072_v44 = vand.u32 3, %v3071_v13  ;;  %v3687_v31 = vsel %vm3604_vm12, %v3686_v30, %v3685_v8  ;;  %vm2970_vm7 = vcmp.eq.s32.totalorder %v2968_v38, 0  ;;  %vm2973_vm14 = vcmp.eq.s32.totalorder %v2968_v38, 2  ;;  %v8320_v13 = vld [vmem:[#allocation8_spill] sm:$0xff] }
 0x483   :  { %v3272_v47 = vsub.s32 4, %v8311_v61  ;;  %vm2969_vm11 = vcmp.lt.s32.totalorder %v2968_v38, 2  ;;  %v2972_v17 = vsel %vm2970_vm7, %v8305_v14, %v2971_v20  ;;  %v2975_v2 = vsel %vm2973_vm14, %v2974_v6, %v8299_v18 }
 0x484   :  { %vm8313_vm1 = vcmp.lt.s32.totalorder %v8312_v42, 0  ;;  %v3690_v9 = vsel %vm7646_vm15, %v7212_v53, %v3687_v31  ;;  %v2976_v49 = vsel %vm2969_vm11, %v2972_v17, %v2975_v2  ;;  %vm3074_vm10 = vcmp.eq.s32.totalorder %v3072_v44, 0  ;;  %v7692_v20 = vpop.eup %4656 }
 0x485   :  { %v3169_v40 = vsel %vm8313_vm1, %v3168_v56, %v8306_v1  ;;  %vm3077_vm2 = vcmp.eq.s32.totalorder %v3072_v44, 2  ;;  %v2977_v3 = vsel %vm2966_vm13, nan, %v2976_v49  ;;  %vm3073_vm6 = vcmp.lt.s32.totalorder %v3072_v44, 2 }
 0x486   :  { %v3076_v29 = vsel %vm3074_vm10, %v8309_v10, %v3075_v43  ;;  %v3079_v18 = vsel %vm3077_vm2, %v3078_v52, %v8308_v51  ;;  %vm3174_vm4 = vweird.f32 %v8312_v42  ;;  %vm8314_vm7 = vcmask 523264   ;;  %v7701_v21 = vpop.eup %4658 }
 0x487   :  { %4380 = vmatmul.mubr.msk.f32.gmra.mxu0 %vm8314_vm7, %v2977_v3  ;;  %v3080_v50 = vsel %vm3073_vm6, %v3076_v29, %v3079_v18  ;;  %v3171_v58 = vsel %vm7086_vm3, 0, %v3169_v40  ;;  %v3182_v60 = vxor.u32 2147483648, %v8316_v45  ;;  %vm8317_vm13 = vcmp.lt.s32.totalorder %v6988_v25, 0  ;;  %vm8318_vm14 = vmmov %vm8314_vm7 }
 0x488   :  { %v3273_v33 = vsel %vm8317_vm13, %v3272_v47, %v8311_v61  ;;  %4660 = vcosq.f32 %v3690_v9  ;;  %v3081_v11 = vsel %vm3070_vm9, nan, %v3080_v50  ;;  %v3175_v48 = vadd.s32 3, %v3171_v58  ;;  %vm8324_vm13 = vmmov %vm8318_vm14 }
 0x489   :  { %v3275_v8 = vsel %vm7361_vm8, 0, %v3273_v33  ;;  %4662 = vsinq.f32 %v3690_v9  ;;  %4382 = vmatprep.mubr.msk.f32.mxu0 %vm8318_vm14, %v3081_v11  ;;  %vm3278_vm3 = vweird.f32 %v6988_v25  ;;  %v3376_v26 = vsub.s32 4, %v8319_v12 }
 0x48a   :  { %v3279_v24 = vadd.s32 3, %v3275_v8  ;;  %v3176_v19 = vand.u32 3, %v3175_v48  ;;  %v3283_v63 = vxor.u32 2147483648, %v7481_v39  ;;  %v3286_v14 = vxor.u32 2147483648, %v7478_v55 }
 0x48b   :  { %v3387_v7 = vxor.u32 2147483648, %v7378_v41  ;;  %vm8321_vm9 = vcmp.lt.s32.totalorder %v8320_v13, 0  ;;  %v3390_v1 = vxor.u32 2147483648, %v7370_v16  ;;  %v3480_v56 = vsub.s32 4, %v7367_v37 }
 0x48c   :  { %v3280_v6 = vand.u32 3, %v3279_v24  ;;  %v3377_v34 = vsel %vm8321_vm9, %v3376_v26, %v8319_v12  ;;  %vm3178_vm8 = vcmp.eq.s32.totalorder %v3176_v19, 0  ;;  %vm3181_vm11 = vcmp.eq.s32.totalorder %v3176_v19, 2 }
 0x48d   :  { %v3379_v38 = vsel %vm7250_vm5, 0, %v3377_v34  ;;  %vm3382_vm1 = vweird.f32 %v8320_v13  ;;  %v3491_v44 = vxor.u32 2147483648, %v7682_v23  ;;  %vm3177_vm10 = vcmp.lt.s32.totalorder %v3176_v19, 2 }
 0x48e   :  { %v3180_v51 = vsel %vm3178_vm8, %v8316_v45, %v3179_v15  ;;  %v3183_v43 = vsel %vm3181_vm11, %v3182_v60, %v8310_v57  ;;  %vm3282_vm2 = vcmp.eq.s32.totalorder %v3280_v6, 0  ;;  %vm3285_vm6 = vcmp.eq.s32.totalorder %v3280_v6, 2 }
 0x48f   :  { %v3184_v10 = vsel %vm3177_vm10, %v3180_v51, %v3183_v43  ;;  %v3284_v52 = vsel %vm3282_vm2, %v7478_v55, %v3283_v63  ;;  %v3383_v31 = vadd.s32 3, %v3379_v38  ;;  %vm3281_vm7 = vcmp.lt.s32.totalorder %v3280_v6, 2  ;;  %v8326_v55 = vld [vmem:[#allocation42_spill] sm:$0xff] }
 0x490   :  { %v3185_v61 = vsel %vm3174_vm4, nan, %v3184_v10  ;;  %v3287_v47 = vsel %vm3285_vm6, %v3286_v14, %v7481_v39  ;;  %vm8323_vm5 = vcmp.lt.s32.totalorder %v7178_v32, 0  ;;  %vm8325_vm14 = vnez %v8258_v28  ;;  %vm8327_vm4 = vmmov %vm8324_vm13  ;;  %v4203_v38 = vld [vmem:[%s7852_s6] ss:$0 sm:$0xff] }
 0x491   :  { %v3481_v17 = vsel %vm8323_vm5, %v3480_v56, %v7367_v37  ;;  %4383 = vmatmul.mubr.msk.f32.gmra.mxu0 %vm8324_vm13, %v3185_v61  ;;  %v3288_v15 = vsel %vm3281_vm7, %v3284_v52, %v3287_v47  ;;  %v3384_v57 = vand.u32 3, %v3383_v31  ;;  %v3584_v40 = vsub.s32 4, %v8326_v55  ;;  %vm8330_vm5 = vmmov %vm8327_vm4 }
 0x492   :  { %v3483_v2 = vsel %vm8325_vm14, 0, %v3481_v17  ;;  %v3289_v42 = vsel %vm3278_vm3, nan, %v3288_v15  ;;  %v3494_v49 = vxor.u32 2147483648, %v7587_v59  ;;  %v3595_v39 = vxor.u32 2147483648, %v7577_v35 }
 0x493   :  { %v3487_v9 = vadd.s32 3, %v3483_v2  ;;  %4385 = vmatprep.mubr.msk.f32.mxu0 %vm8327_vm4, %v3289_v42  ;;  %vm3385_vm9 = vcmp.lt.s32.totalorder %v3384_v57, 2  ;;  %vm3386_vm8 = vcmp.eq.s32.totalorder %v3384_v57, 0  ;;  %vm3389_vm11 = vcmp.eq.s32.totalorder %v3384_v57, 2 }
 0x494   :  { %vm8328_vm10 = vcmp.lt.s32.totalorder %v7110_v62, 0  ;;  %v3388_v28 = vsel %vm3386_vm8, %v7370_v16, %v3387_v7  ;;  %v3391_v3 = vsel %vm3389_vm11, %v3390_v1, %v7378_v41  ;;  %vm8329_vm3 = vnez %v8255_v5 }
 0x495   :  { %v3585_v37 = vsel %vm8328_vm10, %v3584_v40, %v8326_v55  ;;  %v3488_v25 = vand.u32 3, %v3487_v9  ;;  %v3392_v18 = vsel %vm3385_vm9, %v3388_v28, %v3391_v3  ;;  %v3598_v27 = vxor.u32 2147483648, %v7561_v46  ;;  %v4661_v45 = vpop.eup %4660  ;;  %vm8331_vm9 = vmmov %vm8330_vm5 }
 0x496   :  { %v3587_v29 = vsel %vm8329_vm3, 0, %v3585_v37  ;;  %v3688_v58 = vsub.s32 4, %v7556_v54  ;;  %v3393_v60 = vsel %vm3382_vm1, nan, %v3392_v18  ;;  %v4663_v16 = vpop.eup %4662  ;;  %vm3486_vm13 = vweird.f32 %v7178_v32 }
 0x497   :  { %v3591_v50 = vadd.s32 3, %v3587_v29  ;;  %vm3489_vm2 = vcmp.lt.s32.totalorder %v3488_v25, 2  ;;  %vm3490_vm6 = vcmp.eq.s32.totalorder %v3488_v25, 0  ;;  %vm3493_vm7 = vcmp.eq.s32.totalorder %v3488_v25, 2  ;;  %4386 = vmatmul.mubr.msk.f32.gmra.mxu0 %vm8330_vm5, %v3393_v60 }
 0x498   :  { %v3492_v41 = vsel %vm3490_vm6, %v7587_v59, %v3491_v44  ;;  %v3495_v5 = vsel %vm3493_vm7, %v3494_v49, %v7682_v23  ;;  %v3689_v11 = vsel %vm3604_vm12, %v3688_v58, %v7556_v54  ;;  %vm3590_vm1 = vweird.f32 %v7110_v62  ;;  %vm8332_vm12 = vmmov %vm8330_vm5 }
 0x499   :  { %v3592_v33 = vand.u32 3, %v3591_v50  ;;  %v3496_v48 = vsel %vm3489_vm2, %v3492_v41, %v3495_v5  ;;  %v3691_v8 = vsel %vm7646_vm15, 0, %v3689_v11  ;;  %v3699_v26 = vxor.u32 2147483648, %v4663_v16  ;;  %vm8334_vm6 = vmmov %vm8330_vm5 }
 0x49a   :  { %v3497_v24 = vsel %vm3486_vm13, nan, %v3496_v48  ;;  %v3695_v12 = vadd.s32 3, %v3691_v8  ;;  %v3702_v32 = vxor.u32 2147483648, %v4661_v45  ;;  %v3792_v19 = vsub.s32 4, %v7455_v36 }
 0x49b   :  { %vm3594_vm14 = vcmp.eq.s32.totalorder %v3592_v33, 0  ;;  %vm3597_vm4 = vcmp.eq.s32.totalorder %v3592_v33, 2  ;;  %4388 = vmatprep.mubr.msk.f32.mxu0 %vm8331_vm9, %v3497_v24  ;;  %vm3593_vm8 = vcmp.lt.s32.totalorder %v3592_v33, 2  ;;  %vm8333_vm15 = vcmp.lt.s32.totalorder %v7193_v4, 0 }
 0x49c   :  { %v3596_v59 = vsel %vm3594_vm14, %v7561_v46, %v3595_v39  ;;  %v3599_v23 = vsel %vm3597_vm4, %v3598_v27, %v7577_v35  ;;  %v3696_v63 = vand.u32 3, %v3695_v12  ;;  %v3793_v62 = vsel %vm8333_vm15, %v3792_v19, %v7455_v36 }
 0x49d   :  { %v3600_v54 = vsel %vm3593_vm8, %v3596_v59, %v3599_v23  ;;  %v3795_v46 = vsel %vm7568_vm0, 0, %v3793_v62  ;;  %vm3694_vm2 = vweird.f32 %v7212_v53  ;;  %v3803_v13 = vxor.u32 2147483648, %v7701_v21 }
 0x49e   :  { %v3601_v22 = vsel %vm3590_vm1, nan, %v3600_v54  ;;  %vm3698_vm11 = vcmp.eq.s32.totalorder %v3696_v63, 0  ;;  %vm3701_vm10 = vcmp.eq.s32.totalorder %v3696_v63, 2  ;;  %vm3697_vm3 = vcmp.lt.s32.totalorder %v3696_v63, 2  ;;  %vm8335_vm1 = vmmov %vm8334_vm6 }
 0x49f   :  { %4389 = vmatmul.mubr.msk.f32.gmra.mxu0 %vm8332_vm12, %v3601_v22  ;;  %v3700_v35 = vsel %vm3698_vm11, %v4661_v45, %v3699_v26  ;;  %v3703_v14 = vsel %vm3701_vm10, %v3702_v32, %v4663_v16  ;;  %v3799_v7 = vadd.s32 3, %v3795_v46  ;;  %v3806_v34 = vxor.u32 2147483648, %v7692_v20 }
 0x4a0   :  { %v3704_v6 = vsel %vm3697_vm3, %v3700_v35, %v3703_v14  ;;  %vm3798_vm0 = vweird.f32 %v7193_v4  ;;  %vm4018_vm14 = vcmask 64512  }
 0x4a1   :  { %v3705_v1 = vsel %vm3694_vm2, nan, %v3704_v6  ;;  %v3800_v56 = vand.u32 3, %v3799_v7 }
 0x4a2   :  { %4391 = vmatprep.mubr.msk.f32.mxu0 %vm8334_vm6, %v3705_v1 }
 0x4a3   :  { %vm3802_vm7 = vcmp.eq.s32.totalorder %v3800_v56, 0  ;;  %vm3805_vm5 = vcmp.eq.s32.totalorder %v3800_v56, 2  ;;  %vm3801_vm13 = vcmp.lt.s32.totalorder %v3800_v56, 2 }
 0x4a4   :  { %v3804_v36 = vsel %vm3802_vm7, %v7692_v20, %v3803_v13  ;;  %v3807_v0 = vsel %vm3805_vm5, %v3806_v34, %v7701_v21 }
 0x4a5   :  { %v3808_v30 = vsel %vm3801_vm13, %v3804_v36, %v3807_v0 }
 0x4a6   :  { %v3809_v53 = vsel %vm3798_vm0, nan, %v3808_v30 }
 0x4a7   :  { %4392 = vmatmul.mubr.msk.f32.gmra.mxu0 %vm8335_vm1, %v3809_v53 }
 0x523   :  { %v4372_v44 = vpop.f32.mrf.mxu0 }
 0x524   :  { %v3945_v51 = vadd.f32 %v4372_v44, %v4203_v38 }
 0x525   :  { %v3939_v43 = vpop.f32.mrf.mxu0 }
 0x526   :  { %4020 = vst.msk [vmem:[%s7853_s7 + $0x8] sm:$0xff] %vm4018_vm14, %v3945_v51  ;;  %v3940_v20 = vadd.f32 %v4203_v38, %v3939_v43 }
 0x528   :  { %4019 = vst.msk [vmem:[%s7853_s7] sm:$0xff] %vm4018_vm14, %v3940_v20 }
 0x530   :  { %v4375_v4 = vpop.f32.mrf.mxu0 }
 0x531   :  { %v3955_v21 = vadd.f32 %v4375_v4, %v4203_v38 }
 0x532   :  { %v3949_v10 = vpop.f32.mrf.mxu0 }
 0x533   :  { %4022 = vst.msk [vmem:[%s7853_s7 + $0x18] sm:$0xff] %vm4018_vm14, %v3955_v21  ;;  %v3950_v52 = vadd.f32 %v4203_v38, %v3949_v10 }
 0x535   :  { %4021 = vst.msk [vmem:[%s7853_s7 + $0x10] sm:$0xff] %vm4018_vm14, %v3950_v52 }
 0x539   :  { %v4378_v31 = vpop.f32.mrf.mxu0 }
 0x53a   :  { %v3965_v61 = vadd.f32 %v4378_v31, %v4203_v38 }
 0x53b   :  { %v3959_v47 = vpop.f32.mrf.mxu0 }
 0x53c   :  { %4024 = vst.msk [vmem:[%s7853_s7 + $0x28] sm:$0xff] %vm4018_vm14, %v3965_v61  ;;  %v3960_v17 = vadd.f32 %v4203_v38, %v3959_v47 }
 0x53e   :  { %4023 = vst.msk [vmem:[%s7853_s7 + $0x20] sm:$0xff] %vm4018_vm14, %v3960_v17 }
 0x547   :  { %v4381_v15 = vpop.f32.mrf.mxu0 }
 0x548   :  { %v3975_v57 = vadd.f32 %v4381_v15, %v4203_v38 }
 0x549   :  { %v3969_v2 = vpop.f32.mrf.mxu0 }
 0x54a   :  { %4026 = vst.msk [vmem:[%s7853_s7 + $0x38] sm:$0xff] %vm4018_vm14, %v3975_v57  ;;  %v3970_v55 = vadd.f32 %v4203_v38, %v3969_v2 }
 0x54c   :  { %4025 = vst.msk [vmem:[%s7853_s7 + $0x30] sm:$0xff] %vm4018_vm14, %v3970_v55 }
 0x551   :  { %v4384_v40 = vpop.f32.mrf.mxu0 }
 0x552   :  { %v3985_v42 = vadd.f32 %v4384_v40, %v4203_v38 }
 0x553   :  { %v3979_v9 = vpop.f32.mrf.mxu0 }
 0x554   :  { %4028 = vst.msk [vmem:[%s7853_s7 + $0x48] sm:$0xff] %vm4018_vm14, %v3985_v42  ;;  %v3980_v49 = vadd.f32 %v4203_v38, %v3979_v9 }
 0x556   :  { %4027 = vst.msk [vmem:[%s7853_s7 + $0x40] sm:$0xff] %vm4018_vm14, %v3980_v49 }
 0x557   :  { %v4387_v39 = vpop.f32.mrf.mxu0 }
 0x558   :  { %v3995_v37 = vadd.f32 %v4387_v39, %v4203_v38 }
 0x559   :  { %v3989_v28 = vpop.f32.mrf.mxu0 }
 0x55a   :  { %4030 = vst.msk [vmem:[%s7853_s7 + $0x58] sm:$0xff] %vm4018_vm14, %v3995_v37  ;;  %v3990_v3 = vadd.f32 %v4203_v38, %v3989_v28 }
 0x55c   :  { %4029 = vst.msk [vmem:[%s7853_s7 + $0x50] sm:$0xff] %vm4018_vm14, %v3990_v3 }
 0x55f   :  { %v4390_v25 = vpop.f32.mrf.mxu0 }
 0x560   :  { %v4005_v29 = vadd.f32 %v4390_v25, %v4203_v38 }
 0x561   :  { %v3999_v18 = vpop.f32.mrf.mxu0 }
 0x562   :  { %4032 = vst.msk [vmem:[%s7853_s7 + $0x68] sm:$0xff] %vm4018_vm14, %v4005_v29  ;;  %v4000_v50 = vadd.f32 %v4203_v38, %v3999_v18 }
 0x564   :  { %4031 = vst.msk [vmem:[%s7853_s7 + $0x60] sm:$0xff] %vm4018_vm14, %v4000_v50 }
 0x567   :  { %v4393_v27 = vpop.f32.mrf.mxu0 }
 0x568   :  { %v4015_v58 = vadd.f32 %v4393_v27, %v4203_v38 }
 0x569   :  { %v4009_v45 = vpop.f32.mrf.mxu0 }
 0x56a   :  { %4034 = vst.msk [vmem:[%s7853_s7 + $0x78] sm:$0xff] %vm4018_vm14, %v4015_v58  ;;  %v4010_v60 = vadd.f32 %v4203_v38, %v4009_v45 }
 0x56c   :  { %4033 = vst.msk [vmem:[%s7853_s7 + $0x70] sm:$0xff] %vm4018_vm14, %v4010_v60 }
 0x56d   :  { %4039 = vsyncpa [#allocation3], 1 }
 0x56e   :  { %4040 = vsyncpa [#allocation5], 1 }

</bundles_post_ra>
